<compile_context>
chip_gen: v5e
topology: v5e:2x2
jax: 0.10.0
libtpu: 0.0.40
codegen_flags: <defaults>
</compile_context>

<pallas_src>
import functools

import jax
import jax.numpy as jnp
from jax.experimental import pallas as pl
from jax.experimental.pallas import tpu as pltpu


# ----------------------------- ball query ---------------------------------- #

def _ball_query_kernel(new_ref, xyzt_ref, idx_ref, *, radius2, nsample):
    c = new_ref[0]          # (TP, 3)  centroid tile
    x = xyzt_ref[0]         # (3, N)   all points, lane-dense along N
    tp = c.shape[0]
    n = x.shape[1]

    # Squared distances, coordinate-wise (same arithmetic order as the CUDA op).
    d2 = jnp.zeros((tp, n), jnp.float32)
    for k in range(3):
        diff = c[:, k:k + 1] - x[k:k + 1, :]           # (TP, N)
        d2 = d2 + diff * diff
    mask = d2 < radius2                                 # strict < r^2

    # Inclusive prefix count of hits along the lane axis: log2(N) shift-add scan
    # (replaces the old O(N^2) lower-triangular matmul).
    rank = mask.astype(jnp.int32)                       # (TP, N)
    shift = 1
    while shift < n:
        shifted = jnp.concatenate(
            [jnp.zeros((tp, shift), jnp.int32), rank[:, :n - shift]], axis=1)
        rank = rank + shifted
        shift *= 2

    hit_rank = jnp.where(mask, rank, 0)                 # rank of each hit, 0 else
    total = rank[:, n - 1:n]                            # (TP, 1) hits per centroid
    jidx = jax.lax.broadcasted_iota(jnp.int32, (tp, n), 1)

    # Slot s holds the (s+1)-th in-radius index; missing slots are padded with
    # the first hit; if the ball is empty the row stays 0 (zero-init semantics).
    first = jnp.sum(jnp.where(hit_rank == 1, jidx, 0), axis=-1, keepdims=True)
    cols = [first]
    for s in range(1, nsample):
        pos = jnp.sum(jnp.where(hit_rank == s + 1, jidx, 0), axis=-1,
                      keepdims=True)
        cols.append(jnp.where(total > s, pos, first))
    idx_ref[0] = jnp.concatenate(cols, axis=-1).astype(jnp.int32)


def _ball_query_t(radius, nsample, xyz_t, new_xyz, *, tile_p=64):
    """xyz_t (B, 3, N), new_xyz (B, P, 3) -> idx (B, P, nsample) int32."""
    B, _, N = xyz_t.shape
    _, P, _ = new_xyz.shape
    tp = min(tile_p, P)
    assert P % tp == 0 and tp % 8 == 0, (P, tp)
    kernel = functools.partial(_ball_query_kernel,
                               radius2=float(radius) ** 2,
                               nsample=int(nsample))
    return pl.pallas_call(
        kernel,
        out_shape=jax.ShapeDtypeStruct((B, P, nsample), jnp.int32),
        grid=(B, P // tp),
        in_specs=[
            pl.BlockSpec((1, tp, 3), lambda b, j: (b, j, 0)),   # centroid tile
            pl.BlockSpec((1, 3, N), lambda b, j: (b, 0, 0)),    # points: once per batch
        ],
        out_specs=pl.BlockSpec((1, tp, nsample), lambda b, j: (b, j, 0)),
        compiler_params=pltpu.CompilerParams(
            dimension_semantics=("parallel", "parallel"),
            vmem_limit_bytes=32 * 1024 * 1024),
    )(new_xyz, xyz_t)


def ball_query(radius, nsample, xyz, new_xyz, *, tile_p=64):
    """xyz (B, N, 3), new_xyz (B, P, 3) -> idx (B, P, nsample) int32."""
    return _ball_query_t(radius, nsample, jnp.transpose(xyz, (0, 2, 1)),
                         new_xyz, tile_p=tile_p)


# ------------------------------ grouping ----------------------------------- #

def _group_kernel(idx_ref, feat_ref, cent_ref, out_ref, *, tile_p, nsample,
                  n_center):
    j = pl.program_id(1)
    idx = idx_ref[0]                            # (TP, S) int32
    feat = feat_ref[0]                          # (Ctot, N)
    ctot, n = feat.shape
    m = tile_p * nsample

    # Gather as a one-hot matmul on the MXU:
    #   sel[k, q] = 1 iff k == idx_flat[q]; gathered[c, q] = feat[c, idx_flat[q]]
    # sel entries are exactly 0/1, accumulation is f32.
    idx_flat = idx.reshape(1, m)
    sel = (jax.lax.broadcasted_iota(jnp.int32, (n, m), 0) == idx_flat)
    gathered = jnp.dot(feat, sel.astype(feat.dtype),
                       preferred_element_type=jnp.float32)          # (Ctot, M)

    if n_center > 0:
        # Subtract the centroid from the first `n_center` (= xyz) channels only.
        # The (3, TP) centroid tile is broadcast along the nsample axis with a
        # second tiny one-hot matmul so everything stays lane-major (no
        # reshapes/relayouts of the big gathered block).
        start = pl.multiple_of(j * tile_p, tile_p)
        cent = cent_ref[0, :, pl.ds(start, tile_p)]                  # (3, TP)
        if ctot > n_center:
            cent = jnp.concatenate(
                [cent, jnp.zeros((ctot - n_center, tile_p), cent.dtype)],
                axis=0)                                              # (Ctot, TP)
        prow = jax.lax.broadcasted_iota(jnp.int32, (tile_p, m), 0)
        qcol = jax.lax.broadcasted_iota(jnp.int32, (tile_p, m), 1)
        expand = ((qcol >= prow * nsample) &
                  (qcol < (prow + 1) * nsample)).astype(cent.dtype)  # (TP, M)
        centb = jnp.dot(cent, expand, preferred_element_type=jnp.float32)
        gathered = gathered - centb

    out_ref[0] = gathered.astype(out_ref.dtype)


def grouping_with_center(feat, cent_t, idx, *, n_center, tile_p=64):
    """feat (B, Ctot, N), cent_t (B, 3, P), idx (B, P, S) -> (B, Ctot, P, S)
    with out[b,c,p,s] = feat[b,c,idx[b,p,s]] minus cent_t[b,c,p] on the first
    `n_center` channels."""
    B, Ctot, N = feat.shape
    _, P, S = idx.shape
    tp = min(tile_p, P)
    assert P % tp == 0 and tp % 8 == 0, (P, tp)
    assert (tp * S) % 128 == 0 or tp == P, (tp, S)   # lane-dense output blocks
    kernel = functools.partial(_group_kernel, tile_p=tp, nsample=S,
                               n_center=n_center)
    out_flat = pl.pallas_call(
        kernel,
        out_shape=jax.ShapeDtypeStruct((B, Ctot, P * S), feat.dtype),
        grid=(B, P // tp),
        in_specs=[
            pl.BlockSpec((1, tp, S), lambda b, j: (b, j, 0)),      # idx tile
            pl.BlockSpec((1, Ctot, N), lambda b, j: (b, 0, 0)),    # features: once per batch
            pl.BlockSpec((1, 3, P), lambda b, j: (b, 0, 0)),       # centroids: once per batch
        ],
        out_specs=pl.BlockSpec((1, Ctot, tp * S), lambda b, j: (b, 0, j)),
        compiler_params=pltpu.CompilerParams(
            dimension_semantics=("parallel", "parallel"),
            vmem_limit_bytes=32 * 1024 * 1024),
    )(idx, feat, cent_t)
    return out_flat.reshape(B, Ctot, P, S)


# ----------------------------- full forward -------------------------------- #

def query_and_group(xyz, new_xyz, features=None, *, radius, nsample,
                    use_xyz=True, tile_p=64):
    """Forward pass of QueryAndGroup.

    xyz (B, N, 3), new_xyz (B, P, 3), features (B, C, N) or None.
    Returns (B, 3 + C, P, nsample) if use_xyz and features is not None,
            (B, C, P, nsample)     if not use_xyz,
            (B, 3, P, nsample)     if features is None.
    """
    xyz_t = jnp.transpose(xyz, (0, 2, 1))           # (B, 3, N) lane-dense
    new_t = jnp.transpose(new_xyz, (0, 2, 1))       # (B, 3, P)

    idx = _ball_query_t(radius, nsample, xyz_t, new_xyz, tile_p=tile_p)

    if features is not None:
        if use_xyz:
            comb = jnp.concatenate([xyz_t, features], axis=1)   # (B, 3 + C, N)
            n_center = 3
        else:
            comb = features
            n_center = 0
    else:
        assert use_xyz, "Cannot have not features and not use xyz as a feature!"
        comb = xyz_t
        n_center = 3

    return grouping_with_center(comb, new_t, idx, n_center=n_center,
                                tile_p=tile_p)


# ------------------------------ reference ---------------------------------- #

def _reference_forward(xyz, new_xyz, features, radius, nsample):
    """Pure-JAX reference matching the CUDA ball_query + grouping semantics."""
    B, N, _ = xyz.shape
    _, P, _ = new_xyz.shape
    d2 = jnp.zeros((B, P, N), jnp.float32)
    for k in range(3):
        diff = new_xyz[:, :, k][:, :, None] - xyz[:, :, k][:, None, :]
        d2 = d2 + diff * diff
    mask = d2 < radius ** 2
    rank = jnp.cumsum(mask.astype(jnp.int32), axis=-1)
    hit_rank = jnp.where(mask, rank, 0)
    jidx = jnp.arange(N, dtype=jnp.int32)
    total = rank[..., -1:]
    first = jnp.sum(jnp.where(hit_rank == 1, jidx, 0), axis=-1, keepdims=True)
    cols = [first]
    for s in range(1, nsample):
        pos = jnp.sum(jnp.where(hit_rank == s + 1, jidx, 0), axis=-1,
                      keepdims=True)
        cols.append(jnp.where(total > s, pos, first))
    idx = jnp.concatenate(cols, axis=-1)                         # (B, P, S)

    def gather(feat):                                            # (B,C,N)->(B,C,P,S)
        Cc = feat.shape[1]
        fb = jnp.broadcast_to(feat[:, :, None, :], (B, Cc, P, N))
        ib = jnp.broadcast_to(idx[:, None, :, :], (B, Cc, P, nsample))
        return jnp.take_along_axis(fb, ib, axis=-1)

    xyz_t = jnp.transpose(xyz, (0, 2, 1))
    grouped_xyz = gather(xyz_t) - jnp.transpose(new_xyz, (0, 2, 1))[:, :, :, None]
    grouped_feat = gather(features)
    return jnp.concatenate([grouped_xyz, grouped_feat], axis=1)


if __name__ == "__main__":
    B, N, P, C = 2, 256, 128, 4
    radius, nsample = 0.4, 16

    key = jax.random.PRNGKey(0)
    k_xyz, k_feat = jax.random.split(key)
    xyz = jax.random.uniform(k_xyz, (B, N, 3), dtype=jnp.float32)   # unit cube
    new_xyz = xyz[:, :P, :]                                         # centroids
    features = jax.random.normal(k_feat, (B, C, N), dtype=jnp.float32)

    out = query_and_group(xyz, new_xyz, features,
                          radius=radius, nsample=nsample, use_xyz=True)
    out = jax.block_until_ready(out)
    assert out.shape == (B, 3 + C, P, nsample), out.shape
    assert out.dtype == jnp.float32

    # Correctness check against the pure-JAX reference.  The check tolerates
    # rare boundary-tie index flips (sub-ulp distance rounding) and any reduced
    # precision accumulation in the one-hot gather matmul; a wrong gather /
    # centering would blow far past these thresholds.
    ref = _reference_forward(xyz, new_xyz, features, radius, nsample)
    mismatch = jnp.mean((jnp.abs(out - ref) > 5e-2).astype(jnp.float32))
    assert float(mismatch) < 1e-2, float(mismatch)

    print("KERNEL_OK")
</pallas_src>

<mosaic_0001>
module attributes {stable_mosaic.version = 11 : i64} {
  func.func @_ball_query_kernel(%arg0: i32, %arg1: i32, %arg2: memref<1x64x3xf32, #tpu.memory_space<vmem>>, %arg3: memref<1x3x256xf32, #tpu.memory_space<vmem>>, %arg4: memref<1x64x16xi32, #tpu.memory_space<vmem>>) attributes {dimension_semantics = [#tpu.dimension_semantics<parallel>, #tpu.dimension_semantics<parallel>], iteration_bounds = array<i64: 2, 2>, scalar_prefetch = 0 : i64, scratch_operands = 0 : i64, tpu.core_type = #tpu.core_type<tc>, window_params = [{transform_indices = @transform_0, window_bounds = array<i64: 1, 64, 3>}, {transform_indices = @transform_1, window_bounds = array<i64: 1, 3, 256>}, {transform_indices = @transform_2, window_bounds = array<i64: 1, 64, 16>}]} {
    %c0 = arith.constant 0 : index
    %c0_0 = arith.constant 0 : index
    %c0_1 = arith.constant 0 : index
    %0 = vector.load %arg2[%c0, %c0_0, %c0_1] : memref<1x64x3xf32, #tpu.memory_space<vmem>>, vector<1x64x3xf32>
    %1 = vector.shape_cast %0 : vector<1x64x3xf32> to vector<64x3xf32>
    %c0_2 = arith.constant 0 : index
    %c0_3 = arith.constant 0 : index
    %c0_4 = arith.constant 0 : index
    %2 = vector.load %arg3[%c0_2, %c0_3, %c0_4] : memref<1x3x256xf32, #tpu.memory_space<vmem>>, vector<1x3x256xf32>
    %3 = vector.shape_cast %2 : vector<1x3x256xf32> to vector<3x256xf32>
    %cst = arith.constant 0.000000e+00 : f32
    %4 = vector.broadcast %cst : f32 to vector<64x256xf32>
    %5 = vector.extract_strided_slice %1 {offsets = [0, 0], sizes = [64, 1], strides = [1, 1]} : vector<64x3xf32> to vector<64x1xf32>
    %6 = vector.extract_strided_slice %3 {offsets = [0, 0], sizes = [1, 256], strides = [1, 1]} : vector<3x256xf32> to vector<1x256xf32>
    %7 = vector.broadcast %5 : vector<64x1xf32> to vector<64x256xf32>
    %8 = vector.broadcast %6 : vector<1x256xf32> to vector<64x256xf32>
    %9 = arith.subf %7, %8 : vector<64x256xf32>
    %10 = arith.mulf %9, %9 : vector<64x256xf32>
    %11 = arith.addf %4, %10 : vector<64x256xf32>
    %12 = vector.extract_strided_slice %1 {offsets = [0, 1], sizes = [64, 1], strides = [1, 1]} : vector<64x3xf32> to vector<64x1xf32>
    %13 = vector.extract_strided_slice %3 {offsets = [1, 0], sizes = [1, 256], strides = [1, 1]} : vector<3x256xf32> to vector<1x256xf32>
    %14 = vector.broadcast %12 : vector<64x1xf32> to vector<64x256xf32>
    %15 = vector.broadcast %13 : vector<1x256xf32> to vector<64x256xf32>
    %16 = arith.subf %14, %15 : vector<64x256xf32>
    %17 = arith.mulf %16, %16 : vector<64x256xf32>
    %18 = arith.addf %11, %17 : vector<64x256xf32>
    %19 = vector.extract_strided_slice %1 {offsets = [0, 2], sizes = [64, 1], strides = [1, 1]} : vector<64x3xf32> to vector<64x1xf32>
    %20 = vector.extract_strided_slice %3 {offsets = [2, 0], sizes = [1, 256], strides = [1, 1]} : vector<3x256xf32> to vector<1x256xf32>
    %21 = vector.broadcast %19 : vector<64x1xf32> to vector<64x256xf32>
    %22 = vector.broadcast %20 : vector<1x256xf32> to vector<64x256xf32>
    %23 = arith.subf %21, %22 : vector<64x256xf32>
    %24 = arith.mulf %23, %23 : vector<64x256xf32>
    %25 = arith.addf %18, %24 : vector<64x256xf32>
    %cst_5 = arith.constant 1.600000e-01 : f32
    %26 = vector.broadcast %cst_5 : f32 to vector<64x256xf32>
    %27 = arith.cmpf olt, %25, %26 : vector<64x256xf32>
    %28 = arith.extui %27 : vector<64x256xi1> to vector<64x256xi32>
    %c0_i32 = arith.constant 0 : i32
    %29 = vector.broadcast %c0_i32 : i32 to vector<64x1xi32>
    %30 = vector.extract_strided_slice %28 {offsets = [0, 0], sizes = [64, 255], strides = [1, 1]} : vector<64x256xi32> to vector<64x255xi32>
    %31 = tpu.concatenate %29, %30 in 1 : vector<64x1xi32>, vector<64x255xi32> -> vector<64x256xi32>
    %32 = arith.addi %28, %31 : vector<64x256xi32>
    %c0_i32_6 = arith.constant 0 : i32
    %33 = vector.broadcast %c0_i32_6 : i32 to vector<64x2xi32>
    %34 = vector.extract_strided_slice %32 {offsets = [0, 0], sizes = [64, 254], strides = [1, 1]} : vector<64x256xi32> to vector<64x254xi32>
    %35 = tpu.concatenate %33, %34 in 1 : vector<64x2xi32>, vector<64x254xi32> -> vector<64x256xi32>
    %36 = arith.addi %32, %35 : vector<64x256xi32>
    %c0_i32_7 = arith.constant 0 : i32
    %37 = vector.broadcast %c0_i32_7 : i32 to vector<64x4xi32>
    %38 = vector.extract_strided_slice %36 {offsets = [0, 0], sizes = [64, 252], strides = [1, 1]} : vector<64x256xi32> to vector<64x252xi32>
    %39 = tpu.concatenate %37, %38 in 1 : vector<64x4xi32>, vector<64x252xi32> -> vector<64x256xi32>
    %40 = arith.addi %36, %39 : vector<64x256xi32>
    %c0_i32_8 = arith.constant 0 : i32
    %41 = vector.broadcast %c0_i32_8 : i32 to vector<64x8xi32>
    %42 = vector.extract_strided_slice %40 {offsets = [0, 0], sizes = [64, 248], strides = [1, 1]} : vector<64x256xi32> to vector<64x248xi32>
    %43 = tpu.concatenate %41, %42 in 1 : vector<64x8xi32>, vector<64x248xi32> -> vector<64x256xi32>
    %44 = arith.addi %40, %43 : vector<64x256xi32>
    %c0_i32_9 = arith.constant 0 : i32
    %45 = vector.broadcast %c0_i32_9 : i32 to vector<64x16xi32>
    %46 = vector.extract_strided_slice %44 {offsets = [0, 0], sizes = [64, 240], strides = [1, 1]} : vector<64x256xi32> to vector<64x240xi32>
    %47 = tpu.concatenate %45, %46 in 1 : vector<64x16xi32>, vector<64x240xi32> -> vector<64x256xi32>
    %48 = arith.addi %44, %47 : vector<64x256xi32>
    %c0_i32_10 = arith.constant 0 : i32
    %49 = vector.broadcast %c0_i32_10 : i32 to vector<64x32xi32>
    %50 = vector.extract_strided_slice %48 {offsets = [0, 0], sizes = [64, 224], strides = [1, 1]} : vector<64x256xi32> to vector<64x224xi32>
    %51 = tpu.concatenate %49, %50 in 1 : vector<64x32xi32>, vector<64x224xi32> -> vector<64x256xi32>
    %52 = arith.addi %48, %51 : vector<64x256xi32>
    %c0_i32_11 = arith.constant 0 : i32
    %53 = vector.broadcast %c0_i32_11 : i32 to vector<64x64xi32>
    %54 = vector.extract_strided_slice %52 {offsets = [0, 0], sizes = [64, 192], strides = [1, 1]} : vector<64x256xi32> to vector<64x192xi32>
    %55 = tpu.concatenate %53, %54 in 1 : vector<64x64xi32>, vector<64x192xi32> -> vector<64x256xi32>
    %56 = arith.addi %52, %55 : vector<64x256xi32>
    %c0_i32_12 = arith.constant 0 : i32
    %57 = vector.broadcast %c0_i32_12 : i32 to vector<64x128xi32>
    %58 = vector.extract_strided_slice %56 {offsets = [0, 0], sizes = [64, 128], strides = [1, 1]} : vector<64x256xi32> to vector<64x128xi32>
    %59 = tpu.concatenate %57, %58 in 1 : vector<64x128xi32>, vector<64x128xi32> -> vector<64x256xi32>
    %60 = arith.addi %56, %59 : vector<64x256xi32>
    %c0_i32_13 = arith.constant 0 : i32
    %61 = vector.broadcast %c0_i32_13 : i32 to vector<64x256xi32>
    %62 = arith.select %27, %60, %61 : vector<64x256xi1>, vector<64x256xi32>
    %63 = vector.extract_strided_slice %60 {offsets = [0, 255], sizes = [64, 1], strides = [1, 1]} : vector<64x256xi32> to vector<64x1xi32>
    %64 = tpu.iota {dimensions = array<i32: 1>} : vector<64x256xi32>
    %c1_i32 = arith.constant 1 : i32
    %65 = vector.broadcast %c1_i32 : i32 to vector<64x256xi32>
    %66 = arith.cmpi eq, %62, %65 : vector<64x256xi32>
    %c0_i32_14 = arith.constant 0 : i32
    %67 = vector.broadcast %c0_i32_14 : i32 to vector<64x256xi32>
    %68 = arith.select %66, %64, %67 : vector<64x256xi1>, vector<64x256xi32>
    %cst_15 = arith.constant dense<0> : vector<64xi32>
    %69 = vector.multi_reduction <add>, %68, %cst_15 [1] : vector<64x256xi32> to vector<64xi32>
    %70 = vector.shape_cast %69 : vector<64xi32> to vector<64x1xi32>
    %c2_i32 = arith.constant 2 : i32
    %71 = vector.broadcast %c2_i32 : i32 to vector<64x256xi32>
    %72 = arith.cmpi eq, %62, %71 : vector<64x256xi32>
    %c0_i32_16 = arith.constant 0 : i32
    %73 = vector.broadcast %c0_i32_16 : i32 to vector<64x256xi32>
    %74 = arith.select %72, %64, %73 : vector<64x256xi1>, vector<64x256xi32>
    %cst_17 = arith.constant dense<0> : vector<64xi32>
    %75 = vector.multi_reduction <add>, %74, %cst_17 [1] : vector<64x256xi32> to vector<64xi32>
    %76 = vector.shape_cast %75 : vector<64xi32> to vector<64x1xi32>
    %c1_i32_18 = arith.constant 1 : i32
    %77 = vector.broadcast %c1_i32_18 : i32 to vector<64x1xi32>
    %78 = arith.cmpi sgt, %63, %77 : vector<64x1xi32>
    %79 = arith.select %78, %76, %70 : vector<64x1xi1>, vector<64x1xi32>
    %c3_i32 = arith.constant 3 : i32
    %80 = vector.broadcast %c3_i32 : i32 to vector<64x256xi32>
    %81 = arith.cmpi eq, %62, %80 : vector<64x256xi32>
    %c0_i32_19 = arith.constant 0 : i32
    %82 = vector.broadcast %c0_i32_19 : i32 to vector<64x256xi32>
    %83 = arith.select %81, %64, %82 : vector<64x256xi1>, vector<64x256xi32>
    %cst_20 = arith.constant dense<0> : vector<64xi32>
    %84 = vector.multi_reduction <add>, %83, %cst_20 [1] : vector<64x256xi32> to vector<64xi32>
    %85 = vector.shape_cast %84 : vector<64xi32> to vector<64x1xi32>
    %c2_i32_21 = arith.constant 2 : i32
    %86 = vector.broadcast %c2_i32_21 : i32 to vector<64x1xi32>
    %87 = arith.cmpi sgt, %63, %86 : vector<64x1xi32>
    %88 = arith.select %87, %85, %70 : vector<64x1xi1>, vector<64x1xi32>
    %c4_i32 = arith.constant 4 : i32
    %89 = vector.broadcast %c4_i32 : i32 to vector<64x256xi32>
    %90 = arith.cmpi eq, %62, %89 : vector<64x256xi32>
    %c0_i32_22 = arith.constant 0 : i32
    %91 = vector.broadcast %c0_i32_22 : i32 to vector<64x256xi32>
    %92 = arith.select %90, %64, %91 : vector<64x256xi1>, vector<64x256xi32>
    %cst_23 = arith.constant dense<0> : vector<64xi32>
    %93 = vector.multi_reduction <add>, %92, %cst_23 [1] : vector<64x256xi32> to vector<64xi32>
    %94 = vector.shape_cast %93 : vector<64xi32> to vector<64x1xi32>
    %c3_i32_24 = arith.constant 3 : i32
    %95 = vector.broadcast %c3_i32_24 : i32 to vector<64x1xi32>
    %96 = arith.cmpi sgt, %63, %95 : vector<64x1xi32>
    %97 = arith.select %96, %94, %70 : vector<64x1xi1>, vector<64x1xi32>
    %c5_i32 = arith.constant 5 : i32
    %98 = vector.broadcast %c5_i32 : i32 to vector<64x256xi32>
    %99 = arith.cmpi eq, %62, %98 : vector<64x256xi32>
    %c0_i32_25 = arith.constant 0 : i32
    %100 = vector.broadcast %c0_i32_25 : i32 to vector<64x256xi32>
    %101 = arith.select %99, %64, %100 : vector<64x256xi1>, vector<64x256xi32>
    %cst_26 = arith.constant dense<0> : vector<64xi32>
    %102 = vector.multi_reduction <add>, %101, %cst_26 [1] : vector<64x256xi32> to vector<64xi32>
    %103 = vector.shape_cast %102 : vector<64xi32> to vector<64x1xi32>
    %c4_i32_27 = arith.constant 4 : i32
    %104 = vector.broadcast %c4_i32_27 : i32 to vector<64x1xi32>
    %105 = arith.cmpi sgt, %63, %104 : vector<64x1xi32>
    %106 = arith.select %105, %103, %70 : vector<64x1xi1>, vector<64x1xi32>
    %c6_i32 = arith.constant 6 : i32
    %107 = vector.broadcast %c6_i32 : i32 to vector<64x256xi32>
    %108 = arith.cmpi eq, %62, %107 : vector<64x256xi32>
    %c0_i32_28 = arith.constant 0 : i32
    %109 = vector.broadcast %c0_i32_28 : i32 to vector<64x256xi32>
    %110 = arith.select %108, %64, %109 : vector<64x256xi1>, vector<64x256xi32>
    %cst_29 = arith.constant dense<0> : vector<64xi32>
    %111 = vector.multi_reduction <add>, %110, %cst_29 [1] : vector<64x256xi32> to vector<64xi32>
    %112 = vector.shape_cast %111 : vector<64xi32> to vector<64x1xi32>
    %c5_i32_30 = arith.constant 5 : i32
    %113 = vector.broadcast %c5_i32_30 : i32 to vector<64x1xi32>
    %114 = arith.cmpi sgt, %63, %113 : vector<64x1xi32>
    %115 = arith.select %114, %112, %70 : vector<64x1xi1>, vector<64x1xi32>
    %c7_i32 = arith.constant 7 : i32
    %116 = vector.broadcast %c7_i32 : i32 to vector<64x256xi32>
    %117 = arith.cmpi eq, %62, %116 : vector<64x256xi32>
    %c0_i32_31 = arith.constant 0 : i32
    %118 = vector.broadcast %c0_i32_31 : i32 to vector<64x256xi32>
    %119 = arith.select %117, %64, %118 : vector<64x256xi1>, vector<64x256xi32>
    %cst_32 = arith.constant dense<0> : vector<64xi32>
    %120 = vector.multi_reduction <add>, %119, %cst_32 [1] : vector<64x256xi32> to vector<64xi32>
    %121 = vector.shape_cast %120 : vector<64xi32> to vector<64x1xi32>
    %c6_i32_33 = arith.constant 6 : i32
    %122 = vector.broadcast %c6_i32_33 : i32 to vector<64x1xi32>
    %123 = arith.cmpi sgt, %63, %122 : vector<64x1xi32>
    %124 = arith.select %123, %121, %70 : vector<64x1xi1>, vector<64x1xi32>
    %c8_i32 = arith.constant 8 : i32
    %125 = vector.broadcast %c8_i32 : i32 to vector<64x256xi32>
    %126 = arith.cmpi eq, %62, %125 : vector<64x256xi32>
    %c0_i32_34 = arith.constant 0 : i32
    %127 = vector.broadcast %c0_i32_34 : i32 to vector<64x256xi32>
    %128 = arith.select %126, %64, %127 : vector<64x256xi1>, vector<64x256xi32>
    %cst_35 = arith.constant dense<0> : vector<64xi32>
    %129 = vector.multi_reduction <add>, %128, %cst_35 [1] : vector<64x256xi32> to vector<64xi32>
    %130 = vector.shape_cast %129 : vector<64xi32> to vector<64x1xi32>
    %c7_i32_36 = arith.constant 7 : i32
    %131 = vector.broadcast %c7_i32_36 : i32 to vector<64x1xi32>
    %132 = arith.cmpi sgt, %63, %131 : vector<64x1xi32>
    %133 = arith.select %132, %130, %70 : vector<64x1xi1>, vector<64x1xi32>
    %c9_i32 = arith.constant 9 : i32
    %134 = vector.broadcast %c9_i32 : i32 to vector<64x256xi32>
    %135 = arith.cmpi eq, %62, %134 : vector<64x256xi32>
    %c0_i32_37 = arith.constant 0 : i32
    %136 = vector.broadcast %c0_i32_37 : i32 to vector<64x256xi32>
    %137 = arith.select %135, %64, %136 : vector<64x256xi1>, vector<64x256xi32>
    %cst_38 = arith.constant dense<0> : vector<64xi32>
    %138 = vector.multi_reduction <add>, %137, %cst_38 [1] : vector<64x256xi32> to vector<64xi32>
    %139 = vector.shape_cast %138 : vector<64xi32> to vector<64x1xi32>
    %c8_i32_39 = arith.constant 8 : i32
    %140 = vector.broadcast %c8_i32_39 : i32 to vector<64x1xi32>
    %141 = arith.cmpi sgt, %63, %140 : vector<64x1xi32>
    %142 = arith.select %141, %139, %70 : vector<64x1xi1>, vector<64x1xi32>
    %c10_i32 = arith.constant 10 : i32
    %143 = vector.broadcast %c10_i32 : i32 to vector<64x256xi32>
    %144 = arith.cmpi eq, %62, %143 : vector<64x256xi32>
    %c0_i32_40 = arith.constant 0 : i32
    %145 = vector.broadcast %c0_i32_40 : i32 to vector<64x256xi32>
    %146 = arith.select %144, %64, %145 : vector<64x256xi1>, vector<64x256xi32>
    %cst_41 = arith.constant dense<0> : vector<64xi32>
    %147 = vector.multi_reduction <add>, %146, %cst_41 [1] : vector<64x256xi32> to vector<64xi32>
    %148 = vector.shape_cast %147 : vector<64xi32> to vector<64x1xi32>
    %c9_i32_42 = arith.constant 9 : i32
    %149 = vector.broadcast %c9_i32_42 : i32 to vector<64x1xi32>
    %150 = arith.cmpi sgt, %63, %149 : vector<64x1xi32>
    %151 = arith.select %150, %148, %70 : vector<64x1xi1>, vector<64x1xi32>
    %c11_i32 = arith.constant 11 : i32
    %152 = vector.broadcast %c11_i32 : i32 to vector<64x256xi32>
    %153 = arith.cmpi eq, %62, %152 : vector<64x256xi32>
    %c0_i32_43 = arith.constant 0 : i32
    %154 = vector.broadcast %c0_i32_43 : i32 to vector<64x256xi32>
    %155 = arith.select %153, %64, %154 : vector<64x256xi1>, vector<64x256xi32>
    %cst_44 = arith.constant dense<0> : vector<64xi32>
    %156 = vector.multi_reduction <add>, %155, %cst_44 [1] : vector<64x256xi32> to vector<64xi32>
    %157 = vector.shape_cast %156 : vector<64xi32> to vector<64x1xi32>
    %c10_i32_45 = arith.constant 10 : i32
    %158 = vector.broadcast %c10_i32_45 : i32 to vector<64x1xi32>
    %159 = arith.cmpi sgt, %63, %158 : vector<64x1xi32>
    %160 = arith.select %159, %157, %70 : vector<64x1xi1>, vector<64x1xi32>
    %c12_i32 = arith.constant 12 : i32
    %161 = vector.broadcast %c12_i32 : i32 to vector<64x256xi32>
    %162 = arith.cmpi eq, %62, %161 : vector<64x256xi32>
    %c0_i32_46 = arith.constant 0 : i32
    %163 = vector.broadcast %c0_i32_46 : i32 to vector<64x256xi32>
    %164 = arith.select %162, %64, %163 : vector<64x256xi1>, vector<64x256xi32>
    %cst_47 = arith.constant dense<0> : vector<64xi32>
    %165 = vector.multi_reduction <add>, %164, %cst_47 [1] : vector<64x256xi32> to vector<64xi32>
    %166 = vector.shape_cast %165 : vector<64xi32> to vector<64x1xi32>
    %c11_i32_48 = arith.constant 11 : i32
    %167 = vector.broadcast %c11_i32_48 : i32 to vector<64x1xi32>
    %168 = arith.cmpi sgt, %63, %167 : vector<64x1xi32>
    %169 = arith.select %168, %166, %70 : vector<64x1xi1>, vector<64x1xi32>
    %c13_i32 = arith.constant 13 : i32
    %170 = vector.broadcast %c13_i32 : i32 to vector<64x256xi32>
    %171 = arith.cmpi eq, %62, %170 : vector<64x256xi32>
    %c0_i32_49 = arith.constant 0 : i32
    %172 = vector.broadcast %c0_i32_49 : i32 to vector<64x256xi32>
    %173 = arith.select %171, %64, %172 : vector<64x256xi1>, vector<64x256xi32>
    %cst_50 = arith.constant dense<0> : vector<64xi32>
    %174 = vector.multi_reduction <add>, %173, %cst_50 [1] : vector<64x256xi32> to vector<64xi32>
    %175 = vector.shape_cast %174 : vector<64xi32> to vector<64x1xi32>
    %c12_i32_51 = arith.constant 12 : i32
    %176 = vector.broadcast %c12_i32_51 : i32 to vector<64x1xi32>
    %177 = arith.cmpi sgt, %63, %176 : vector<64x1xi32>
    %178 = arith.select %177, %175, %70 : vector<64x1xi1>, vector<64x1xi32>
    %c14_i32 = arith.constant 14 : i32
    %179 = vector.broadcast %c14_i32 : i32 to vector<64x256xi32>
    %180 = arith.cmpi eq, %62, %179 : vector<64x256xi32>
    %c0_i32_52 = arith.constant 0 : i32
    %181 = vector.broadcast %c0_i32_52 : i32 to vector<64x256xi32>
    %182 = arith.select %180, %64, %181 : vector<64x256xi1>, vector<64x256xi32>
    %cst_53 = arith.constant dense<0> : vector<64xi32>
    %183 = vector.multi_reduction <add>, %182, %cst_53 [1] : vector<64x256xi32> to vector<64xi32>
    %184 = vector.shape_cast %183 : vector<64xi32> to vector<64x1xi32>
    %c13_i32_54 = arith.constant 13 : i32
    %185 = vector.broadcast %c13_i32_54 : i32 to vector<64x1xi32>
    %186 = arith.cmpi sgt, %63, %185 : vector<64x1xi32>
    %187 = arith.select %186, %184, %70 : vector<64x1xi1>, vector<64x1xi32>
    %c15_i32 = arith.constant 15 : i32
    %188 = vector.broadcast %c15_i32 : i32 to vector<64x256xi32>
    %189 = arith.cmpi eq, %62, %188 : vector<64x256xi32>
    %c0_i32_55 = arith.constant 0 : i32
    %190 = vector.broadcast %c0_i32_55 : i32 to vector<64x256xi32>
    %191 = arith.select %189, %64, %190 : vector<64x256xi1>, vector<64x256xi32>
    %cst_56 = arith.constant dense<0> : vector<64xi32>
    %192 = vector.multi_reduction <add>, %191, %cst_56 [1] : vector<64x256xi32> to vector<64xi32>
    %193 = vector.shape_cast %192 : vector<64xi32> to vector<64x1xi32>
    %c14_i32_57 = arith.constant 14 : i32
    %194 = vector.broadcast %c14_i32_57 : i32 to vector<64x1xi32>
    %195 = arith.cmpi sgt, %63, %194 : vector<64x1xi32>
    %196 = arith.select %195, %193, %70 : vector<64x1xi1>, vector<64x1xi32>
    %c16_i32 = arith.constant 16 : i32
    %197 = vector.broadcast %c16_i32 : i32 to vector<64x256xi32>
    %198 = arith.cmpi eq, %62, %197 : vector<64x256xi32>
    %c0_i32_58 = arith.constant 0 : i32
    %199 = vector.broadcast %c0_i32_58 : i32 to vector<64x256xi32>
    %200 = arith.select %198, %64, %199 : vector<64x256xi1>, vector<64x256xi32>
    %cst_59 = arith.constant dense<0> : vector<64xi32>
    %201 = vector.multi_reduction <add>, %200, %cst_59 [1] : vector<64x256xi32> to vector<64xi32>
    %202 = vector.shape_cast %201 : vector<64xi32> to vector<64x1xi32>
    %c15_i32_60 = arith.constant 15 : i32
    %203 = vector.broadcast %c15_i32_60 : i32 to vector<64x1xi32>
    %204 = arith.cmpi sgt, %63, %203 : vector<64x1xi32>
    %205 = arith.select %204, %202, %70 : vector<64x1xi1>, vector<64x1xi32>
    %206 = tpu.concatenate %70, %79, %88, %97, %106, %115, %124, %133, %142, %151, %160, %169, %178, %187, %196, %205 in 1 : vector<64x1xi32>, vector<64x1xi32>, vector<64x1xi32>, vector<64x1xi32>, vector<64x1xi32>, vector<64x1xi32>, vector<64x1xi32>, vector<64x1xi32>, vector<64x1xi32>, vector<64x1xi32>, vector<64x1xi32>, vector<64x1xi32>, vector<64x1xi32>, vector<64x1xi32>, vector<64x1xi32>, vector<64x1xi32> -> vector<64x16xi32>
    %c0_61 = arith.constant 0 : index
    %c0_62 = arith.constant 0 : index
    %c0_63 = arith.constant 0 : index
    %207 = vector.load %arg4[%c0_61, %c0_62, %c0_63] : memref<1x64x16xi32, #tpu.memory_space<vmem>>, vector<1x64x16xi32>
    %208 = vector.shape_cast %207 : vector<1x64x16xi32> to vector<64x16xi32>
    %209 = vector.shape_cast %206 : vector<64x16xi32> to vector<1x64x16xi32>
    tpu.vector_store %arg4[%c0_61, %c0_62, %c0_63], %209 {strides = array<i32>} : memref<1x64x16xi32, #tpu.memory_space<vmem>>, vector<1x64x16xi32>,
    return
  }
  func.func @transform_0(%arg0: i32, %arg1: i32) -> (i32, i32, i32) {
    %c0_i32 = arith.constant 0 : i32
    %c0_i32_0 = arith.constant 0 : i32
    return %arg0, %arg1, %c0_i32 : i32, i32, i32
  }
  func.func @transform_1(%arg0: i32, %arg1: i32) -> (i32, i32, i32) {
    %c0_i32 = arith.constant 0 : i32
    %c0_i32_0 = arith.constant 0 : i32
    %c0_i32_1 = arith.constant 0 : i32
    return %arg0, %c0_i32, %c0_i32_0 : i32, i32, i32
  }
  func.func @transform_2(%arg0: i32, %arg1: i32) -> (i32, i32, i32) {
    %c0_i32 = arith.constant 0 : i32
    %c0_i32_0 = arith.constant 0 : i32
    return %arg0, %arg1, %c0_i32 : i32, i32, i32
  }
}

</mosaic_0001>

<bundles_post_ra>
// kernel: tpu_custom_call.1
= control target key start
LH: loop header
LB: loop body
LE: loop exit
PB: predicated region body
PF: predicated region fallthrough
CT: control target
= control target key end

     0   :  { %s4052_s9 = smov 0   ;;  %s4054_s10 = smov 0   ;;  %s6917_s0 = inlined_call_operand.vmem [shape: f32[2,128,3], index: 0, kind: input, shape index: {}]   ;;  %s6918_s1 = inlined_call_operand.vmem [shape: f32[2,3,256], index: 1, kind: input, shape index: {}]   ;;  %s6919_s2 = inlined_call_operand.vmem [shape: s32[2,128,16], index: 2, kind: output, shape index: {}]  }
   0x1   :  { %s4056_s11 = smov 0   ;;  %s4058_s12 = smov 0  }
   0x2   :  { %s4060_s13 = smov 0  }
   0x3 LB: > { %s21_s14 = sadd.s32 1, %s4006_s11  ;;  %s24_s15 = sadd.s32 1, %s4010_s12  ;;  %s4014_s13 = sphi %s4060_s13, %s12_s13   ;;  %s4010_s12 = sphi %s4058_s12, %s7388_s12   ;;  %s4006_s11 = sphi %s4056_s11, %s7387_s11   ;;  %s4002_s10 = sphi %s4054_s10, %s7386_s10   ;;  %s3998_s9 = sphi %s4052_s9, %s7385_s9  }
   0x4   : > { %p22_p0 = scmp.ge.s32.totalorder %s21_s14, 2  ;;  %p3894_p1 = scmp.ge.s32.totalorder %s4014_s13, 1 }
   0x5   : > { %p143_p2 = scmp.lt.s32.totalorder %s4014_s13, 5 }
   0x6   : > { %s7390_s14 = smov (%p22_p0, %s21_s14), 0  ;;  %s7392_s15 = smov (!%p22_p0, %s24_s15), %s4010_s12 }
   0x7   : > { %p144_p3 = pnand %p3894_p1, %p143_p2  ;;  %p26_p4 = scmp.ge.s32.totalorder %s7392_s15, 2 }
   0x9   : > { %s7394_s15 = smov (%p26_p4, %s7392_s15), 0  ;;  %147 = sbr.rel (%p144_p3) target bundleno = 2146 (0x862), region = 28 }
   0xe   : > { %s3895_s16 = sshll.u32 %s3998_s9, 3  ;;  %p179_p5 = scmp.lt.s32.totalorder %s4002_s10, 1  ;;  %v4016_v0 = vmov 0   ;;  %v4017_v9 = vmov 1   ;;  %v4018_v10 = vmov 2  }
   0xf   : > { %3969 = vset.pattern.permute.xlu2 %v4016_v0  ;;  %3968 = vset.pattern.permute.xlu1 %v4016_v0  ;;  %p181_p6 = scmp.lt.s32.totalorder %s3895_s16, 15  ;;  %s4019_s27 = smov 1  }
  0x10   : > { %3967 = vset.pattern.permute.xlu0 %v4016_v0  ;;  %s7396_s10 = smov (!%p179_p5, %s4002_s10), 1  ;;  %s4020_s28 = smov 2  }
  0x11   : > { %s7398_s16 = smov (!%p181_p6, %s3895_s16), 15  ;;  %s3896_s17 = sshll.u32 %s7396_s10, 4 }
  0x12   : > { %s4088_s18 = sadd.s32 %s3896_s17, %s7398_s16  ;;  %s3905_s23 = sshll.u32 %s7396_s10, 3 }
  0x13   : > { %s3897_s19 = sshll.u32 %s4088_s18, 3  ;;  %s192_s26 = scalar_lea.vmem %s6918_s1, %s3905_s23 }
  0x14   : > { %s186_s22 = scalar_lea.vmem %s6917_s0, %s3897_s19  ;;  %v211_v17 = vld [vmem:[%s192_s26] sm:$0x77]  ;;  %s4021_s29 = smov 4  }
  0x15   : > { %v207_v1 = vld [vmem:[%s186_s22 + $0x20] sm:$0xff]  ;;  %v205_v2 = vld [vmem:[%s186_s22 + $0x10] sm:$0xff]  ;;  %v208_v4 = vld [vmem:[%s186_s22 + $0x28] sm:$0xff]  ;;  %v253_v18 = vperm.slane %v211_v17, 0  ;;  %v254_v19 = vperm.slane %v211_v17, 4  ;;  %v339_v20 = vperm.slane %v211_v17, 1  ;;  %s6849_s26 = scalar_lea.vmem %s6919_s2, %s3897_s19 }
  0x16   : > { %v203_v3 = vld [vmem:[%s186_s22] sm:$0xff]  ;;  %234 = vperm.xlu2 %3969, %v207_v1   ;;  %224 = vperm.xlu1 %3968, %v205_v2   ;;  %v206_v5 = vld [vmem:[%s186_s22 + $0x18] sm:$0xff]  ;;  %v204_v6 = vld [vmem:[%s186_s22 + $0x8] sm:$0xff]  ;;  %v340_v21 = vperm.slane %v211_v17, 5  ;;  %v425_v29 = vperm.slane %v211_v17, 2  ;;  %v426_v30 = vperm.slane %v211_v17, 6 }
  0x17   : > { %214 = vperm.xlu0 %3967, %v203_v3   ;;  %v210_v7 = vld [vmem:[%s186_s22 + $0x38] sm:$0xff]  ;;  %v209_v8 = vld [vmem:[%s186_s22 + $0x30] sm:$0xff]  ;;  %v4110_v24 = vperm.slane %v253_v18, 0  ;;  %v4112_v25 = vperm.slane %v254_v19, 0  ;;  %v4114_v26 = vperm.slane %v339_v20, 1  ;;  %s4022_s30 = smov 8  }
  0x18   : > { %v4116_v27 = vperm.slane %v340_v21, 1  ;;  %v4124_v35 = vperm.slane %v425_v29, 2  ;;  %v4126_v36 = vperm.slane %v426_v30, 2  ;;  %s4023_s3 = smov 16   ;;  %s4024_s4 = smov 32  }
  0x19   : > { %s4025_s5 = smov 64   ;;  %s4026_s6 = smov 3  }
  0x1a   : > { %s4027_s7 = smov 5   ;;  %s4028_s8 = smov 6  }
  0x1b   : > { %s4029_s9 = smov 7   ;;  %s4030_s10 = smov 9  }
  0x1c   : > { %s4031_s16 = smov 10   ;;  %s4032_s17 = smov 11  }
  0x1d   : > { %s4033_s20 = smov 12   ;;  %s4034_s21 = smov 13  }
  0x1e   : > { %239 = vperm.xlu2 %3969, %v208_v4   ;;  %229 = vperm.xlu1 %3968, %v206_v5   ;;  %s4035_s22 = smov 14   ;;  %s4036_s23 = smov 15  }
  0x1f   : > { %219 = vperm.xlu0 %3967, %v204_v6  }
  0x26   : > { %3970 = vset.pattern.permute.xlu2 %v4017_v9  ;;  %249 = vperm.xlu1 %3968, %v210_v7  }
  0x27   : > { %244 = vperm.xlu0 %3967, %v209_v8   ;;  %308 = vperm.xlu2 %3970, %v203_v3  }
  0x2e   : > { %3972 = vset.pattern.permute.xlu1 %v4017_v9 }
  0x2f   : > { %3971 = vset.pattern.permute.xlu0 %v4017_v9  ;;  %316 = vperm.xlu1 %3972, %v205_v2  }
  0x30   : > { %320 = vperm.xlu2 %3970, %v206_v5   ;;  %312 = vperm.xlu0 %3971, %v204_v6  }
  0x37   : > { %324 = vperm.xlu1 %3972, %v207_v1  }
  0x38   : > { %328 = vperm.xlu2 %3970, %v208_v4   ;;  %332 = vperm.xlu0 %3971, %v209_v8  }
  0x3f   : > { %336 = vperm.xlu1 %3972, %v210_v7  }
  0x40   : > { %3973 = vset.pattern.permute.xlu2 %v4018_v10  ;;  %3974 = vset.pattern.permute.xlu0 %v4018_v10 }
  0x41   : > { %394 = vperm.xlu2 %3973, %v203_v3   ;;  %398 = vperm.xlu0 %3974, %v204_v6  }
  0x47   : > { %3975 = vset.pattern.permute.xlu1 %v4018_v10 }
  0x48   : > { %402 = vperm.xlu1 %3975, %v205_v2  }
  0x49   : > { %406 = vperm.xlu2 %3973, %v206_v5   ;;  %418 = vperm.xlu0 %3974, %v209_v8  }
  0x50   : > { %410 = vperm.xlu1 %3975, %v207_v1  }
  0x51   : > { %414 = vperm.xlu2 %3973, %v208_v4  }
  0x58   : > { %422 = vperm.xlu1 %3975, %v210_v7  }
  0x70   : > { %v4096_v11 = vpop.permute.xlu2 %234 }
  0x71   : > { %v267_v2 = vsub.f32 %v4096_v11, %v4110_v24  ;;  %v268_v5 = vsub.f32 %v4096_v11, %v4112_v25 }
  0x78   : > { %v4098_v12 = vpop.permute.xlu2 %239 }
  0x81   : > { %v309_v13 = vpop.permute.xlu2 %308 }
  0x82   : > { %v345_v31 = vsub.f32 %v309_v13, %v4114_v26  ;;  %v346_v32 = vsub.f32 %v309_v13, %v4116_v27 }
  0x84   : > { %v361_v39 = vmul.f32 %v345_v31, %v345_v31  ;;  %v362_v40 = vmul.f32 %v346_v32, %v346_v32 }
  0x88   : > { %v4104_v14 = vpop.permute.xlu1 %224 }
  0x89   : > { %v215_v15 = vpop.permute.xlu0 %214  ;;  %v263_v6 = vsub.f32 %v4104_v14, %v4110_v24  ;;  %v264_v11 = vsub.f32 %v4104_v14, %v4112_v25 }
  0x8a   : > { %v4106_v16 = vpop.permute.xlu2 %320  ;;  %v259_v33 = vsub.f32 %v215_v15, %v4110_v24  ;;  %v260_v34 = vsub.f32 %v215_v15, %v4112_v25 }
  0x8b   : > { %v351_v61 = vsub.f32 %v4106_v16, %v4114_v26 }
  0x8c   : > { %v275_v41 = vmul.f32 %v259_v33, %v259_v33  ;;  %v276_v42 = vmul.f32 %v260_v34, %v260_v34 }
  0x8d   : > { %v367_v9 = vmul.f32 %v351_v61, %v351_v61 }
  0x8e   : > { %v378_v48 = vadd.f32 %v362_v40, %v276_v42  ;;  %v377_v49 = vadd.f32 %v361_v39, %v275_v41  ;;  %v4183_v39 = vmul.f32 %v267_v2, %v267_v2  ;;  %v269_v40 = vsub.f32 %v4098_v12, %v4110_v24 }
  0x8f   : > { %v279_v41 = vmul.f32 %v263_v6, %v263_v6 }
  0x90   : > { %v4108_v22 = vpop.permute.xlu1 %229 }
  0x91   : > { %v220_v23 = vpop.permute.xlu0 %219  ;;  %v265_v62 = vsub.f32 %v4108_v22, %v4110_v24  ;;  %v266_v29 = vsub.f32 %v4108_v22, %v4112_v25 }
  0x92   : > { %v4118_v28 = vpop.permute.xlu2 %328  ;;  %v261_v63 = vsub.f32 %v220_v23, %v4110_v24  ;;  %v262_v1 = vsub.f32 %v220_v23, %v4112_v25  ;;  %v352_v23 = vsub.f32 %v4106_v16, %v4116_v27 }
  0x93   : > { %v281_v10 = vmul.f32 %v265_v62, %v265_v62  ;;  %v356_v61 = vsub.f32 %v4118_v28, %v4116_v27 }
  0x94   : > { %v277_v13 = vmul.f32 %v261_v63, %v261_v63  ;;  %v278_v15 = vmul.f32 %v262_v1, %v262_v1  ;;  %v368_v22 = vmul.f32 %v352_v23, %v352_v23 }
  0x95   : > { %v383_v42 = vadd.f32 %v367_v9, %v281_v10  ;;  %v285_v9 = vmul.f32 %v269_v40, %v269_v40 }
  0x98   : > { %v4128_v37 = vpop.permute.xlu1 %249 }
  0x99   : > { %v4130_v38 = vpop.permute.xlu0 %244 }
  0x9b   : > { %v395_v43 = vpop.permute.xlu2 %394 }
  0x9c   : > { %v431_v44 = vsub.f32 %v395_v43, %v4124_v35  ;;  %v432_v45 = vsub.f32 %v395_v43, %v4126_v36 }
  0x9e   : > { %v447_v46 = vmul.f32 %v431_v44, %v431_v44  ;;  %v448_v47 = vmul.f32 %v432_v45, %v432_v45  ;;  %v280_v45 = vmul.f32 %v264_v11, %v264_v11 }
  0xa0   : > { %v4134_v50 = vadd.f32 %v448_v47, %v378_v48  ;;  %v4136_v51 = vadd.f32 %v447_v46, %v377_v49  ;;  %v282_v46 = vmul.f32 %v266_v29, %v266_v29  ;;  %v355_v47 = vsub.f32 %v4118_v28, %v4114_v26 }
  0xa1   : > { %v317_v52 = vpop.permute.xlu1 %316 }
  0xa2   : > { %v313_v53 = vpop.permute.xlu0 %312  ;;  %vm480_vm0 = vcmp.lt.f32.partialorder %v4134_v50, 0.16  ;;  %vm479_vm1 = vcmp.lt.f32.partialorder %v4136_v51, 0.16  ;;  %v349_v18 = vsub.f32 %v317_v52, %v4114_v26  ;;  %v350_v19 = vsub.f32 %v317_v52, %v4116_v27 }
  0xa3   : > { %v4143_v54 = vsel %vm480_vm0, 1, %v4016_v0  ;;  %v4148_v55 = vsel %vm479_vm1, 1, %v4016_v0  ;;  %v347_v58 = vsub.f32 %v313_v53, %v4114_v26  ;;  %v348_v59 = vsub.f32 %v313_v53, %v4116_v27  ;;  %v407_v60 = vpop.permute.xlu2 %406 }
  0xa4   : > { %513 = vrot.lane.b32.xlu0 %v4143_v54, %s4019_s27  ;;  %511 = vrot.lane.b32.xlu2 %v4148_v55, %s4019_s27  ;;  %v437_v3 = vsub.f32 %v407_v60, %v4124_v35  ;;  %v365_v43 = vmul.f32 %v349_v18, %v349_v18  ;;  %v366_v14 = vmul.f32 %v350_v19, %v350_v19 }
  0xa5   : > { %v363_v7 = vmul.f32 %v347_v58, %v347_v58  ;;  %v364_v8 = vmul.f32 %v348_v59, %v348_v59  ;;  %v438_v48 = vsub.f32 %v407_v60, %v4126_v36  ;;  %v371_v10 = vmul.f32 %v355_v47, %v355_v47 }
  0xa6   : > { %v453_v30 = vmul.f32 %v437_v3, %v437_v3  ;;  %v381_v62 = vadd.f32 %v365_v43, %v279_v41  ;;  %v382_v63 = vadd.f32 %v366_v14, %v280_v45  ;;  %v271_v18 = vsub.f32 %v4130_v38, %v4110_v24 }
  0xa7   : > { %v380_v33 = vadd.f32 %v364_v8, %v278_v15  ;;  %v379_v34 = vadd.f32 %v363_v7, %v277_v13  ;;  %v284_v7 = vmul.f32 %v268_v5, %v268_v5  ;;  %v270_v8 = vsub.f32 %v4098_v12, %v4112_v25 }
  0xa8   : > { %v4196_v52 = vadd.f32 %v453_v30, %v383_v42  ;;  %v454_v28 = vmul.f32 %v438_v48, %v438_v48  ;;  %v384_v19 = vadd.f32 %v368_v22, %v282_v46  ;;  %v287_v47 = vmul.f32 %v271_v18, %v271_v18 }
  0xa9   : > { %v325_v56 = vpop.permute.xlu1 %324  ;;  %v286_v41 = vmul.f32 %v270_v8, %v270_v8  ;;  %v387_v48 = vadd.f32 %v371_v10, %v285_v9  ;;  %v272_v9 = vsub.f32 %v4130_v38, %v4112_v25 }
  0xaa   : > { %v4154_v57 = vpop.permute.xlu0 %332  ;;  %v353_v1 = vsub.f32 %v325_v56, %v4114_v26  ;;  %v354_v2 = vsub.f32 %v325_v56, %v4116_v27  ;;  %vm485_vm4 = vcmp.lt.f32.partialorder %v4196_v52, 0.16 }
  0xab   : > { %v357_v56 = vsub.f32 %v4154_v57, %v4114_v26  ;;  %v415_v5 = vpop.permute.xlu2 %414  ;;  %v4239_v29 = vsel %vm485_vm4, 1, %v4016_v0 }
  0xac   : > { %v370_v12 = vmul.f32 %v354_v2, %v354_v2 }
  0xad   : > { %v373_v42 = vmul.f32 %v357_v56, %v357_v56 }
  0xae   : > { %v386_v22 = vadd.f32 %v370_v12, %v284_v7 }
  0xb1   : > { %v4167_v4 = vpop.permute.xlu1 %336 }
  0xb3   : > { %v399_v17 = vpop.permute.xlu0 %398 }
  0xb4   : > { %v433_v20 = vsub.f32 %v399_v17, %v4124_v35  ;;  %v434_v21 = vsub.f32 %v399_v17, %v4126_v36  ;;  %v372_v17 = vmul.f32 %v356_v61, %v356_v61 }
  0xb6   : > { %v449_v31 = vmul.f32 %v433_v20, %v433_v20  ;;  %v450_v32 = vmul.f32 %v434_v21, %v434_v21  ;;  %v369_v20 = vmul.f32 %v353_v1, %v353_v1  ;;  %v274_v1 = vsub.f32 %v4128_v37, %v4112_v25 }
  0xb8   : > { %v4187_v44 = vadd.f32 %v450_v32, %v380_v33  ;;  %v4189_v16 = vadd.f32 %v449_v31, %v379_v34  ;;  %v4246_v31 = vadd.f32 %v454_v28, %v384_v19  ;;  %v441_v32 = vsub.f32 %v415_v5, %v4124_v35 }
  0xb9   : > { %v442_v33 = vsub.f32 %v415_v5, %v4126_v36  ;;  %v385_v46 = vadd.f32 %v369_v20, %v4183_v39  ;;  %v358_v39 = vsub.f32 %v4154_v57, %v4116_v27  ;;  %v290_v5 = vmul.f32 %v274_v1, %v274_v1 }
  0xba   : > { %v403_v49 = vpop.permute.xlu1 %402  ;;  %vm482_vm2 = vcmp.lt.f32.partialorder %v4187_v44, 0.16  ;;  %vm481_vm3 = vcmp.lt.f32.partialorder %v4189_v16, 0.16  ;;  %vm486_vm7 = vcmp.lt.f32.partialorder %v4246_v31, 0.16  ;;  %v288_v19 = vmul.f32 %v272_v9, %v272_v9 }
  0xbb   : > { %v435_v53 = vsub.f32 %v403_v49, %v4124_v35  ;;  %v436_v58 = vsub.f32 %v403_v49, %v4126_v36  ;;  %v4203_v59 = vsel %vm482_vm2, 1, %v4016_v0  ;;  %v4208_v60 = vsel %vm481_vm3, 1, %v4016_v0  ;;  %v419_v21 = vpop.permute.xlu0 %418 }
  0xbc   : > { %517 = vrot.lane.b32.xlu2 %v4203_v59, %s4019_s27  ;;  %515 = vrot.lane.b32.xlu1 %v4208_v60, %s4019_s27  ;;  %v443_v43 = vsub.f32 %v419_v21, %v4124_v35  ;;  %v388_v49 = vadd.f32 %v372_v17, %v286_v41  ;;  %v444_v28 = vsub.f32 %v419_v21, %v4126_v36 }
  0xbd   : > { %v451_v3 = vmul.f32 %v435_v53, %v435_v53  ;;  %v452_v6 = vmul.f32 %v436_v58, %v436_v58  ;;  %v457_v53 = vmul.f32 %v441_v32, %v441_v32  ;;  %v458_v58 = vmul.f32 %v442_v33, %v442_v33 }
  0xbe   : > { %v459_v2 = vmul.f32 %v443_v43, %v443_v43  ;;  %v374_v38 = vmul.f32 %v358_v39, %v358_v39  ;;  %v460_v20 = vmul.f32 %v444_v28, %v444_v28 }
  0xbf   : > { %v4220_v13 = vadd.f32 %v451_v3, %v381_v62  ;;  %v4223_v15 = vadd.f32 %v452_v6, %v382_v63  ;;  %v273_v63 = vsub.f32 %v4128_v37, %v4110_v24  ;;  %v4274_v3 = vsel %vm486_vm7, 1, %v4016_v0 }
  0xc0   : > { %v389_v6 = vadd.f32 %v373_v42, %v287_v47  ;;  %v359_v24 = vsub.f32 %v4167_v4, %v4114_v26  ;;  %v360_v37 = vsub.f32 %v4167_v4, %v4116_v27  ;;  %v4297_v26 = vadd.f32 %v457_v53, %v387_v48 }
  0xc1   : > { %vm483_vm5 = vcmp.lt.f32.partialorder %v4220_v13, 0.16  ;;  %vm484_vm6 = vcmp.lt.f32.partialorder %v4223_v15, 0.16  ;;  %v4299_v27 = vadd.f32 %v458_v58, %v388_v49  ;;  %v289_v17 = vmul.f32 %v273_v63, %v273_v63 }
  0xc2   : > { %v411_v11 = vpop.permute.xlu1 %410  ;;  %v4234_v23 = vsel %vm483_vm5, 1, %v4016_v0  ;;  %v4244_v30 = vsel %vm484_vm6, 1, %v4016_v0  ;;  %v4307_v25 = vadd.f32 %v459_v2, %v389_v6  ;;  %v375_v18 = vmul.f32 %v359_v24, %v359_v24 }
  0xc3   : > { %v439_v34 = vsub.f32 %v411_v11, %v4124_v35  ;;  %v440_v40 = vsub.f32 %v411_v11, %v4126_v36  ;;  %519 = vrot.lane.b32.xlu0 %v4234_v23, %s4019_s27  ;;  %v376_v56 = vmul.f32 %v360_v37, %v360_v37  ;;  %vm489_vm10 = vcmp.lt.f32.partialorder %v4297_v26, 0.16 }
  0xc4   : > { %523 = vrot.lane.b32.xlu2 %v4239_v29, %s4019_s27  ;;  %521 = vrot.lane.b32.xlu1 %v4244_v30, %s4019_s27  ;;  %vm490_vm11 = vcmp.lt.f32.partialorder %v4299_v27, 0.16  ;;  %vm491_vm12 = vcmp.lt.f32.partialorder %v4307_v25, 0.16  ;;  %v4315_v21 = vsel %vm489_vm10, 1, %v4016_v0  ;;  %v391_v11 = vadd.f32 %v375_v18, %v289_v17 }
  0xc5   : > { %v455_v14 = vmul.f32 %v439_v34, %v439_v34  ;;  %v456_v45 = vmul.f32 %v440_v40, %v440_v40  ;;  %v392_v32 = vadd.f32 %v376_v56, %v290_v5  ;;  %v4322_v33 = vsel %vm490_vm11, 1, %v4016_v0 }
  0xc6   : > { %v4327_v34 = vsel %vm491_vm12, 1, %v4016_v0 }
  0xc7   : > { %v4261_v61 = vadd.f32 %v456_v45, %v386_v22  ;;  %v4263_v62 = vadd.f32 %v455_v14, %v385_v46 }
  0xc9   : > { %vm488_vm8 = vcmp.lt.f32.partialorder %v4261_v61, 0.16  ;;  %vm487_vm9 = vcmp.lt.f32.partialorder %v4263_v62, 0.16 }
  0xca   : > { %v423_v7 = vpop.permute.xlu1 %422  ;;  %v4285_v57 = vsel %vm488_vm8, 1, %v4016_v0  ;;  %v4290_v8 = vsel %vm487_vm9, 1, %v4016_v0 }
  0xcb   : > { %525 = vrot.lane.b32.xlu0 %v4274_v3, %s4019_s27  ;;  %v445_v4 = vsub.f32 %v423_v7, %v4124_v35  ;;  %v446_v10 = vsub.f32 %v423_v7, %v4126_v36  ;;  %v390_v36 = vadd.f32 %v374_v38, %v288_v19 }
  0xcc   : > { %529 = vrot.lane.b32.xlu2 %v4285_v57, %s4019_s27  ;;  %527 = vrot.lane.b32.xlu1 %v4290_v8, %s4019_s27 }
  0xcd   : > { %v461_v35 = vmul.f32 %v445_v4, %v445_v4  ;;  %v462_v12 = vmul.f32 %v446_v10, %v446_v10  ;;  %v4329_v40 = vadd.f32 %v460_v20, %v390_v36 }
  0xcf   : > { %v4335_v41 = vadd.f32 %v461_v35, %v391_v11  ;;  %v4337_v42 = vadd.f32 %v462_v12, %v392_v32  ;;  %vm6920_vm13 = vcmp.lt.f32.partialorder %v4329_v40, 0.16 }
  0xd0   : > { %v4345_v43 = vsel %vm6920_vm13, 1, %v4016_v0  ;;  %vm6922_vm13 = vcmask 7168  }
  0xd1   : > { %vm6927_vm14 = vcmp.lt.f32.partialorder %v4335_v41, 0.16  ;;  %vm6921_vm15 = vcmp.lt.f32.partialorder %v4337_v42, 0.16 }
  0xd2   : > { %v4350_v14 = vsel %vm6927_vm14, 1, %v4016_v0  ;;  %v4357_v45 = vsel %vm6921_vm15, 1, %v4016_v0  ;;  %vm6923_vm15 = vcmask 15360  }
  0xd3   : > { %531 = vrot.lane.b32.xlu0 %v4315_v21, %s4019_s27 }
  0xd4   : > { %533 = vrot.lane.b32.xlu1 %v4322_v33, %s4019_s27  ;;  %535 = vrot.lane.b32.xlu2 %v4327_v34, %s4019_s27 }
  0xdb   : > { %537 = vrot.lane.b32.xlu0 %v4345_v43, %s4019_s27 }
  0xdc   : > { %539 = vrot.lane.b32.xlu1 %v4350_v14, %s4019_s27  ;;  %541 = vrot.lane.b32.xlu2 %v4357_v45, %s4019_s27 }
  0xfe   : > { %v512_v22 = vpop.permute.xlu2 %511 }
  0xff   : > { %v552_v46 = vsel %vm6922_vm13, 0, %v512_v22 }
 0x100   : > { %v4365_v47 = vadd.s32 %v552_v46, %v4148_v55 }
 0x102   : > { %576 = vrot.lane.b32.xlu0 %v4365_v47, %s4020_s28 }
 0x116   : > { %v514_v48 = vpop.permute.xlu0 %513  ;;  %v518_v53 = vpop.permute.xlu2 %517 }
 0x117   : > { %v544_v0 = vsel %vm6922_vm13, %v512_v22, %v514_v48 }
 0x118   : > { %v4371_v49 = vadd.s32 %v544_v0, %v4143_v54 }
 0x11a   : > { %578 = vrot.lane.b32.xlu1 %v4371_v49, %s4020_s28 }
 0x11e   : > { %v524_v58 = vpop.permute.xlu2 %523 }
 0x11f   : > { %v555_v54 = vsel %vm6922_vm13, 0, %v524_v58 }
 0x120   : > { %v4391_v28 = vadd.s32 %v555_v54, %v4239_v29 }
 0x12e   : > { %v516_v63 = vpop.permute.xlu1 %515 }
 0x12f   : > { %v545_v1 = vsel %vm6922_vm13, %v516_v63, %v518_v53  ;;  %v553_v55 = vsel %vm6922_vm13, 0, %v516_v63 }
 0x130   : > { %v4378_v39 = vadd.s32 %v545_v1, %v4203_v59  ;;  %v562_v2 = vadd.s32 %v553_v55, %v4208_v60  ;;  %v530_v59 = vpop.permute.xlu2 %529 }
 0x132   : > { %582 = vrot.lane.b32.xlu0 %v4378_v39, %s4020_s28  ;;  %580 = vrot.lane.b32.xlu2 %v562_v2, %s4020_s28 }
 0x135   : > { %v520_v6 = vpop.permute.xlu0 %519 }
 0x136   : > { %v522_v24 = vpop.permute.xlu1 %521  ;;  %v554_v37 = vsel %vm6922_vm13, 0, %v520_v6 }
 0x137   : > { %v546_v7 = vsel %vm6922_vm13, %v520_v6, %v522_v24  ;;  %v4388_v9 = vadd.s32 %v554_v37, %v4234_v23 }
 0x138   : > { %v4394_v60 = vadd.s32 %v546_v7, %v4244_v30  ;;  %v536_v56 = vpop.permute.xlu2 %535 }
 0x139   : > { %584 = vrot.lane.b32.xlu1 %v4388_v9, %s4020_s28  ;;  %v558_v5 = vsel %vm6922_vm13, 0, %v536_v56 }
 0x13a   : > { %588 = vrot.lane.b32.xlu0 %v4391_v28, %s4020_s28  ;;  %586 = vrot.lane.b32.xlu2 %v4394_v60, %s4020_s28  ;;  %v4427_v35 = vadd.s32 %v558_v5, %v4327_v34 }
 0x13d   : > { %v526_v4 = vpop.permute.xlu0 %525 }
 0x13e   : > { %v528_v10 = vpop.permute.xlu1 %527  ;;  %v547_v23 = vsel %vm6922_vm13, %v524_v58, %v526_v4 }
 0x13f   : > { %v548_v38 = vsel %vm6922_vm13, %v528_v10, %v530_v59  ;;  %v556_v29 = vsel %vm6922_vm13, 0, %v528_v10  ;;  %v4406_v30 = vadd.s32 %v547_v23, %v4274_v3 }
 0x140   : > { %v4409_v17 = vadd.s32 %v548_v38, %v4285_v57  ;;  %v4412_v18 = vadd.s32 %v556_v29, %v4290_v8  ;;  %v542_v11 = vpop.permute.xlu2 %541 }
 0x141   : > { %590 = vrot.lane.b32.xlu1 %v4406_v30, %s4020_s28 }
 0x142   : > { %594 = vrot.lane.b32.xlu0 %v4409_v17, %s4020_s28  ;;  %592 = vrot.lane.b32.xlu2 %v4412_v18, %s4020_s28 }
 0x145   : > { %v532_v3 = vpop.permute.xlu0 %531 }
 0x146   : > { %v534_v19 = vpop.permute.xlu1 %533  ;;  %v557_v57 = vsel %vm6922_vm13, 0, %v532_v3 }
 0x147   : > { %v549_v20 = vsel %vm6922_vm13, %v532_v3, %v534_v19  ;;  %v4424_v8 = vadd.s32 %v557_v57, %v4315_v21 }
 0x148   : > { %v4430_v12 = vadd.s32 %v549_v20, %v4322_v33 }
 0x149   : > { %596 = vrot.lane.b32.xlu1 %v4424_v8, %s4020_s28 }
 0x14a   : > { %600 = vrot.lane.b32.xlu0 %v4427_v35, %s4020_s28  ;;  %598 = vrot.lane.b32.xlu2 %v4430_v12, %s4020_s28 }
 0x14d   : > { %v538_v36 = vpop.permute.xlu0 %537 }
 0x14e   : > { %v540_v32 = vpop.permute.xlu1 %539  ;;  %v550_v21 = vsel %vm6922_vm13, %v536_v56, %v538_v36 }
 0x14f   : > { %v551_v34 = vsel %vm6922_vm13, %v540_v32, %v542_v11  ;;  %v559_v22 = vsel %vm6922_vm13, 0, %v540_v32  ;;  %v4442_v33 = vadd.s32 %v550_v21, %v4345_v43  ;;  %vm6924_vm13 = vcmask 31744  }
 0x150   : > { %v4445_v46 = vadd.s32 %v551_v34, %v4357_v45  ;;  %v4448_v48 = vadd.s32 %v559_v22, %v4350_v14 }
 0x151   : > { %602 = vrot.lane.b32.xlu1 %v4442_v33, %s4020_s28 }
 0x152   : > { %606 = vrot.lane.b32.xlu0 %v4445_v46, %s4020_s28  ;;  %604 = vrot.lane.b32.xlu2 %v4448_v48, %s4020_s28 }
 0x174   : > { %v577_v0 = vpop.permute.xlu0 %576 }
 0x175   : > { %v617_v43 = vsel %vm6923_vm15, 0, %v577_v0 }
 0x176   : > { %v4458_v53 = vadd.s32 %v617_v43, %v4365_v47 }
 0x178   : > { %641 = vrot.lane.b32.xlu1 %v4458_v53, %s4021_s29 }
 0x18c   : > { %v581_v14 = vpop.permute.xlu2 %580  ;;  %v579_v45 = vpop.permute.xlu1 %578 }
 0x18d   : > { %v618_v58 = vsel %vm6923_vm15, 0, %v581_v14  ;;  %v609_v63 = vsel %vm6923_vm15, %v577_v0, %v579_v45 }
 0x18e   : > { %v626_v1 = vadd.s32 %v609_v63, %v4371_v49  ;;  %v4465_v55 = vadd.s32 %v618_v58, %v562_v2 }
 0x190   : > { %645 = vrot.lane.b32.xlu0 %v4465_v55, %s4021_s29  ;;  %643 = vrot.lane.b32.xlu2 %v626_v1, %s4021_s29 }
 0x194   : > { %v587_v47 = vpop.permute.xlu2 %586 }
 0x19c   : > { %v593_v37 = vpop.permute.xlu2 %592 }
 0x19d   : > { %v621_v38 = vsel %vm6923_vm15, 0, %v593_v37 }
 0x19e   : > { %v4496_v3 = vadd.s32 %v621_v38, %v4412_v18 }
 0x1a4   : > { %v583_v54 = vpop.permute.xlu0 %582  ;;  %v599_v5 = vpop.permute.xlu2 %598 }
 0x1a5   : > { %v610_v6 = vsel %vm6923_vm15, %v581_v14, %v583_v54 }
 0x1a6   : > { %v4472_v24 = vadd.s32 %v610_v6, %v4378_v39 }
 0x1a8   : > { %647 = vrot.lane.b32.xlu1 %v4472_v24, %s4021_s29 }
 0x1ab   : > { %v585_v7 = vpop.permute.xlu1 %584 }
 0x1ac   : > { %v611_v49 = vsel %vm6923_vm15, %v585_v7, %v587_v47  ;;  %v619_v2 = vsel %vm6923_vm15, 0, %v585_v7  ;;  %v589_v59 = vpop.permute.xlu0 %588  ;;  %v605_v21 = vpop.permute.xlu2 %604 }
 0x1ad   : > { %v620_v4 = vsel %vm6923_vm15, 0, %v589_v59  ;;  %v4480_v10 = vadd.s32 %v611_v49, %v4394_v60  ;;  %v629_v23 = vadd.s32 %v619_v2, %v4388_v9  ;;  %v624_v34 = vsel %vm6923_vm15, 0, %v605_v21 }
 0x1ae   : > { %v4484_v39 = vadd.s32 %v620_v4, %v4391_v28  ;;  %v4526_v43 = vadd.s32 %v624_v34, %v4448_v48 }
 0x1af   : > { %651 = vrot.lane.b32.xlu0 %v4480_v10, %s4021_s29  ;;  %649 = vrot.lane.b32.xlu2 %v629_v23, %s4021_s29 }
 0x1b0   : > { %653 = vrot.lane.b32.xlu1 %v4484_v39, %s4021_s29 }
 0x1b3   : > { %v591_v29 = vpop.permute.xlu1 %590 }
 0x1b4   : > { %v612_v56 = vsel %vm6923_vm15, %v589_v59, %v591_v29  ;;  %v595_v60 = vpop.permute.xlu0 %594 }
 0x1b5   : > { %v632_v9 = vadd.s32 %v612_v56, %v4406_v30  ;;  %v613_v28 = vsel %vm6923_vm15, %v593_v37, %v595_v60 }
 0x1b6   : > { %v4499_v19 = vadd.s32 %v613_v28, %v4409_v17 }
 0x1b7   : > { %657 = vrot.lane.b32.xlu0 %v4496_v3, %s4021_s29  ;;  %655 = vrot.lane.b32.xlu2 %v632_v9, %s4021_s29 }
 0x1b8   : > { %659 = vrot.lane.b32.xlu1 %v4499_v19, %s4021_s29 }
 0x1bb   : > { %v597_v57 = vpop.permute.xlu1 %596 }
 0x1bc   : > { %v614_v20 = vsel %vm6923_vm15, %v597_v57, %v599_v5  ;;  %v622_v30 = vsel %vm6923_vm15, 0, %v597_v57  ;;  %v601_v36 = vpop.permute.xlu0 %600 }
 0x1bd   : > { %v623_v18 = vsel %vm6923_vm15, 0, %v601_v36  ;;  %v4510_v11 = vadd.s32 %v614_v20, %v4430_v12  ;;  %v635_v17 = vadd.s32 %v622_v30, %v4424_v8 }
 0x1be   : > { %v4514_v32 = vadd.s32 %v623_v18, %v4427_v35 }
 0x1bf   : > { %663 = vrot.lane.b32.xlu0 %v4510_v11, %s4021_s29  ;;  %661 = vrot.lane.b32.xlu2 %v635_v17, %s4021_s29 }
 0x1c0   : > { %665 = vrot.lane.b32.xlu1 %v4514_v32, %s4021_s29 }
 0x1c3   : > { %v603_v22 = vpop.permute.xlu1 %602 }
 0x1c4   : > { %v615_v12 = vsel %vm6923_vm15, %v601_v36, %v603_v22  ;;  %v607_v0 = vpop.permute.xlu0 %606 }
 0x1c5   : > { %v638_v8 = vadd.s32 %v615_v12, %v4442_v33  ;;  %v616_v35 = vsel %vm6923_vm15, %v605_v21, %v607_v0  ;;  %vm6925_vm15 = vcmask 64512  }
 0x1c6   : > { %v4529_v14 = vadd.s32 %v616_v35, %v4445_v46 }
 0x1c7   : > { %669 = vrot.lane.b32.xlu0 %v4526_v43, %s4021_s29  ;;  %667 = vrot.lane.b32.xlu2 %v638_v8, %s4021_s29 }
 0x1c8   : > { %671 = vrot.lane.b32.xlu1 %v4529_v14, %s4021_s29 }
 0x1ea   : > { %v644_v45 = vpop.permute.xlu2 %643  ;;  %v642_v58 = vpop.permute.xlu1 %641 }
 0x1eb   : > { %v682_v33 = vsel %vm6924_vm13, 0, %v642_v58  ;;  %v674_v63 = vsel %vm6924_vm13, %v642_v58, %v644_v45 }
 0x1ec   : > { %v4538_v48 = vadd.s32 %v674_v63, %v626_v1  ;;  %v4541_v46 = vadd.s32 %v682_v33, %v4458_v53 }
 0x1ee   : > { %708 = vrot.lane.b32.xlu0 %v4538_v48, %s4022_s30  ;;  %706 = vrot.lane.b32.xlu2 %v4541_v46, %s4022_s30 }
 0x202   : > { %v646_v47 = vpop.permute.xlu0 %645 }
 0x203   : > { %v683_v54 = vsel %vm6924_vm13, 0, %v646_v47 }
 0x204   : > { %v4549_v6 = vadd.s32 %v683_v54, %v4465_v55 }
 0x206   : > { %710 = vrot.lane.b32.xlu1 %v4549_v6, %s4022_s30 }
 0x209   : > { %v650_v1 = vpop.permute.xlu2 %649 }
 0x20a   : > { %v684_v53 = vsel %vm6924_vm13, 0, %v650_v1 }
 0x20b   : > { %v4554_v37 = vadd.s32 %v684_v53, %v629_v23 }
 0x20d   : > { %714 = vrot.lane.b32.xlu0 %v4554_v37, %s4022_s30 }
 0x211   : > { %v656_v2 = vpop.permute.xlu2 %655 }
 0x21a   : > { %v648_v7 = vpop.permute.xlu1 %647 }
 0x21b   : > { %v675_v49 = vsel %vm6924_vm13, %v646_v47, %v648_v7 }
 0x21c   : > { %v693_v59 = vadd.s32 %v675_v49, %v4472_v24  ;;  %v662_v24 = vpop.permute.xlu2 %661 }
 0x21d   : > { %v687_v28 = vsel %vm6924_vm13, 0, %v662_v24 }
 0x21e   : > { %712 = vrot.lane.b32.xlu2 %v693_v59, %s4022_s30 }
 0x221   : > { %v652_v55 = vpop.permute.xlu0 %651 }
 0x222   : > { %v654_v4 = vpop.permute.xlu1 %653  ;;  %v676_v38 = vsel %vm6924_vm13, %v650_v1, %v652_v55 }
 0x223   : > { %v677_v29 = vsel %vm6924_vm13, %v654_v4, %v656_v2  ;;  %v685_v23 = vsel %vm6924_vm13, 0, %v654_v4  ;;  %v4565_v56 = vadd.s32 %v676_v38, %v4480_v10 }
 0x224   : > { %v4567_v60 = vadd.s32 %v677_v29, %v632_v9  ;;  %v696_v5 = vadd.s32 %v685_v23, %v4484_v39  ;;  %v4581_v39 = vadd.s32 %v687_v28, %v635_v17  ;;  %v668_v21 = vpop.permute.xlu2 %667 }
 0x225   : > { %716 = vrot.lane.b32.xlu1 %v4565_v56, %s4022_s30 }
 0x226   : > { %720 = vrot.lane.b32.xlu0 %v4567_v60, %s4022_s30  ;;  %718 = vrot.lane.b32.xlu2 %v696_v5, %s4022_s30 }
 0x229   : > { %v658_v57 = vpop.permute.xlu0 %657 }
 0x22a   : > { %v660_v20 = vpop.permute.xlu1 %659  ;;  %v686_v10 = vsel %vm6924_vm13, 0, %v658_v57 }
 0x22b   : > { %v678_v9 = vsel %vm6924_vm13, %v658_v57, %v660_v20  ;;  %v4579_v30 = vadd.s32 %v686_v10, %v4496_v3 }
 0x22c   : > { %v4584_v36 = vadd.s32 %v678_v9, %v4499_v19 }
 0x22d   : > { %722 = vrot.lane.b32.xlu1 %v4579_v30, %s4022_s30 }
 0x22e   : > { %726 = vrot.lane.b32.xlu0 %v4581_v39, %s4022_s30  ;;  %724 = vrot.lane.b32.xlu2 %v4584_v36, %s4022_s30 }
 0x231   : > { %v664_v18 = vpop.permute.xlu0 %663 }
 0x232   : > { %v666_v34 = vpop.permute.xlu1 %665  ;;  %v679_v3 = vsel %vm6924_vm13, %v662_v24, %v664_v18 }
 0x233   : > { %v680_v17 = vsel %vm6924_vm13, %v666_v34, %v668_v21  ;;  %v688_v22 = vsel %vm6924_vm13, 0, %v666_v34  ;;  %v4596_v19 = vadd.s32 %v679_v3, %v4510_v11 }
 0x234   : > { %v4598_v12 = vadd.s32 %v680_v17, %v638_v8  ;;  %v4601_v0 = vadd.s32 %v688_v22, %v4514_v32 }
 0x235   : > { %728 = vrot.lane.b32.xlu1 %v4596_v19, %s4022_s30 }
 0x236   : > { %732 = vrot.lane.b32.xlu0 %v4598_v12, %s4022_s30  ;;  %730 = vrot.lane.b32.xlu2 %v4601_v0, %s4022_s30 }
 0x239   : > { %v670_v35 = vpop.permute.xlu0 %669 }
 0x23a   : > { %v672_v45 = vpop.permute.xlu1 %671  ;;  %v689_v58 = vsel %vm6924_vm13, 0, %v670_v35 }
 0x23b   : > { %v681_v11 = vsel %vm6924_vm13, %v670_v35, %v672_v45  ;;  %v4612_v8 = vadd.s32 %v689_v58, %v4526_v43  ;;  %vm6926_vm13 = vcmask 130048  }
 0x23c   : > { %v4615_v32 = vadd.s32 %v681_v11, %v4529_v14 }
 0x23d   : > { %734 = vrot.lane.b32.xlu1 %v4612_v8, %s4022_s30 }
 0x23e   : > { %736 = vrot.lane.b32.xlu2 %v4615_v32, %s4022_s30 }
 0x248   : > { %v707_v33 = vpop.permute.xlu2 %706 }
 0x249   : > { %v747_v63 = vsel %vm6925_vm15, 0, %v707_v33 }
 0x24a   : > { %v4623_v47 = vadd.s32 %v747_v63, %v4541_v46 }
 0x24c   : > { %771 = vrot.lane.b32.xlu0 %v4623_v47, %s4023_s3 }
 0x260   : > { %v709_v43 = vpop.permute.xlu0 %708 }
 0x261   : > { %v739_v14 = vsel %vm6925_vm15, %v707_v33, %v709_v43 }
 0x262   : > { %v4629_v54 = vadd.s32 %v739_v14, %v4538_v48 }
 0x264   : > { %773 = vrot.lane.b32.xlu1 %v4629_v54, %s4023_s3 }
 0x278   : > { %v711_v1 = vpop.permute.xlu1 %710  ;;  %v713_v53 = vpop.permute.xlu2 %712 }
 0x279   : > { %v748_v7 = vsel %vm6925_vm15, 0, %v711_v1  ;;  %v740_v46 = vsel %vm6925_vm15, %v711_v1, %v713_v53 }
 0x27a   : > { %v4635_v49 = vadd.s32 %v740_v46, %v693_v59  ;;  %v757_v2 = vadd.s32 %v748_v7, %v4549_v6 }
 0x27c   : > { %777 = vrot.lane.b32.xlu0 %v4635_v49, %s4023_s3  ;;  %775 = vrot.lane.b32.xlu2 %v757_v2, %s4023_s3 }
 0x27f   : > { %v715_v48 = vpop.permute.xlu0 %714 }
 0x280   : > { %v719_v55 = vpop.permute.xlu2 %718  ;;  %v749_v4 = vsel %vm6925_vm15, 0, %v715_v48 }
 0x281   : > { %v750_v38 = vsel %vm6925_vm15, 0, %v719_v55  ;;  %v4644_v29 = vadd.s32 %v749_v4, %v4554_v37 }
 0x282   : > { %v4646_v23 = vadd.s32 %v750_v38, %v696_v5 }
 0x283   : > { %779 = vrot.lane.b32.xlu1 %v4644_v29, %s4023_s3 }
 0x284   : > { %783 = vrot.lane.b32.xlu0 %v4646_v23, %s4023_s3 }
 0x288   : > { %v725_v28 = vpop.permute.xlu2 %724 }
 0x290   : > { %v731_v3 = vpop.permute.xlu2 %730 }
 0x291   : > { %v753_v17 = vsel %vm6925_vm15, 0, %v731_v3 }
 0x292   : > { %v4681_v45 = vadd.s32 %v753_v17, %v4601_v0 }
 0x297   : > { %v717_v6 = vpop.permute.xlu1 %716 }
 0x298   : > { %v741_v59 = vsel %vm6925_vm15, %v715_v48, %v717_v6  ;;  %v721_v24 = vpop.permute.xlu0 %720  ;;  %v737_v11 = vpop.permute.xlu2 %736 }
 0x299   : > { %v760_v57 = vadd.s32 %v741_v59, %v4565_v56  ;;  %v742_v20 = vsel %vm6925_vm15, %v719_v55, %v721_v24 }
 0x29a   : > { %v4656_v37 = vadd.s32 %v742_v20, %v4567_v60 }
 0x29b   : > { %781 = vrot.lane.b32.xlu2 %v760_v57, %s4023_s3 }
 0x29c   : > { %785 = vrot.lane.b32.xlu1 %v4656_v37, %s4023_s3 }
 0x29f   : > { %v723_v5 = vpop.permute.xlu1 %722 }
 0x2a0   : > { %v743_v10 = vsel %vm6925_vm15, %v723_v5, %v725_v28  ;;  %v751_v9 = vsel %vm6925_vm15, 0, %v723_v5  ;;  %v727_v18 = vpop.permute.xlu0 %726 }
 0x2a1   : > { %v752_v21 = vsel %vm6925_vm15, 0, %v727_v18  ;;  %v4665_v56 = vadd.s32 %v743_v10, %v4584_v36  ;;  %v763_v34 = vadd.s32 %v751_v9, %v4579_v30 }
 0x2a2   : > { %v4669_v60 = vadd.s32 %v752_v21, %v4581_v39 }
 0x2a3   : > { %789 = vrot.lane.b32.xlu0 %v4665_v56, %s4023_s3  ;;  %787 = vrot.lane.b32.xlu2 %v763_v34, %s4023_s3 }
 0x2a4   : > { %791 = vrot.lane.b32.xlu1 %v4669_v60, %s4023_s3 }
 0x2a7   : > { %v729_v22 = vpop.permute.xlu1 %728 }
 0x2a8   : > { %v744_v36 = vsel %vm6925_vm15, %v727_v18, %v729_v22  ;;  %v733_v35 = vpop.permute.xlu0 %732 }
 0x2a9   : > { %v766_v30 = vadd.s32 %v744_v36, %v4596_v19  ;;  %v745_v39 = vsel %vm6925_vm15, %v731_v3, %v733_v35 }
 0x2aa   : > { %v4684_v58 = vadd.s32 %v745_v39, %v4598_v12 }
 0x2ab   : > { %795 = vrot.lane.b32.xlu0 %v4681_v45, %s4023_s3  ;;  %793 = vrot.lane.b32.xlu2 %v766_v30, %s4023_s3 }
 0x2ac   : > { %797 = vrot.lane.b32.xlu1 %v4684_v58, %s4023_s3 }
 0x2af   : > { %v735_v33 = vpop.permute.xlu1 %734 }
 0x2b0   : > { %v746_v19 = vsel %vm6925_vm15, %v735_v33, %v737_v11  ;;  %v754_v63 = vsel %vm6925_vm15, 0, %v735_v33  ;;  %vm868_vm15 = vcmask 261120  }
 0x2b1   : > { %v4694_v0 = vadd.s32 %v746_v19, %v4615_v32  ;;  %v769_v12 = vadd.s32 %v754_v63, %v4612_v8 }
 0x2b3   : > { %801 = vrot.lane.b32.xlu0 %v4694_v0, %s4023_s3  ;;  %799 = vrot.lane.b32.xlu2 %v769_v12, %s4023_s3 }
 0x2be   : > { %v772_v43 = vpop.permute.xlu0 %771 }
 0x2bf   : > { %v812_v14 = vsel %vm6926_vm13, 0, %v772_v43 }
 0x2c0   : > { %v4702_v1 = vadd.s32 %v812_v14, %v4623_v47 }
 0x2c2   : > { %836 = vrot.lane.b32.xlu1 %v4702_v1, %s4024_s4 }
 0x2d6   : > { %v776_v32 = vpop.permute.xlu2 %775  ;;  %v774_v8 = vpop.permute.xlu1 %773 }
 0x2d7   : > { %v813_v53 = vsel %vm6926_vm13, 0, %v776_v32  ;;  %v804_v7 = vsel %vm6926_vm13, %v772_v43, %v774_v8 }
 0x2d8   : > { %v4708_v46 = vadd.s32 %v813_v53, %v757_v2  ;;  %v821_v48 = vadd.s32 %v804_v7, %v4629_v54 }
 0x2da   : > { %840 = vrot.lane.b32.xlu0 %v4708_v46, %s4024_s4  ;;  %838 = vrot.lane.b32.xlu2 %v821_v48, %s4024_s4 }
 0x2ee   : > { %v778_v47 = vpop.permute.xlu0 %777 }
 0x2ef   : > { %v805_v55 = vsel %vm6926_vm13, %v776_v32, %v778_v47 }
 0x2f0   : > { %v4716_v4 = vadd.s32 %v805_v55, %v4635_v49 }
 0x2f2   : > { %842 = vrot.lane.b32.xlu1 %v4716_v4, %s4024_s4 }
 0x2f5   : > { %v780_v38 = vpop.permute.xlu1 %779  ;;  %v782_v6 = vpop.permute.xlu2 %781 }
 0x2f6   : > { %v814_v2 = vsel %vm6926_vm13, 0, %v780_v38  ;;  %v806_v54 = vsel %vm6926_vm13, %v780_v38, %v782_v6  ;;  %v784_v59 = vpop.permute.xlu0 %783 }
 0x2f7   : > { %v4722_v24 = vadd.s32 %v806_v54, %v760_v57  ;;  %v815_v28 = vsel %vm6926_vm13, 0, %v784_v59  ;;  %v824_v20 = vadd.s32 %v814_v2, %v4644_v29 }
 0x2f8   : > { %v4727_v5 = vadd.s32 %v815_v28, %v4646_v23 }
 0x2f9   : > { %846 = vrot.lane.b32.xlu0 %v4722_v24, %s4024_s4  ;;  %844 = vrot.lane.b32.xlu2 %v824_v20, %s4024_s4 }
 0x2fa   : > { %848 = vrot.lane.b32.xlu1 %v4727_v5, %s4024_s4 }
 0x2fd   : > { %v788_v49 = vpop.permute.xlu2 %787 }
 0x2fe   : > { %v816_v10 = vsel %vm6926_vm13, 0, %v788_v49 }
 0x2ff   : > { %v4735_v57 = vadd.s32 %v816_v10, %v763_v34 }
 0x301   : > { %852 = vrot.lane.b32.xlu0 %v4735_v57, %s4024_s4 }
 0x305   : > { %v794_v9 = vpop.permute.xlu2 %793 }
 0x30e   : > { %v786_v29 = vpop.permute.xlu1 %785 }
 0x30f   : > { %v807_v23 = vsel %vm6926_vm13, %v784_v59, %v786_v29 }
 0x310   : > { %v827_v18 = vadd.s32 %v807_v23, %v4656_v37  ;;  %v800_v37 = vpop.permute.xlu2 %799 }
 0x311   : > { %v819_v11 = vsel %vm6926_vm13, 0, %v800_v37 }
 0x312   : > { %850 = vrot.lane.b32.xlu2 %v827_v18, %s4024_s4 }
 0x315   : > { %v790_v21 = vpop.permute.xlu0 %789 }
 0x316   : > { %v792_v3 = vpop.permute.xlu1 %791  ;;  %v808_v17 = vsel %vm6926_vm13, %v788_v49, %v790_v21 }
 0x317   : > { %v809_v22 = vsel %vm6926_vm13, %v792_v3, %v794_v9  ;;  %v817_v34 = vsel %vm6926_vm13, 0, %v792_v3  ;;  %v4746_v36 = vadd.s32 %v808_v17, %v4665_v56 }
 0x318   : > { %v4748_v35 = vadd.s32 %v809_v22, %v766_v30  ;;  %v830_v39 = vadd.s32 %v817_v34, %v4669_v60  ;;  %v4762_v60 = vadd.s32 %v819_v11, %v769_v12 }
 0x319   : > { %854 = vrot.lane.b32.xlu1 %v4746_v36, %s4024_s4 }
 0x31a   : > { %858 = vrot.lane.b32.xlu0 %v4748_v35, %s4024_s4  ;;  %856 = vrot.lane.b32.xlu2 %v830_v39, %s4024_s4 }
 0x31d   : > { %v796_v33 = vpop.permute.xlu0 %795 }
 0x31e   : > { %v798_v19 = vpop.permute.xlu1 %797  ;;  %v818_v56 = vsel %vm6926_vm13, 0, %v796_v33 }
 0x31f   : > { %v810_v30 = vsel %vm6926_vm13, %v796_v33, %v798_v19  ;;  %v4760_v63 = vadd.s32 %v818_v56, %v4681_v45 }
 0x320   : > { %v4765_v43 = vadd.s32 %v810_v30, %v4684_v58 }
 0x321   : > { %860 = vrot.lane.b32.xlu1 %v4760_v63, %s4024_s4 }
 0x322   : > { %864 = vrot.lane.b32.xlu0 %v4762_v60, %s4024_s4  ;;  %862 = vrot.lane.b32.xlu2 %v4765_v43, %s4024_s4 }
 0x325   : > { %v802_v14 = vpop.permute.xlu0 %801 }
 0x326   : > { %v811_v32 = vsel %vm6926_vm13, %v800_v37, %v802_v14  ;;  %vm933_vm13 = vcmask 523264  }
 0x327   : > { %v4775_v45 = vadd.s32 %v811_v32, %v4694_v0 }
 0x329   : > { %866 = vrot.lane.b32.xlu1 %v4775_v45, %s4024_s4 }
 0x334   : > { %v837_v58 = vpop.permute.xlu1 %836  ;;  %v839_v12 = vpop.permute.xlu2 %838 }
 0x335   : > { %v877_v53 = vsel %vm868_vm15, 0, %v837_v58  ;;  %v869_v8 = vsel %vm868_vm15, %v837_v58, %v839_v12 }
 0x336   : > { %v4781_v7 = vadd.s32 %v869_v8, %v821_v48  ;;  %v4784_v47 = vadd.s32 %v877_v53, %v4702_v1  ;;  %v990_v8 = vlaneseq }
 0x338   : > { %903 = vrot.lane.b32.xlu0 %v4781_v7, %s4025_s5  ;;  %901 = vrot.lane.b32.xlu2 %v4784_v47, %s4025_s5 }
 0x34c   : > { %v841_v0 = vpop.permute.xlu0 %840 }
 0x34d   : > { %v878_v55 = vsel %vm868_vm15, 0, %v841_v0 }
 0x34e   : > { %v4792_v38 = vadd.s32 %v878_v55, %v4708_v46 }
 0x350   : > { %905 = vrot.lane.b32.xlu1 %v4792_v38, %s4025_s5 }
 0x353   : > { %v845_v48 = vpop.permute.xlu2 %844 }
 0x354   : > { %v879_v1 = vsel %vm868_vm15, 0, %v845_v48 }
 0x355   : > { %v4797_v6 = vadd.s32 %v879_v1, %v824_v20 }
 0x357   : > { %909 = vrot.lane.b32.xlu0 %v4797_v6, %s4025_s5 }
 0x364   : > { %v843_v2 = vpop.permute.xlu1 %842 }
 0x365   : > { %v870_v54 = vsel %vm868_vm15, %v841_v0, %v843_v2  ;;  %v4875_v2 = vand.u32 127, %v990_v8 }
 0x366   : > { %v4803_v59 = vadd.s32 %v870_v54, %v4716_v4 }
 0x368   : > { %907 = vrot.lane.b32.xlu2 %v4803_v59, %s4025_s5 }
 0x36b   : > { %v847_v46 = vpop.permute.xlu0 %846 }
 0x36c   : > { %v849_v28 = vpop.permute.xlu1 %848  ;;  %v851_v49 = vpop.permute.xlu2 %850  ;;  %v871_v10 = vsel %vm868_vm15, %v845_v48, %v847_v46  ;;  %v4884_v46 = vadd.s32 128, %v4875_v2 }
 0x36d   : > { %v880_v20 = vsel %vm868_vm15, 0, %v849_v28  ;;  %v872_v29 = vsel %vm868_vm15, %v849_v28, %v851_v49  ;;  %v4811_v23 = vadd.s32 %v871_v10, %v4722_v24 }
 0x36e   : > { %v4813_v9 = vadd.s32 %v872_v29, %v827_v18  ;;  %v4816_v4 = vadd.s32 %v880_v20, %v4727_v5 }
 0x36f   : > { %911 = vrot.lane.b32.xlu1 %v4811_v23, %s4025_s5 }
 0x370   : > { %915 = vrot.lane.b32.xlu0 %v4813_v9, %s4025_s5  ;;  %913 = vrot.lane.b32.xlu2 %v4816_v4, %s4025_s5 }
 0x373   : > { %v853_v21 = vpop.permute.xlu0 %852 }
 0x374   : > { %v857_v3 = vpop.permute.xlu2 %856  ;;  %v881_v17 = vsel %vm868_vm15, 0, %v853_v21 }
 0x375   : > { %v882_v24 = vsel %vm868_vm15, 0, %v857_v3  ;;  %v4827_v18 = vadd.s32 %v881_v17, %v4735_v57 }
 0x376   : > { %v4829_v5 = vadd.s32 %v882_v24, %v830_v39 }
 0x377   : > { %917 = vrot.lane.b32.xlu1 %v4827_v18, %s4025_s5 }
 0x378   : > { %921 = vrot.lane.b32.xlu0 %v4829_v5, %s4025_s5 }
 0x37c   : > { %v863_v39 = vpop.permute.xlu2 %862 }
 0x38b   : > { %v855_v22 = vpop.permute.xlu1 %854 }
 0x38c   : > { %v873_v34 = vsel %vm868_vm15, %v853_v21, %v855_v22  ;;  %v859_v37 = vpop.permute.xlu0 %858 }
 0x38d   : > { %v4837_v11 = vadd.s32 %v873_v34, %v4746_v36  ;;  %v874_v33 = vsel %vm868_vm15, %v857_v3, %v859_v37 }
 0x38e   : > { %v4841_v57 = vadd.s32 %v874_v33, %v4748_v35 }
 0x38f   : > { %919 = vrot.lane.b32.xlu2 %v4837_v11, %s4025_s5 }
 0x390   : > { %923 = vrot.lane.b32.xlu1 %v4841_v57, %s4025_s5 }
 0x393   : > { %v861_v19 = vpop.permute.xlu1 %860 }
 0x394   : > { %v875_v56 = vsel %vm868_vm15, %v861_v19, %v863_v39  ;;  %v883_v30 = vsel %vm868_vm15, 0, %v861_v19  ;;  %v865_v14 = vpop.permute.xlu0 %864 }
 0x395   : > { %v884_v36 = vsel %vm868_vm15, 0, %v865_v14  ;;  %v4851_v32 = vadd.s32 %v875_v56, %v4765_v43  ;;  %v4854_v35 = vadd.s32 %v883_v30, %v4760_v63  ;;  %v902_v63 = vpop.permute.xlu2 %901 }
 0x396   : > { %v4857_v58 = vadd.s32 %v884_v36, %v4762_v60  ;;  %v942_v60 = vsel %vm933_vm13, 0, %v902_v63 }
 0x397   : > { %927 = vrot.lane.b32.xlu0 %v4851_v32, %s4025_s5  ;;  %925 = vrot.lane.b32.xlu2 %v4854_v35, %s4025_s5  ;;  %v950_v55 = vadd.s32 %v942_v60, %v4784_v47 }
 0x398   : > { %929 = vrot.lane.b32.xlu1 %v4857_v58, %s4025_s5 }
 0x39b   : > { %v867_v12 = vpop.permute.xlu1 %866 }
 0x39c   : > { %v876_v53 = vsel %vm868_vm15, %v865_v14, %v867_v12 }
 0x39d   : > { %v4867_v43 = vadd.s32 %v876_v53, %v4775_v45  ;;  %v4881_v45 = vsel %vm479_vm1, %v950_v55, 0 }
 0x39e   : > { %vm993_vm14 = vcmp.eq.s32.totalorder %v4881_v45, 1 }
 0x39f   : > { %931 = vrot.lane.b32.xlu2 %v4867_v43, %s4025_s5  ;;  %v1009_v47 = vsel %vm993_vm14, %v4875_v2, 0  ;;  %vm6945_vm14 = vcmp.lt.f32.partialorder %v4337_v42, 0.16 }
 0x3aa   : > { %v904_v0 = vpop.permute.xlu0 %903 }
 0x3ab   : > { %v934_v48 = vsel %vm933_vm13, %v902_v63, %v904_v0 }
 0x3ac   : > { %v951_v1 = vadd.s32 %v934_v48, %v4781_v7 }
 0x3ae   : > { %v4877_v54 = vadd.s32 %v951_v1, %v950_v55 }
 0x3b0   : > { %v4889_v28 = vsel %vm480_vm0, %v4877_v54, 0 }
 0x3b1   : > { %vm994_vm15 = vcmp.eq.s32.totalorder %v4889_v28, 1 }
 0x3b2   : > { %v1010_v7 = vsel %vm994_vm15, %v4884_v46, 0 }
 0x3b3   : > { %v1025_v49 = vadd.s32 %v1010_v7, %v1009_v47 }
 0x3b5   : > { %v1026_v51 = vand.u32 65535, %v1025_v49  ;;  %v1027_v10 = vshrl.u32 %v1025_v49, 16 }
 0x3b7   : > { %v1028_v20 = vcvt.s32.f32 %v1026_v51  ;;  %v1029_v29 = vcvt.s32.f32 %v1027_v10 }
 0x3c1   : > { %1030 = vadd.xlane.f32.xlu0 %v1028_v20 }
 0x3c2   : > { %v906_v21 = vpop.permute.xlu1 %905  ;;  %v908_v3 = vpop.permute.xlu2 %907  ;;  %1032 = vadd.xlane.f32.xlu1 %v1029_v29 }
 0x3c3   : > { %v943_v50 = vsel %vm933_vm13, 0, %v906_v21  ;;  %v935_v17 = vsel %vm933_vm13, %v906_v21, %v908_v3 }
 0x3c4   : > { %v952_v24 = vadd.s32 %v943_v50, %v4792_v38  ;;  %v953_v22 = vadd.s32 %v935_v17, %v4803_v59 }
 0x3c6   : > { %v4901_v34 = vsel %vm481_vm3, %v952_v24, 0  ;;  %v4903_v37 = vadd.s32 %v953_v22, %v952_v24 }
 0x3c7   : > { %vm995_vm0 = vcmp.eq.s32.totalorder %v4901_v34, 1 }
 0x3c8   : > { %v4909_v33 = vsel %vm482_vm2, %v4903_v37, 0  ;;  %v1011_v39 = vsel %vm995_vm0, %v4875_v2, 0 }
 0x3c9   : > { %vm996_vm1 = vcmp.eq.s32.totalorder %v4909_v33, 1  ;;  %v910_v36 = vpop.permute.xlu0 %909 }
 0x3ca   : > { %v1012_v38 = vsel %vm996_vm1, %v4884_v46, 0  ;;  %v914_v14 = vpop.permute.xlu2 %913  ;;  %v944_v44 = vsel %vm933_vm13, 0, %v910_v36  ;;  %vm1130_vm1 = vcmp.eq.s32.totalorder %v4889_v28, 2 }
 0x3cb   : > { %v1038_v59 = vadd.s32 %v1012_v38, %v1011_v39  ;;  %v945_v12 = vsel %vm933_vm13, 0, %v914_v14  ;;  %v954_v63 = vadd.s32 %v944_v44, %v4797_v6 }
 0x3cc   : > { %v956_v53 = vadd.s32 %v945_v12, %v4816_v4 }
 0x3cd   : > { %v1039_v19 = vand.u32 65535, %v1038_v59  ;;  %v1040_v56 = vshrl.u32 %v1038_v59, 16  ;;  %v4925_v48 = vsel %vm483_vm5, %v954_v63, 0 }
 0x3ce   : > { %v4921_v55 = vsel %vm485_vm4, %v956_v53, 0  ;;  %vm997_vm2 = vcmp.eq.s32.totalorder %v4925_v48, 1 }
 0x3cf   : > { %v1041_v16 = vcvt.s32.f32 %v1039_v19  ;;  %v1042_v30 = vcvt.s32.f32 %v1040_v56  ;;  %vm999_vm3 = vcmp.eq.s32.totalorder %v4921_v55, 1  ;;  %v1013_v49 = vsel %vm997_vm2, %v4875_v2, 0 }
 0x3d0   : > { %v1015_v10 = vsel %vm999_vm3, %v4875_v2, 0  ;;  %vm1129_vm2 = vcmp.eq.s32.totalorder %v4881_v45, 2  ;;  %vm1132_vm3 = vcmp.eq.s32.totalorder %v4909_v33, 2 }
 0x3d1   : > { %1043 = vadd.xlane.f32.xlu2 %v1041_v16 }
 0x3d9   : > { %1045 = vadd.xlane.f32.xlu2 %v1042_v30 }
 0x3e1   : > { %v912_v60 = vpop.permute.xlu1 %911 }
 0x3e2   : > { %v936_v8 = vsel %vm933_vm13, %v910_v36, %v912_v60  ;;  %v916_v0 = vpop.permute.xlu0 %915 }
 0x3e3   : > { %v955_v1 = vadd.s32 %v936_v8, %v4811_v23  ;;  %v937_v7 = vsel %vm933_vm13, %v914_v14, %v916_v0 }
 0x3e4   : > { %v957_v4 = vadd.s32 %v937_v7, %v4813_v9 }
 0x3e5   : > { %v4930_v47 = vadd.s32 %v955_v1, %v954_v63 }
 0x3e6   : > { %v4932_v6 = vadd.s32 %v957_v4, %v956_v53 }
 0x3e7   : > { %6938 = vst [vmem:[#allocation2_spill] sm:$0xff] %v4930_v47  ;;  %v4939_v52 = vsel %vm484_vm6, %v4930_v47, 0 }
 0x3e8   : > { %vm998_vm4 = vcmp.eq.s32.totalorder %v4939_v52, 1  ;;  %v4945_v13 = vsel %vm486_vm7, %v4932_v6, 0 }
 0x3e9   : > { %v918_v23 = vpop.permute.xlu1 %917  ;;  %v920_v9 = vpop.permute.xlu2 %919  ;;  %v1014_v51 = vsel %vm998_vm4, %v4884_v46, 0  ;;  %vm1000_vm5 = vcmp.eq.s32.totalorder %v4945_v13, 1  ;;  %vm1134_vm4 = vcmp.eq.s32.totalorder %v4939_v52, 2 }
 0x3ea   : > { %v946_v15 = vsel %vm933_vm13, 0, %v918_v23  ;;  %v938_v20 = vsel %vm933_vm13, %v918_v23, %v920_v9  ;;  %v1051_v29 = vadd.s32 %v1014_v51, %v1013_v49  ;;  %v1016_v21 = vsel %vm1000_vm5, %v4884_v46, 0  ;;  %v922_v61 = vpop.permute.xlu0 %921 }
 0x3eb   : > { %v958_v31 = vadd.s32 %v946_v15, %v4827_v18  ;;  %v959_v3 = vadd.s32 %v938_v20, %v4837_v11  ;;  %v1064_v50 = vadd.s32 %v1016_v21, %v1015_v10  ;;  %v947_v63 = vsel %vm933_vm13, 0, %v922_v61 }
 0x3ec   : > { %v1053_v17 = vshrl.u32 %v1051_v29, 16  ;;  %v1052_v24 = vand.u32 65535, %v1051_v29  ;;  %v960_v60 = vadd.s32 %v947_v63, %v4829_v5  ;;  %vm1131_vm5 = vcmp.eq.s32.totalorder %v4901_v34, 2 }
 0x3ed   : > { %v4958_v22 = vsel %vm487_vm9, %v958_v31, 0  ;;  %v4960_v39 = vadd.s32 %v959_v3, %v958_v31  ;;  %v1065_v38 = vand.u32 65535, %v1064_v50  ;;  %v1066_v30 = vshrl.u32 %v1064_v50, 16 }
 0x3ee   : > { %v1055_v59 = vcvt.s32.f32 %v1053_v17  ;;  %v1054_v19 = vcvt.s32.f32 %v1052_v24  ;;  %vm1001_vm6 = vcmp.eq.s32.totalorder %v4958_v22, 1  ;;  %v4977_v4 = vsel %vm489_vm10, %v960_v60, 0 }
 0x3ef   : > { %6939 = vst [vmem:[#allocation3_spill] sm:$0xff] %v4960_v39  ;;  %v1067_v16 = vcvt.s32.f32 %v1065_v38  ;;  %v4966_v18 = vsel %vm488_vm8, %v4960_v39, 0  ;;  %v1017_v62 = vsel %vm1001_vm6, %v4875_v2, 0  ;;  %v1068_v44 = vcvt.s32.f32 %v1066_v30 }
 0x3f0   : > { %1058 = vadd.xlane.f32.xlu1 %v1055_v59  ;;  %1056 = vadd.xlane.f32.xlu0 %v1054_v19  ;;  %vm1002_vm7 = vcmp.eq.s32.totalorder %v4966_v18, 1  ;;  %vm1003_vm8 = vcmp.eq.s32.totalorder %v4977_v4, 1  ;;  %vm6943_vm10 = vcmp.lt.f32.partialorder %v4335_v41, 0.16  ;;  %vm1133_vm6 = vcmp.eq.s32.totalorder %v4925_v48, 2 }
 0x3f1   : > { %1069 = vadd.xlane.f32.xlu2 %v1067_v16  ;;  %v1018_v11 = vsel %vm1002_vm7, %v4884_v46, 0  ;;  %v926_v8 = vpop.permute.xlu2 %925  ;;  %v1019_v15 = vsel %vm1003_vm8, %v4875_v2, 0  ;;  %vm1136_vm7 = vcmp.eq.s32.totalorder %v4945_v13, 2  ;;  %vm1135_vm8 = vcmp.eq.s32.totalorder %v4921_v55, 2 }
 0x3f2   : > { %v1077_v56 = vadd.s32 %v1018_v11, %v1017_v62  ;;  %v948_v1 = vsel %vm933_vm13, 0, %v926_v8 }
 0x3f3   : > { %v962_v9 = vadd.s32 %v948_v1, %v4854_v35  ;;  %v1148_v1 = vsel %vm1132_vm3, %v4884_v46, 0  ;;  %vm1284_vm3 = vcmp.eq.s32.totalorder %v4909_v33, 3 }
 0x3f4   : > { %v1078_v14 = vand.u32 65535, %v1077_v56  ;;  %v1079_v36 = vshrl.u32 %v1077_v56, 16 }
 0x3f5   : > { %v4992_v26 = vsel %vm491_vm12, %v962_v9, 0 }
 0x3f6   : > { %v1080_v12 = vcvt.s32.f32 %v1078_v14  ;;  %v1081_v53 = vcvt.s32.f32 %v1079_v36  ;;  %v1146_v14 = vsel %vm1130_vm1, %v4884_v46, 0 }
 0x3f8   : > { %1082 = vadd.xlane.f32.xlu1 %v1080_v12  ;;  %1071 = vadd.xlane.f32.xlu0 %v1068_v44 }
 0x3f9   : > { %1084 = vadd.xlane.f32.xlu2 %v1081_v53  ;;  %v932_v10 = vpop.permute.xlu2 %931  ;;  %v1145_v53 = vsel %vm1129_vm2, %v4875_v2, 0  ;;  %vm1281_vm2 = vcmp.eq.s32.totalorder %v4881_v45, 3 }
 0x3fa   : > { %v1161_v63 = vadd.s32 %v1146_v14, %v1145_v53 }
 0x402   : > { %v924_v0 = vpop.permute.xlu1 %923 }
 0x403   : > { %v939_v7 = vsel %vm933_vm13, %v922_v61, %v924_v0  ;;  %v1162_v0 = vand.u32 65535, %v1161_v63 }
 0x404   : > { %v961_v23 = vadd.s32 %v939_v7, %v4841_v57  ;;  %v1150_v7 = vsel %vm1134_vm4, %v4884_v46, 0  ;;  %vm1283_vm4 = vcmp.eq.s32.totalorder %v4901_v34, 3 }
 0x406   : > { %v4981_v49 = vadd.s32 %v961_v23, %v960_v60  ;;  %v1147_v23 = vsel %vm1131_vm5, %v4875_v2, 0  ;;  %vm1286_vm5 = vcmp.eq.s32.totalorder %v4939_v52, 3 }
 0x408   : > { %6940 = vst [vmem:[#allocation4_spill] sm:$0xff] %v4981_v49  ;;  %v4987_v5 = vsel %vm490_vm11, %v4981_v49, 0  ;;  %vm1005_vm11 = vcmp.eq.s32.totalorder %v4992_v26, 1 }
 0x409   : > { %v928_v51 = vpop.permute.xlu0 %927  ;;  %vm1004_vm9 = vcmp.eq.s32.totalorder %v4987_v5, 1  ;;  %v1021_v41 = vsel %vm1005_vm11, %v4875_v2, 0  ;;  %vm1137_vm11 = vcmp.eq.s32.totalorder %v4958_v22, 2 }
 0x40a   : > { %v930_v57 = vpop.permute.xlu1 %929  ;;  %v940_v35 = vsel %vm933_vm13, %v926_v8, %v928_v51  ;;  %v1020_v20 = vsel %vm1004_vm9, %v4884_v46, 0  ;;  %v1163_v8 = vshrl.u32 %v1161_v63, 16  ;;  %v1149_v51 = vsel %vm1133_vm6, %v4875_v2, 0 }
 0x40b   : > { %v941_v29 = vsel %vm933_vm13, %v930_v57, %v932_v10  ;;  %v949_v27 = vsel %vm933_vm13, 0, %v930_v57  ;;  %v963_v21 = vadd.s32 %v940_v35, %v4851_v32  ;;  %v1090_v31 = vadd.s32 %v1020_v20, %v1019_v15 }
 0x40c   : > { %v964_v3 = vadd.s32 %v949_v27, %v4857_v58  ;;  %v965_v25 = vadd.s32 %v941_v29, %v4867_v43  ;;  %vm6944_vm13 = vcmp.lt.f32.partialorder %v4329_v40, 0.16  ;;  %v1174_v10 = vadd.s32 %v1148_v1, %v1147_v23 }
 0x40d   : > { %v5002_v50 = vadd.s32 %v963_v21, %v962_v9  ;;  %v1092_v17 = vshrl.u32 %v1090_v31, 16  ;;  %v1091_v24 = vand.u32 65535, %v1090_v31  ;;  %v1165_v57 = vcvt.s32.f32 %v1163_v8 }
 0x40e   : > { %v5004_v38 = vadd.s32 %v965_v25, %v964_v3  ;;  %v5008_v59 = vsel %vm6943_vm10, %v964_v3, 0  ;;  %v1164_v35 = vcvt.s32.f32 %v1162_v0  ;;  %v1187_v15 = vadd.s32 %v1150_v7, %v1149_v51 }
 0x40f   : > { %6941 = vst [vmem:[#allocation5_spill] sm:$0xff] %v5002_v50  ;;  %v1094_v19 = vcvt.s32.f32 %v1092_v17  ;;  %v1093_v16 = vcvt.s32.f32 %v1091_v24  ;;  %vm1007_vm12 = vcmp.eq.s32.totalorder %v5008_v59, 1  ;;  %v5015_v32 = vsel %vm6944_vm13, %v5002_v50, 0 }
 0x410   : > { %6942 = vst [vmem:[#allocation6_spill] sm:$0xff] %v5004_v38  ;;  %v5020_v58 = vsel %vm6945_vm14, %v5004_v38, 0  ;;  %vm1006_vm15 = vcmp.eq.s32.totalorder %v5015_v32, 1  ;;  %v1023_v40 = vsel %vm1007_vm12, %v4875_v2, 0  ;;  %v1175_v20 = vand.u32 65535, %v1174_v10 }
 0x411   : > { %1097 = vadd.xlane.f32.xlu1 %v1094_v19  ;;  %1095 = vadd.xlane.f32.xlu0 %v1093_v16  ;;  %vm1008_vm0 = vcmp.eq.s32.totalorder %v5020_v58, 1  ;;  %v1022_v43 = vsel %vm1006_vm15, %v4884_v46, 0  ;;  %v1188_v29 = vand.u32 65535, %v1187_v15  ;;  %v1176_v27 = vshrl.u32 %v1174_v10, 16 }
 0x412   : > { %v1024_v62 = vsel %vm1008_vm0, %v4884_v46, 0  ;;  %v1103_v11 = vadd.s32 %v1022_v43, %v1021_v41  ;;  %v1152_v21 = vsel %vm1136_vm7, %v4884_v46, 0  ;;  %v1177_v31 = vcvt.s32.f32 %v1175_v20 }
 0x413   : > { %v1116_v42 = vadd.s32 %v1024_v62, %v1023_v40  ;;  %v1151_v3 = vsel %vm1135_vm8, %v4875_v2, 0  ;;  %v1190_v25 = vcvt.s32.f32 %v1188_v29  ;;  %v1178_v17 = vcvt.s32.f32 %v1176_v27 }
 0x414   : > { %v1105_v56 = vshrl.u32 %v1103_v11, 16  ;;  %v1104_v30 = vand.u32 65535, %v1103_v11  ;;  %v1200_v24 = vadd.s32 %v1152_v21, %v1151_v3  ;;  %vm1138_vm9 = vcmp.eq.s32.totalorder %v4966_v18, 2 }
 0x415   : > { %v1117_v36 = vand.u32 65535, %v1116_v42  ;;  %v1118_v60 = vshrl.u32 %v1116_v42, 16  ;;  %vm1140_vm10 = vcmp.eq.s32.totalorder %v4987_v5, 2  ;;  %v1189_v19 = vshrl.u32 %v1187_v15, 16 }
 0x416   : > { %v1107_v12 = vcvt.s32.f32 %v1105_v56  ;;  %v1106_v44 = vcvt.s32.f32 %v1104_v30  ;;  %v1202_v16 = vshrl.u32 %v1200_v24, 16  ;;  %v1201_v41 = vand.u32 65535, %v1200_v24 }
 0x417   : > { %v1119_v61 = vcvt.s32.f32 %v1117_v36  ;;  %v1120_v9 = vcvt.s32.f32 %v1118_v60  ;;  %vm1139_vm12 = vcmp.eq.s32.totalorder %v4977_v4, 2  ;;  %v1154_v43 = vsel %vm1138_vm9, %v4884_v46, 0 }
 0x418   : > { %1108 = vadd.xlane.f32.xlu2 %v1106_v44  ;;  %v1156_v40 = vsel %vm1140_vm10, %v4884_v46, 0  ;;  %v1153_v62 = vsel %vm1137_vm11, %v4875_v2, 0  ;;  %v1191_v11 = vcvt.s32.f32 %v1189_v19  ;;  %v1155_v42 = vsel %vm1139_vm12, %v4875_v2, 0 }
 0x419   : > { %1121 = vadd.xlane.f32.xlu1 %v1119_v61  ;;  %1110 = vadd.xlane.f32.xlu0 %v1107_v12  ;;  %v1213_v56 = vadd.s32 %v1154_v43, %v1153_v62  ;;  %v1204_v30 = vcvt.s32.f32 %v1202_v16  ;;  %v1203_v14 = vcvt.s32.f32 %v1201_v41  ;;  %v1226_v36 = vadd.s32 %v1156_v40, %v1155_v42 }
 0x41a   : > { %vm1142_vm13 = vcmp.eq.s32.totalorder %v5015_v32, 2  ;;  %vm1141_vm14 = vcmp.eq.s32.totalorder %v4992_v26, 2  ;;  %vm1144_vm15 = vcmp.eq.s32.totalorder %v5020_v58, 2  ;;  %vm1282_vm0 = vcmp.eq.s32.totalorder %v4889_v28, 3 }
 0x41b   : > { %v1214_v12 = vand.u32 65535, %v1213_v56  ;;  %v1227_v44 = vand.u32 65535, %v1226_v36  ;;  %v1215_v53 = vshrl.u32 %v1213_v56, 16  ;;  %v1158_v61 = vsel %vm1142_vm13, %v4884_v46, 0 }
 0x41c   : > { %v1157_v60 = vsel %vm1141_vm14, %v4875_v2, 0  ;;  %v1228_v7 = vshrl.u32 %v1226_v36, 16  ;;  %vm1143_vm1 = vcmp.eq.s32.totalorder %v5008_v59, 2  ;;  %v1160_v51 = vsel %vm1144_vm15, %v4884_v46, 0 }
 0x41d   : > { %v1216_v63 = vcvt.s32.f32 %v1214_v12  ;;  %v1229_v8 = vcvt.s32.f32 %v1227_v44  ;;  %v1217_v0 = vcvt.s32.f32 %v1215_v53  ;;  %v1239_v1 = vadd.s32 %v1158_v61, %v1157_v60 }
 0x41e   : > { %v1298_v10 = vsel %vm1282_vm0, %v4884_v46, 0  ;;  %v1297_v15 = vsel %vm1281_vm2, %v4875_v2, 0  ;;  %v1299_v19 = vsel %vm1283_vm4, %v4875_v2, 0  ;;  %vm1288_vm6 = vcmp.eq.s32.totalorder %v4945_v13, 3 }
 0x41f   : > { %v1241_v23 = vshrl.u32 %v1239_v1, 16  ;;  %v1313_v21 = vadd.s32 %v1298_v10, %v1297_v15  ;;  %vm1285_vm7 = vcmp.eq.s32.totalorder %v4925_v48, 3  ;;  %vm1287_vm8 = vcmp.eq.s32.totalorder %v4921_v55, 3 }
 0x420   : > { %1123 = vadd.xlane.f32.xlu2 %v1120_v9  ;;  %v1240_v9 = vand.u32 65535, %v1239_v1  ;;  %v1302_v42 = vsel %vm1286_vm5, %v4884_v46, 0  ;;  %v1304_v56 = vsel %vm1288_vm6, %v4884_v46, 0  ;;  %v1303_v36 = vsel %vm1287_vm8, %v4875_v2, 0 }
 0x421   : > { %1168 = vadd.xlane.f32.xlu1 %v1165_v57  ;;  %1166 = vadd.xlane.f32.xlu0 %v1164_v35  ;;  %v1159_v57 = vsel %vm1143_vm1, %v4875_v2, 0  ;;  %v1230_v35 = vcvt.s32.f32 %v1228_v7  ;;  %v1243_v29 = vcvt.s32.f32 %v1241_v23  ;;  %v1314_v3 = vand.u32 65535, %v1313_v21 }
 0x422   : > { %v1252_v20 = vadd.s32 %v1160_v51, %v1159_v57  ;;  %v1242_v27 = vcvt.s32.f32 %v1240_v9  ;;  %v1315_v40 = vshrl.u32 %v1313_v21, 16  ;;  %v1352_v61 = vadd.s32 %v1304_v56, %v1303_v36 }
 0x423   : > { %v1316_v16 = vcvt.s32.f32 %v1314_v3  ;;  %vm1290_vm9 = vcmp.eq.s32.totalorder %v4966_v18, 3  ;;  %vm1289_vm10 = vcmp.eq.s32.totalorder %v4958_v22, 3  ;;  %vm1292_vm11 = vcmp.eq.s32.totalorder %v4987_v5, 3 }
 0x424   : > { %v1353_v60 = vand.u32 65535, %v1352_v61  ;;  %v1305_v7 = vsel %vm1289_vm10, %v4875_v2, 0  ;;  %vm1294_vm12 = vcmp.eq.s32.totalorder %v5015_v32, 3  ;;  %v1354_v10 = vshrl.u32 %v1352_v61, 16 }
 0x425   : > { %vm1291_vm13 = vcmp.eq.s32.totalorder %v4977_v4, 3  ;;  %vm1293_vm14 = vcmp.eq.s32.totalorder %v4992_v26, 3  ;;  %v1308_v15 = vsel %vm1292_vm11, %v4884_v46, 0  ;;  %vm1296_vm15 = vcmp.eq.s32.totalorder %v5020_v58, 3 }
 0x426   : > { %v1355_v23 = vcvt.s32.f32 %v1353_v60  ;;  %v1309_v21 = vsel %vm1293_vm14, %v4875_v2, 0  ;;  %vm1295_vm0 = vcmp.eq.s32.totalorder %v5008_v59, 3  ;;  %vm1434_vm1 = vcmp.eq.s32.totalorder %v4889_v28, 4 }
 0x427   : > { %vm1436_vm2 = vcmp.eq.s32.totalorder %v4909_v33, 4  ;;  %vm1435_vm4 = vcmp.eq.s32.totalorder %v4901_v34, 4  ;;  %vm1438_vm5 = vcmp.eq.s32.totalorder %v4939_v52, 4  ;;  %vm1437_vm6 = vcmp.eq.s32.totalorder %v4925_v48, 4 }
 0x428   : > { %1179 = vadd.xlane.f32.xlu2 %v1177_v31  ;;  %v1253_v31 = vand.u32 65535, %v1252_v20  ;;  %v1452_v61 = vsel %vm1436_vm2, %v4884_v46, 0  ;;  %vm1442_vm8 = vcmp.eq.s32.totalorder %v4966_v18, 4  ;;  %vm1441_vm10 = vcmp.eq.s32.totalorder %v4958_v22, 4 }
 0x429   : > { %1192 = vadd.xlane.f32.xlu1 %v1190_v25  ;;  %1181 = vadd.xlane.f32.xlu0 %v1178_v17  ;;  %v1254_v25 = vshrl.u32 %v1252_v20, 16  ;;  %v1300_v17 = vsel %vm1284_vm3, %v4884_v46, 0  ;;  %v1310_v20 = vsel %vm1294_vm12, %v4884_v46, 0  ;;  %vm1433_vm3 = vcmp.eq.s32.totalorder %v4881_v45, 4 }
 0x42a   : > { %v1255_v24 = vcvt.s32.f32 %v1253_v31  ;;  %v1326_v43 = vadd.s32 %v1300_v17, %v1299_v19  ;;  %v1391_v17 = vadd.s32 %v1310_v20, %v1309_v21  ;;  %v1454_v20 = vsel %vm1438_vm5, %v4884_v46, 0 }
 0x42b   : > { %v1256_v41 = vcvt.s32.f32 %v1254_v25  ;;  %vm1444_vm11 = vcmp.eq.s32.totalorder %v4987_v5, 4  ;;  %vm1443_vm12 = vcmp.eq.s32.totalorder %v4977_v4, 4  ;;  %vm1448_vm14 = vcmp.eq.s32.totalorder %v5020_v58, 4 }
 0x42c   : > { %v1328_v62 = vshrl.u32 %v1326_v43, 16  ;;  %v1392_v19 = vand.u32 65535, %v1391_v17  ;;  %v1393_v36 = vshrl.u32 %v1391_v17, 16  ;;  %vm1585_vm2 = vcmp.eq.s32.totalorder %v4881_v45, 5 }
 0x42d   : > { %vm1587_vm5 = vcmp.eq.s32.totalorder %v4901_v34, 5 }
 0x42e   : > { %v1330_v44 = vcvt.s32.f32 %v1328_v62  ;;  %v1395_v60 = vcvt.s32.f32 %v1393_v36 }
 0x430   : > { %1194 = vadd.xlane.f32.xlu2 %v1191_v11  ;;  %v1327_v11 = vand.u32 65535, %v1326_v43 }
 0x431   : > { %1207 = vadd.xlane.f32.xlu1 %v1204_v30  ;;  %1205 = vadd.xlane.f32.xlu0 %v1203_v14  ;;  %v1301_v30 = vsel %vm1285_vm7, %v4875_v2, 0  ;;  %v1317_v14 = vcvt.s32.f32 %v1315_v40  ;;  %v1311_v40 = vsel %vm1295_vm0, %v4875_v2, 0  ;;  %vm1440_vm7 = vcmp.eq.s32.totalorder %v4945_v13, 4 }
 0x432   : > { %v1339_v12 = vadd.s32 %v1302_v42, %v1301_v30  ;;  %v1329_v53 = vcvt.s32.f32 %v1327_v11  ;;  %v1394_v11 = vcvt.s32.f32 %v1392_v19  ;;  %vm1447_vm0 = vcmp.eq.s32.totalorder %v5008_v59, 4 }
 0x435   : > { %v5096_v30 = vpop.xlane.xlu1 %1032 }
 0x438   : > { %1218 = vadd.xlane.f32.xlu2 %v1216_v63  ;;  %v1340_v63 = vand.u32 65535, %v1339_v12 }
 0x439   : > { %1231 = vadd.xlane.f32.xlu1 %v1229_v8  ;;  %1220 = vadd.xlane.f32.xlu0 %v1217_v0  ;;  %v1341_v8 = vshrl.u32 %v1339_v12, 16  ;;  %v1306_v0 = vsel %vm1290_vm9, %v4884_v46, 0  ;;  %vm1439_vm9 = vcmp.eq.s32.totalorder %v4921_v55, 4 }
 0x43a   : > { %v1342_v1 = vcvt.s32.f32 %v1340_v63  ;;  %v1365_v51 = vadd.s32 %v1306_v0, %v1305_v7  ;;  %v1449_v63 = vsel %vm1433_vm3, %v4875_v2, 0  ;;  %vm1588_vm3 = vcmp.eq.s32.totalorder %v4909_v33, 5 }
 0x43b   : > { %v1343_v9 = vcvt.s32.f32 %v1341_v8  ;;  %v1451_v8 = vsel %vm1435_vm4, %v4875_v2, 0  ;;  %vm1590_vm4 = vcmp.eq.s32.totalorder %v4939_v52, 5 }
 0x43c   : > { %v1367_v57 = vshrl.u32 %v1365_v51, 16 }
 0x43e   : > { %v1369_v3 = vcvt.s32.f32 %v1367_v57 }
 0x440   : > { %1233 = vadd.xlane.f32.xlu2 %v1230_v35  ;;  %v1366_v35 = vand.u32 65535, %v1365_v51 }
 0x441   : > { %1246 = vadd.xlane.f32.xlu1 %v1243_v29  ;;  %1244 = vadd.xlane.f32.xlu0 %v1242_v27  ;;  %v1307_v29 = vsel %vm1291_vm13, %v4875_v2, 0  ;;  %v1356_v27 = vcvt.s32.f32 %v1354_v10  ;;  %vm1446_vm13 = vcmp.eq.s32.totalorder %v5015_v32, 4 }
 0x442   : > { %v1378_v31 = vadd.s32 %v1308_v15, %v1307_v29  ;;  %v1368_v25 = vcvt.s32.f32 %v1366_v35 }
 0x444   : > { %v5092_v62 = vpop.xlane.xlu2 %1043 }
 0x448   : > { %1257 = vadd.xlane.f32.xlu2 %v1255_v24  ;;  %v1379_v24 = vand.u32 65535, %v1378_v31 }
 0x449   : > { %1318 = vadd.xlane.f32.xlu1 %v1316_v16  ;;  %1259 = vadd.xlane.f32.xlu0 %v1256_v41  ;;  %v1380_v16 = vshrl.u32 %v1378_v31, 16  ;;  %v1312_v41 = vsel %vm1296_vm15, %v4884_v46, 0  ;;  %vm1445_vm15 = vcmp.eq.s32.totalorder %v4992_v26, 4 }
 0x44a   : > { %v1381_v43 = vcvt.s32.f32 %v1379_v24  ;;  %v1404_v56 = vadd.s32 %v1312_v41, %v1311_v40  ;;  %v1458_v40 = vsel %vm1442_vm8, %v4884_v46, 0  ;;  %vm1591_vm8 = vcmp.eq.s32.totalorder %v4921_v55, 5 }
 0x44b   : > { %v1382_v42 = vcvt.s32.f32 %v1380_v16  ;;  %v1456_v16 = vsel %vm1440_vm7, %v4884_v46, 0  ;;  %vm1592_vm7 = vcmp.eq.s32.totalorder %v4945_v13, 5 }
 0x44c   : > { %v1406_v12 = vshrl.u32 %v1404_v56, 16 }
 0x450   : > { %1320 = vadd.xlane.f32.xlu2 %v1317_v14  ;;  %v5098_v14 = vpop.xlane.xlu0 %1030 }
 0x451   : > { %1333 = vadd.xlane.f32.xlu1 %v1330_v44  ;;  %1331 = vadd.xlane.f32.xlu0 %v1329_v53  ;;  %v1405_v44 = vand.u32 65535, %v1404_v56  ;;  %v1450_v53 = vsel %vm1434_vm1, %v4884_v46, 0  ;;  %v1457_v56 = vsel %vm1441_vm10, %v4875_v2, 0  ;;  %vm1586_vm1 = vcmp.eq.s32.totalorder %v4889_v28, 5 }
 0x452   : > { %v1465_v0 = vadd.s32 %v1450_v53, %v1449_v63  ;;  %v1517_v53 = vadd.s32 %v1458_v40, %v1457_v56  ;;  %vm1596_vm10 = vcmp.eq.s32.totalorder %v4987_v5, 5 }
 0x453   : > { %v1407_v7 = vcvt.s32.f32 %v1405_v44 }
 0x454   : > { %v1466_v57 = vand.u32 65535, %v1465_v0  ;;  %v1467_v15 = vshrl.u32 %v1465_v0, 16 }
 0x456   : > { %v1468_v29 = vcvt.s32.f32 %v1466_v57  ;;  %v1469_v31 = vcvt.s32.f32 %v1467_v15  ;;  %v1459_v57 = vsel %vm1443_vm12, %v4875_v2, 0  ;;  %vm1595_vm12 = vcmp.eq.s32.totalorder %v4977_v4, 5 }
 0x458   : > { %1344 = vadd.xlane.f32.xlu2 %v1342_v1  ;;  %v1408_v1 = vcvt.s32.f32 %v1406_v12 }
 0x459   : > { %1357 = vadd.xlane.f32.xlu1 %v1355_v23  ;;  %1346 = vadd.xlane.f32.xlu0 %v1343_v9  ;;  %v1478_v23 = vadd.s32 %v1452_v61, %v1451_v8  ;;  %v5106_v9 = vpop.xlane.xlu2 %1045 }
 0x45b   : > { %v1479_v35 = vand.u32 65535, %v1478_v23  ;;  %v1480_v17 = vshrl.u32 %v1478_v23, 16 }
 0x45d   : > { %v1481_v21 = vcvt.s32.f32 %v1479_v35 }
 0x460   : > { %1359 = vadd.xlane.f32.xlu2 %v1356_v27  ;;  %v1453_v27 = vsel %vm1437_vm6, %v4875_v2, 0  ;;  %vm1589_vm6 = vcmp.eq.s32.totalorder %v4925_v48, 5 }
 0x461   : > { %1372 = vadd.xlane.f32.xlu1 %v1369_v3  ;;  %1370 = vadd.xlane.f32.xlu0 %v1368_v25  ;;  %v1491_v3 = vadd.s32 %v1454_v20, %v1453_v27 }
 0x463   : > { %v5109_v51 = vpop.xlane.xlu1 %1058  ;;  %v5111_v10 = vpop.xlane.xlu0 %1056  ;;  %v1493_v24 = vshrl.u32 %v1491_v3, 16  ;;  %v1492_v19 = vand.u32 65535, %v1491_v3  ;;  %v1462_v3 = vsel %vm1446_vm13, %v4884_v46, 0  ;;  %vm1598_vm13 = vcmp.eq.s32.totalorder %v5015_v32, 5 }
 0x464   : > { %v5117_v25 = vpop.xlane.xlu2 %1069 }
 0x465   : > { %v1495_v12 = vcvt.s32.f32 %v1493_v24  ;;  %v1494_v44 = vcvt.s32.f32 %v1492_v19  ;;  %v1464_v19 = vsel %vm1448_vm14, %v4884_v46, 0  ;;  %vm1597_vm14 = vcmp.eq.s32.totalorder %v4992_v26, 5 }
 0x468   : > { %1383 = vadd.xlane.f32.xlu2 %v1381_v43 }
 0x469   : > { %1396 = vadd.xlane.f32.xlu1 %v1394_v11  ;;  %1385 = vadd.xlane.f32.xlu0 %v1382_v42  ;;  %v1455_v11 = vsel %vm1439_vm9, %v4875_v2, 0  ;;  %v1482_v42 = vcvt.s32.f32 %v1480_v17  ;;  %vm1594_vm9 = vcmp.eq.s32.totalorder %v4966_v18, 5 }
 0x46a   : > { %v1504_v36 = vadd.s32 %v1456_v16, %v1455_v11  ;;  %v1461_v16 = vsel %vm1445_vm15, %v4875_v2, 0  ;;  %v1463_v11 = vsel %vm1447_vm0, %v4875_v2, 0  ;;  %vm1600_vm15 = vcmp.eq.s32.totalorder %v5020_v58, 5 }
 0x46b   : > { %v5123_v41 = vpop.xlane.xlu1 %1082  ;;  %v5125_v43 = vpop.xlane.xlu0 %1071  ;;  %vm1738_vm0 = vcmp.eq.s32.totalorder %v4889_v28, 6 }
 0x46c   : > { %v1505_v61 = vand.u32 65535, %v1504_v36  ;;  %v5131_v63 = vpop.xlane.xlu2 %1084  ;;  %v1506_v8 = vshrl.u32 %v1504_v36, 16 }
 0x46e   : > { %v1507_v23 = vcvt.s32.f32 %v1505_v61  ;;  %v1508_v15 = vcvt.s32.f32 %v1506_v8 }
 0x470   : > { %1398 = vadd.xlane.f32.xlu2 %v1395_v60  ;;  %v1518_v60 = vand.u32 65535, %v1517_v53 }
 0x471   : > { %1411 = vadd.xlane.f32.xlu1 %v1408_v1  ;;  %1409 = vadd.xlane.f32.xlu0 %v1407_v7  ;;  %v1460_v7 = vsel %vm1444_vm11, %v4884_v46, 0  ;;  %vm1593_vm11 = vcmp.eq.s32.totalorder %v4958_v22, 5 }
 0x472   : > { %v1520_v35 = vcvt.s32.f32 %v1518_v60  ;;  %v1530_v20 = vadd.s32 %v1460_v7, %v1459_v57 }
 0x478   : > { %1470 = vadd.xlane.f32.xlu2 %v1468_v29  ;;  %v1519_v29 = vshrl.u32 %v1517_v53, 16 }
 0x479   : > { %1483 = vadd.xlane.f32.xlu1 %v1481_v21  ;;  %1472 = vadd.xlane.f32.xlu0 %v1469_v31  ;;  %v1532_v21 = vshrl.u32 %v1530_v20, 16  ;;  %v1531_v31 = vand.u32 65535, %v1530_v20 }
 0x47a   : > { %v1521_v40 = vcvt.s32.f32 %v1519_v29 }
 0x47b   : > { %v1534_v56 = vcvt.s32.f32 %v1532_v21  ;;  %v1533_v36 = vcvt.s32.f32 %v1531_v31 }
 0x480   : > { %1485 = vadd.xlane.f32.xlu2 %v1482_v42  ;;  %v1543_v42 = vadd.s32 %v1462_v3, %v1461_v16  ;;  %v1604_v16 = vsel %vm1588_vm3, %v4884_v46, 0  ;;  %vm1740_vm3 = vcmp.eq.s32.totalorder %v4909_v33, 6 }
 0x481   : > { %1498 = vadd.xlane.f32.xlu1 %v1495_v12  ;;  %1496 = vadd.xlane.f32.xlu0 %v1494_v44  ;;  %v1556_v12 = vadd.s32 %v1464_v19, %v1463_v11 }
 0x482   : > { %v1544_v44 = vand.u32 65535, %v1543_v42  ;;  %v1545_v60 = vshrl.u32 %v1543_v42, 16  ;;  %v1606_v42 = vsel %vm1590_vm4, %v4884_v46, 0  ;;  %vm1739_vm4 = vcmp.eq.s32.totalorder %v4901_v34, 6 }
 0x483   : > { %v1557_v61 = vand.u32 65535, %v1556_v12  ;;  %v1558_v21 = vshrl.u32 %v1556_v12, 16  ;;  %v1605_v12 = vsel %vm1589_vm6, %v4875_v2, 0  ;;  %vm1744_vm6 = vcmp.eq.s32.totalorder %v4945_v13, 6 }
 0x484   : > { %v5134_v0 = vpop.xlane.xlu1 %1097  ;;  %v5136_v1 = vpop.xlane.xlu0 %1095  ;;  %v1546_v57 = vcvt.s32.f32 %v1544_v44  ;;  %v1547_v20 = vcvt.s32.f32 %v1545_v60 }
 0x485   : > { %6946 = vst [vmem:[#allocation7_spill] sm:$0xff] %v5136_v1 }
 0x488   : > { %1509 = vadd.xlane.f32.xlu2 %v1507_v23  ;;  %v1602_v23 = vsel %vm1586_vm1, %v4884_v46, 0  ;;  %vm1599_vm1 = vcmp.eq.s32.totalorder %v5008_v59, 5 }
 0x489   : > { %1522 = vadd.xlane.f32.xlu1 %v1520_v35  ;;  %1511 = vadd.xlane.f32.xlu0 %v1508_v15  ;;  %v1601_v35 = vsel %vm1585_vm2, %v4875_v2, 0  ;;  %v1559_v15 = vcvt.s32.f32 %v1557_v61  ;;  %vm1737_vm2 = vcmp.eq.s32.totalorder %v4881_v45, 6 }
 0x48a   : > { %v1617_v29 = vadd.s32 %v1602_v23, %v1601_v35  ;;  %v1643_v23 = vadd.s32 %v1606_v42, %v1605_v12 }
 0x48b   : > { %v5143_v27 = vpop.xlane.xlu2 %1108 }
 0x48c   : > { %6947 = vst [vmem:[#allocation8_spill] sm:$0xff] %v5143_v27  ;;  %v5147_v17 = vpop.xlane.xlu1 %1121  ;;  %v5149_v24 = vpop.xlane.xlu0 %1110  ;;  %v1619_v3 = vshrl.u32 %v1617_v29, 16  ;;  %v1618_v19 = vand.u32 65535, %v1617_v29  ;;  %v1645_v12 = vshrl.u32 %v1643_v23, 16 }
 0x48d   : > { %6948 = vst [vmem:[#allocation9_spill] sm:$0xff] %v5147_v17 }
 0x48e   : > { %v1621_v61 = vcvt.s32.f32 %v1619_v3  ;;  %v1620_v60 = vcvt.s32.f32 %v1618_v19  ;;  %v1608_v3 = vsel %vm1592_vm7, %v4884_v46, 0  ;;  %vm1741_vm7 = vcmp.eq.s32.totalorder %v4925_v48, 6 }
 0x490   : > { %1524 = vadd.xlane.f32.xlu2 %v1521_v40 }
 0x491   : > { %1537 = vadd.xlane.f32.xlu1 %v1534_v56  ;;  %1535 = vadd.xlane.f32.xlu0 %v1533_v36  ;;  %v1603_v56 = vsel %vm1587_vm5, %v4875_v2, 0  ;;  %v1560_v36 = vcvt.s32.f32 %v1558_v21  ;;  %vm1742_vm5 = vcmp.eq.s32.totalorder %v4939_v52, 6 }
 0x492   : > { %v1630_v44 = vadd.s32 %v1604_v16, %v1603_v56  ;;  %v1607_v16 = vsel %vm1591_vm8, %v4875_v2, 0  ;;  %vm1743_vm8 = vcmp.eq.s32.totalorder %v4921_v55, 6 }
 0x493   : > { %v5155_v53 = vpop.xlane.xlu2 %1123 }
 0x494   : > { %v5158_v8 = vpop.xlane.xlu1 %1168  ;;  %v5160_v7 = vpop.xlane.xlu0 %1166 }
 0x498   : > { %1548 = vadd.xlane.f32.xlu2 %v1546_v57  ;;  %v1631_v57 = vand.u32 65535, %v1630_v44 }
 0x499   : > { %1561 = vadd.xlane.f32.xlu1 %v1559_v15  ;;  %1550 = vadd.xlane.f32.xlu0 %v1547_v20  ;;  %v1644_v15 = vand.u32 65535, %v1643_v23  ;;  %v1632_v20 = vshrl.u32 %v1630_v44, 16  ;;  %v1611_v23 = vsel %vm1595_vm12, %v4875_v2, 0  ;;  %vm1750_vm12 = vcmp.eq.s32.totalorder %v5015_v32, 6 }
 0x49a   : > { %v1633_v19 = vcvt.s32.f32 %v1631_v57  ;;  %v1610_v57 = vsel %vm1594_vm9, %v4884_v46, 0  ;;  %vm1746_vm9 = vcmp.eq.s32.totalorder %v4966_v18, 6 }
 0x49b   : > { %v5167_v31 = vpop.xlane.xlu2 %1179  ;;  %v1646_v42 = vcvt.s32.f32 %v1644_v15  ;;  %v1634_v56 = vcvt.s32.f32 %v1632_v20 }
 0x49c   : > { %v5171_v40 = vpop.xlane.xlu1 %1192  ;;  %v5173_v11 = vpop.xlane.xlu0 %1181 }
 0x4a0   : > { %1563 = vadd.xlane.f32.xlu2 %v1560_v36  ;;  %v1656_v36 = vadd.s32 %v1608_v3, %v1607_v16  ;;  %v1612_v3 = vsel %vm1596_vm10, %v4884_v46, 0  ;;  %v1647_v16 = vcvt.s32.f32 %v1645_v12  ;;  %vm1745_vm10 = vcmp.eq.s32.totalorder %v4958_v22, 6 }
 0x4a1   : > { %1624 = vadd.xlane.f32.xlu1 %v1621_v61  ;;  %1622 = vadd.xlane.f32.xlu0 %v1620_v60  ;;  %v1682_v50 = vadd.s32 %v1612_v3, %v1611_v23 }
 0x4a2   : > { %v1658_v61 = vshrl.u32 %v1656_v36, 16  ;;  %v1657_v60 = vand.u32 65535, %v1656_v36 }
 0x4a3   : > { %v5179_v35 = vpop.xlane.xlu2 %1194  ;;  %v1683_v49 = vand.u32 65535, %v1682_v50 }
 0x4a4   : > { %v5182_v29 = vpop.xlane.xlu1 %1207  ;;  %v5184_v21 = vpop.xlane.xlu0 %1205  ;;  %v1659_v38 = vcvt.s32.f32 %v1657_v60 }
 0x4a5   : > { %v1685_v3 = vcvt.s32.f32 %v1683_v49  ;;  %v1616_v49 = vsel %vm1600_vm15, %v4884_v46, 0  ;;  %vm1752_vm15 = vcmp.eq.s32.totalorder %v5020_v58, 6 }
 0x4a8   : > { %1635 = vadd.xlane.f32.xlu2 %v1633_v19  ;;  %v1609_v19 = vsel %vm1593_vm11, %v4875_v2, 0  ;;  %vm1748_vm11 = vcmp.eq.s32.totalorder %v4987_v5, 6 }
 0x4a9   : > { %1648 = vadd.xlane.f32.xlu1 %v1646_v42  ;;  %1637 = vadd.xlane.f32.xlu0 %v1634_v56  ;;  %v1669_v42 = vadd.s32 %v1610_v57, %v1609_v19  ;;  %v1660_v56 = vcvt.s32.f32 %v1658_v61  ;;  %v1614_v61 = vsel %vm1598_vm13, %v4884_v46, 0  ;;  %v1613_v57 = vsel %vm1597_vm14, %v4875_v2, 0 }
 0x4aa   : > { %v1695_v19 = vadd.s32 %v1614_v61, %v1613_v57  ;;  %v1754_v61 = vsel %vm1738_vm0, %v4884_v46, 0  ;;  %vm1747_vm13 = vcmp.eq.s32.totalorder %v4977_v4, 6  ;;  %vm1749_vm14 = vcmp.eq.s32.totalorder %v4992_v26, 6 }
 0x4ab   : > { %v5191_v44 = vpop.xlane.xlu2 %1218  ;;  %v1670_v36 = vand.u32 65535, %v1669_v42  ;;  %v1671_v27 = vshrl.u32 %v1669_v42, 16  ;;  %vm1751_vm0 = vcmp.eq.s32.totalorder %v5008_v59, 6 }
 0x4ac   : > { %v5195_v15 = vpop.xlane.xlu1 %1231  ;;  %v5197_v20 = vpop.xlane.xlu0 %1220  ;;  %v1697_v42 = vshrl.u32 %v1695_v19, 16 }
 0x4ad   : > { %6949 = vst [vmem:[#allocation10_spill] sm:$0xff] %v5195_v15  ;;  %v1672_v60 = vcvt.s32.f32 %v1670_v36 }
 0x4b0   : > { %1650 = vadd.xlane.f32.xlu2 %v1647_v16  ;;  %v1684_v16 = vshrl.u32 %v1682_v50, 16  ;;  %v1753_v50 = vsel %vm1737_vm2, %v4875_v2, 0  ;;  %vm1892_vm2 = vcmp.eq.s32.totalorder %v4909_v33, 7 }
 0x4b1   : > { %1663 = vadd.xlane.f32.xlu1 %v1660_v56  ;;  %1661 = vadd.xlane.f32.xlu0 %v1659_v38  ;;  %v1673_v38 = vcvt.s32.f32 %v1671_v27  ;;  %v1696_v56 = vand.u32 65535, %v1695_v19 }
 0x4b2   : > { %v1686_v57 = vcvt.s32.f32 %v1684_v16 }
 0x4b3   : > { %v5203_v17 = vpop.xlane.xlu2 %1233 }
 0x4b4   : > { %v5206_v39 = vpop.xlane.xlu1 %1246  ;;  %v5208_v12 = vpop.xlane.xlu0 %1244 }
 0x4b5   : > { %6950 = vst [vmem:[#allocation11_spill] sm:$0xff] %v5208_v12  ;;  %v1769_v12 = vadd.s32 %v1754_v61, %v1753_v50 }
 0x4b7   : > { %v1770_v1 = vand.u32 65535, %v1769_v12 }
 0x4b8   : > { %1674 = vadd.xlane.f32.xlu2 %v1672_v60  ;;  %v1615_v60 = vsel %vm1599_vm1, %v4875_v2, 0  ;;  %vm1890_vm1 = vcmp.eq.s32.totalorder %v4889_v28, 7 }
 0x4b9   : > { %1687 = vadd.xlane.f32.xlu1 %v1685_v3  ;;  %1676 = vadd.xlane.f32.xlu0 %v1673_v38  ;;  %v1708_v3 = vadd.s32 %v1616_v49, %v1615_v60  ;;  %v1699_v38 = vcvt.s32.f32 %v1697_v42  ;;  %v1756_v42 = vsel %vm1740_vm3, %v4884_v46, 0  ;;  %v1755_v49 = vsel %vm1739_vm4, %v4875_v2, 0 }
 0x4ba   : > { %v1772_v61 = vcvt.s32.f32 %v1770_v1  ;;  %v1782_v60 = vadd.s32 %v1756_v42, %v1755_v49  ;;  %v1758_v1 = vsel %vm1742_vm5, %v4884_v46, 0  ;;  %v1760_v42 = vsel %vm1744_vm6, %v4884_v46, 0 }
 0x4bb   : > { %v5215_v23 = vpop.xlane.xlu2 %1257  ;;  %v1709_v19 = vand.u32 65535, %v1708_v3  ;;  %v1710_v47 = vshrl.u32 %v1708_v3, 16  ;;  %vm1889_vm3 = vcmp.eq.s32.totalorder %v4881_v45, 7  ;;  %vm1891_vm4 = vcmp.eq.s32.totalorder %v4901_v34, 7 }
 0x4bc   : > { %6951 = vst [vmem:[#allocation12_spill] sm:$0xff] %v5215_v23  ;;  %v5219_v27 = vpop.xlane.xlu1 %1318  ;;  %v5221_v36 = vpop.xlane.xlu0 %1259  ;;  %v1698_v23 = vcvt.s32.f32 %v1696_v56  ;;  %v1784_v3 = vshrl.u32 %v1782_v60, 16  ;;  %vm1894_vm5 = vcmp.eq.s32.totalorder %v4939_v52, 7  ;;  %vm1893_vm6 = vcmp.eq.s32.totalorder %v4925_v48, 7 }
 0x4bd   : > { %6952 = vst [vmem:[#allocation13_spill] sm:$0xff] %v5219_v27  ;;  %v1711_v56 = vcvt.s32.f32 %v1709_v19 }
 0x4c0   : > { %1689 = vadd.xlane.f32.xlu2 %v1686_v57  ;;  %v1771_v57 = vshrl.u32 %v1769_v12, 16  ;;  %v1759_v12 = vsel %vm1743_vm8, %v4875_v2, 0  ;;  %vm1898_vm8 = vcmp.eq.s32.totalorder %v4966_v18, 7 }
 0x4c1   : > { %1702 = vadd.xlane.f32.xlu1 %v1699_v38  ;;  %1700 = vadd.xlane.f32.xlu0 %v1698_v23  ;;  %v1712_v23 = vcvt.s32.f32 %v1710_v47  ;;  %v1783_v38 = vand.u32 65535, %v1782_v60 }
 0x4c2   : > { %v1773_v49 = vcvt.s32.f32 %v1771_v57 }
 0x4c3   : > { %v5227_v27 = vpop.xlane.xlu2 %1320 }
 0x4c4   : > { %6953 = vst [vmem:[#allocation14_spill] sm:$0xff] %v5227_v27  ;;  %v5230_v15 = vpop.xlane.xlu1 %1333  ;;  %v5232_v16 = vpop.xlane.xlu0 %1331 }
 0x4c5   : > { %6954 = vst [vmem:[#allocation15_spill] sm:$0xff] %v5230_v15 }
 0x4c6   : > { %6955 = vst [vmem:[#allocation16_spill] sm:$0xff] %v5232_v16  ;;  %v1808_v16 = vadd.s32 %v1760_v42, %v1759_v12 }
 0x4c8   : > { %1713 = vadd.xlane.f32.xlu2 %v1711_v56  ;;  %v1757_v56 = vsel %vm1741_vm7, %v4875_v2, 0  ;;  %vm1896_vm7 = vcmp.eq.s32.totalorder %v4945_v13, 7 }
 0x4c9   : > { %1774 = vadd.xlane.f32.xlu1 %v1772_v61  ;;  %1715 = vadd.xlane.f32.xlu0 %v1712_v23  ;;  %v1795_v61 = vadd.s32 %v1758_v1, %v1757_v56  ;;  %v1786_v23 = vcvt.s32.f32 %v1784_v3  ;;  %v1762_v3 = vsel %vm1746_vm9, %v4884_v46, 0  ;;  %v1761_v1 = vsel %vm1745_vm10, %v4875_v2, 0 }
 0x4ca   : > { %v1821_v56 = vadd.s32 %v1762_v3, %v1761_v1  ;;  %v1766_v3 = vsel %vm1750_vm12, %v4884_v46, 0  ;;  %vm1895_vm9 = vcmp.eq.s32.totalorder %v4921_v55, 7  ;;  %vm1897_vm10 = vcmp.eq.s32.totalorder %v4958_v22, 7 }
 0x4cb   : > { %v5239_v50 = vpop.xlane.xlu2 %1344  ;;  %v1796_v60 = vand.u32 65535, %v1795_v61  ;;  %v1797_v15 = vshrl.u32 %v1795_v61, 16  ;;  %vm1899_vm12 = vcmp.eq.s32.totalorder %v4977_v4, 7 }
 0x4cc   : > { %6956 = vst [vmem:[#allocation17_spill] sm:$0xff] %v5239_v50  ;;  %v5243_v47 = vpop.xlane.xlu1 %1357  ;;  %v5245_v19 = vpop.xlane.xlu0 %1346  ;;  %v1785_v50 = vcvt.s32.f32 %v1783_v38  ;;  %v1823_v61 = vshrl.u32 %v1821_v56, 16 }
 0x4cd   : > { %6957 = vst [vmem:[#allocation18_spill] sm:$0xff] %v5243_v47  ;;  %v1798_v38 = vcvt.s32.f32 %v1796_v60 }
 0x4ce   : > { %6958 = vst [vmem:[#allocation19_spill] sm:$0xff] %v5245_v19  ;;  %v1809_v19 = vand.u32 65535, %v1808_v16 }
 0x4d0   : > { %1776 = vadd.xlane.f32.xlu2 %v1773_v49  ;;  %v1811_v42 = vcvt.s32.f32 %v1809_v19  ;;  %v1810_v49 = vshrl.u32 %v1808_v16, 16  ;;  %v1764_v19 = vsel %vm1748_vm11, %v4884_v46, 0  ;;  %v1765_v16 = vsel %vm1749_vm14, %v4875_v2, 0 }
 0x4d1   : > { %1789 = vadd.xlane.f32.xlu1 %v1786_v23  ;;  %1787 = vadd.xlane.f32.xlu0 %v1785_v50  ;;  %v1799_v50 = vcvt.s32.f32 %v1797_v15  ;;  %v1822_v23 = vand.u32 65535, %v1821_v56  ;;  %vm1900_vm11 = vcmp.eq.s32.totalorder %v4987_v5, 7  ;;  %vm1904_vm14 = vcmp.eq.s32.totalorder %v5020_v58, 7 }
 0x4d2   : > { %v1812_v1 = vcvt.s32.f32 %v1810_v49 }
 0x4d3   : > { %v5251_v47 = vpop.xlane.xlu2 %1359 }
 0x4d4   : > { %6959 = vst [vmem:[#allocation20_spill] sm:$0xff] %v5251_v47  ;;  %v5254_v27 = vpop.xlane.xlu1 %1372  ;;  %v5256_v57 = vpop.xlane.xlu0 %1370 }
 0x4d5   : > { %6960 = vst [vmem:[#allocation21_spill] sm:$0xff] %v5254_v27 }
 0x4d6   : > { %6961 = vst [vmem:[#allocation22_spill] sm:$0xff] %v5256_v57  ;;  %v1847_v57 = vadd.s32 %v1766_v3, %v1765_v16 }
 0x4d8   : > { %1800 = vadd.xlane.f32.xlu2 %v1798_v38  ;;  %v1763_v38 = vsel %vm1747_vm13, %v4875_v2, 0  ;;  %vm1902_vm13 = vcmp.eq.s32.totalorder %v5015_v32, 7 }
 0x4d9   : > { %1813 = vadd.xlane.f32.xlu1 %v1811_v42  ;;  %1802 = vadd.xlane.f32.xlu0 %v1799_v50  ;;  %v1834_v42 = vadd.s32 %v1764_v19, %v1763_v38  ;;  %v1825_v50 = vcvt.s32.f32 %v1823_v61  ;;  %v1768_v61 = vsel %vm1752_vm15, %v4884_v46, 0  ;;  %v1767_v19 = vsel %vm1751_vm0, %v4875_v2, 0 }
 0x4da   : > { %v1860_v38 = vadd.s32 %v1768_v61, %v1767_v19  ;;  %v1908_v61 = vsel %vm1892_vm2, %v4884_v46, 0  ;;  %vm1901_vm15 = vcmp.eq.s32.totalorder %v4992_v26, 7  ;;  %vm1903_vm0 = vcmp.eq.s32.totalorder %v5008_v59, 7 }
 0x4db   : > { %v5263_v12 = vpop.xlane.xlu2 %1383  ;;  %v1835_v56 = vand.u32 65535, %v1834_v42  ;;  %v1836_v27 = vshrl.u32 %v1834_v42, 16  ;;  %vm2041_vm2 = vcmp.eq.s32.totalorder %v4881_v45, 8 }
 0x4dc   : > { %6962 = vst [vmem:[#allocation23_spill] sm:$0xff] %v5263_v12  ;;  %v5267_v15 = vpop.xlane.xlu1 %1396  ;;  %v5269_v60 = vpop.xlane.xlu0 %1385  ;;  %v1824_v12 = vcvt.s32.f32 %v1822_v23  ;;  %v1862_v42 = vshrl.u32 %v1860_v38, 16 }
 0x4dd   : > { %6963 = vst [vmem:[#allocation24_spill] sm:$0xff] %v5267_v15  ;;  %v1837_v23 = vcvt.s32.f32 %v1835_v56 }
 0x4de   : > { %6964 = vst [vmem:[#allocation25_spill] sm:$0xff] %v5269_v60  ;;  %v1848_v60 = vand.u32 65535, %v1847_v57 }
 0x4e0   : > { %1815 = vadd.xlane.f32.xlu2 %v1812_v1  ;;  %v1850_v3 = vcvt.s32.f32 %v1848_v60  ;;  %v1849_v1 = vshrl.u32 %v1847_v57, 16  ;;  %v1906_v60 = vsel %vm1890_vm1, %v4884_v46, 0  ;;  %v1907_v57 = vsel %vm1891_vm4, %v4875_v2, 0 }
 0x4e1   : > { %1828 = vadd.xlane.f32.xlu1 %v1825_v50  ;;  %1826 = vadd.xlane.f32.xlu0 %v1824_v12  ;;  %v1838_v12 = vcvt.s32.f32 %v1836_v27  ;;  %v1861_v50 = vand.u32 65535, %v1860_v38  ;;  %vm2042_vm1 = vcmp.eq.s32.totalorder %v4889_v28, 8  ;;  %vm2046_vm4 = vcmp.eq.s32.totalorder %v4939_v52, 8 }
 0x4e2   : > { %v1851_v19 = vcvt.s32.f32 %v1849_v1 }
 0x4e3   : > { %v5275_v15 = vpop.xlane.xlu2 %1398 }
 0x4e4   : > { %6965 = vst [vmem:[#allocation26_spill] sm:$0xff] %v5275_v15  ;;  %v5278_v47 = vpop.xlane.xlu1 %1411  ;;  %v5280_v49 = vpop.xlane.xlu0 %1409 }
 0x4e5   : > { %6966 = vst [vmem:[#allocation27_spill] sm:$0xff] %v5278_v47 }
 0x4e6   : > { %6967 = vst [vmem:[#allocation28_spill] sm:$0xff] %v5280_v49  ;;  %v1934_v49 = vadd.s32 %v1908_v61, %v1907_v57 }
 0x4e8   : > { %1839 = vadd.xlane.f32.xlu2 %v1837_v23  ;;  %v1905_v23 = vsel %vm1889_vm3, %v4875_v2, 0  ;;  %vm2044_vm3 = vcmp.eq.s32.totalorder %v4909_v33, 8 }
 0x4e9   : > { %1852 = vadd.xlane.f32.xlu1 %v1850_v3  ;;  %1841 = vadd.xlane.f32.xlu0 %v1838_v12  ;;  %v1921_v3 = vadd.s32 %v1906_v60, %v1905_v23  ;;  %v1864_v12 = vcvt.s32.f32 %v1862_v42  ;;  %v1910_v42 = vsel %vm1894_vm5, %v4884_v46, 0  ;;  %v1909_v60 = vsel %vm1893_vm6, %v4875_v2, 0 }
 0x4ea   : > { %v1947_v23 = vadd.s32 %v1910_v42, %v1909_v60  ;;  %v1914_v42 = vsel %vm1898_vm8, %v4884_v46, 0  ;;  %vm2043_vm5 = vcmp.eq.s32.totalorder %v4901_v34, 8  ;;  %vm2045_vm6 = vcmp.eq.s32.totalorder %v4925_v48, 8 }
 0x4eb   : > { %v5287_v16 = vpop.xlane.xlu2 %1470  ;;  %v1922_v38 = vand.u32 65535, %v1921_v3  ;;  %v1923_v47 = vshrl.u32 %v1921_v3, 16  ;;  %vm2047_vm8 = vcmp.eq.s32.totalorder %v4921_v55, 8 }
 0x4ec   : > { %6968 = vst [vmem:[#allocation29_spill] sm:$0xff] %v5287_v16  ;;  %v5291_v27 = vpop.xlane.xlu1 %1483  ;;  %v5293_v56 = vpop.xlane.xlu0 %1472  ;;  %v1863_v16 = vcvt.s32.f32 %v1861_v50  ;;  %v1949_v3 = vshrl.u32 %v1947_v23, 16 }
 0x4ed   : > { %6969 = vst [vmem:[#allocation30_spill] sm:$0xff] %v5291_v27  ;;  %v1924_v50 = vcvt.s32.f32 %v1922_v38 }
 0x4ee   : > { %6970 = vst [vmem:[#allocation31_spill] sm:$0xff] %v5293_v56  ;;  %v1935_v56 = vand.u32 65535, %v1934_v49 }
 0x4f0   : > { %1854 = vadd.xlane.f32.xlu2 %v1851_v19  ;;  %v1937_v61 = vcvt.s32.f32 %v1935_v56  ;;  %v1936_v19 = vshrl.u32 %v1934_v49, 16  ;;  %v1912_v56 = vsel %vm1896_vm7, %v4884_v46, 0  ;;  %v1913_v49 = vsel %vm1897_vm10, %v4875_v2, 0 }
 0x4f1   : > { %1867 = vadd.xlane.f32.xlu1 %v1864_v12  ;;  %1865 = vadd.xlane.f32.xlu0 %v1863_v16  ;;  %v1925_v16 = vcvt.s32.f32 %v1923_v47  ;;  %v1948_v12 = vand.u32 65535, %v1947_v23  ;;  %vm2048_vm7 = vcmp.eq.s32.totalorder %v4945_v13, 8  ;;  %vm2052_vm10 = vcmp.eq.s32.totalorder %v4987_v5, 8 }
 0x4f2   : > { %v1938_v60 = vcvt.s32.f32 %v1936_v19 }
 0x4f3   : > { %v5299_v27 = vpop.xlane.xlu2 %1485 }
 0x4f4   : > { %6971 = vst [vmem:[#allocation32_spill] sm:$0xff] %v5299_v27  ;;  %v5302_v15 = vpop.xlane.xlu1 %1498  ;;  %v5304_v1 = vpop.xlane.xlu0 %1496 }
 0x4f5   : > { %6972 = vst [vmem:[#allocation33_spill] sm:$0xff] %v5302_v15 }
 0x4f6   : > { %6973 = vst [vmem:[#allocation34_spill] sm:$0xff] %v5304_v1  ;;  %v1973_v1 = vadd.s32 %v1914_v42, %v1913_v49 }
 0x4f8   : > { %1926 = vadd.xlane.f32.xlu2 %v1924_v50  ;;  %v1911_v50 = vsel %vm1895_vm9, %v4875_v2, 0  ;;  %vm2050_vm9 = vcmp.eq.s32.totalorder %v4966_v18, 8 }
 0x4f9   : > { %1939 = vadd.xlane.f32.xlu1 %v1937_v61  ;;  %1928 = vadd.xlane.f32.xlu0 %v1925_v16  ;;  %v1960_v61 = vadd.s32 %v1912_v56, %v1911_v50  ;;  %v1951_v16 = vcvt.s32.f32 %v1949_v3  ;;  %v1916_v3 = vsel %vm1900_vm11, %v4884_v46, 0  ;;  %v1915_v56 = vsel %vm1899_vm12, %v4875_v2, 0 }
 0x4fa   : > { %v1986_v50 = vadd.s32 %v1916_v3, %v1915_v56  ;;  %v1920_v3 = vsel %vm1904_vm14, %v4884_v46, 0  ;;  %vm2049_vm11 = vcmp.eq.s32.totalorder %v4958_v22, 8  ;;  %vm2051_vm12 = vcmp.eq.s32.totalorder %v4977_v4, 8 }
 0x4fb   : > { %v5311_v57 = vpop.xlane.xlu2 %1509  ;;  %v1961_v23 = vand.u32 65535, %v1960_v61  ;;  %v1962_v15 = vshrl.u32 %v1960_v61, 16  ;;  %vm2053_vm14 = vcmp.eq.s32.totalorder %v4992_v26, 8 }
 0x4fc   : > { %6974 = vst [vmem:[#allocation35_spill] sm:$0xff] %v5311_v57  ;;  %v5315_v47 = vpop.xlane.xlu1 %1522  ;;  %v5317_v38 = vpop.xlane.xlu0 %1511  ;;  %v1950_v57 = vcvt.s32.f32 %v1948_v12  ;;  %v1988_v61 = vshrl.u32 %v1986_v50, 16 }
 0x4fd   : > { %6975 = vst [vmem:[#allocation36_spill] sm:$0xff] %v5315_v47  ;;  %v1963_v12 = vcvt.s32.f32 %v1961_v23 }
 0x4fe   : > { %6976 = vst [vmem:[#allocation37_spill] sm:$0xff] %v5317_v38  ;;  %v1974_v38 = vand.u32 65535, %v1973_v1 }
 0x500   : > { %1941 = vadd.xlane.f32.xlu2 %v1938_v60  ;;  %v1976_v42 = vcvt.s32.f32 %v1974_v38  ;;  %v1975_v60 = vshrl.u32 %v1973_v1, 16  ;;  %v1918_v38 = vsel %vm1902_vm13, %v4884_v46, 0  ;;  %v1919_v1 = vsel %vm1903_vm0, %v4875_v2, 0 }
 0x501   : > { %1954 = vadd.xlane.f32.xlu1 %v1951_v16  ;;  %1952 = vadd.xlane.f32.xlu0 %v1950_v57  ;;  %v1964_v57 = vcvt.s32.f32 %v1962_v15  ;;  %v1987_v16 = vand.u32 65535, %v1986_v50  ;;  %vm2054_vm13 = vcmp.eq.s32.totalorder %v5015_v32, 8  ;;  %vm2194_vm0 = vcmp.eq.s32.totalorder %v4889_v28, 9 }
 0x502   : > { %v1977_v56 = vcvt.s32.f32 %v1975_v60 }
 0x503   : > { %v5323_v47 = vpop.xlane.xlu2 %1524 }
 0x504   : > { %6977 = vst [vmem:[#allocation38_spill] sm:$0xff] %v5323_v47  ;;  %v5326_v27 = vpop.xlane.xlu1 %1537  ;;  %v5328_v19 = vpop.xlane.xlu0 %1535 }
 0x505   : > { %6978 = vst [vmem:[#allocation39_spill] sm:$0xff] %v5326_v27 }
 0x506   : > { %6979 = vst [vmem:[#allocation40_spill] sm:$0xff] %v5328_v19  ;;  %v2012_v19 = vadd.s32 %v1920_v3, %v1919_v1 }
 0x508   : > { %1965 = vadd.xlane.f32.xlu2 %v1963_v12  ;;  %v1917_v12 = vsel %vm1901_vm15, %v4875_v2, 0  ;;  %vm2056_vm15 = vcmp.eq.s32.totalorder %v5020_v58, 8 }
 0x509   : > { %1978 = vadd.xlane.f32.xlu1 %v1976_v42  ;;  %1967 = vadd.xlane.f32.xlu0 %v1964_v57  ;;  %v1999_v42 = vadd.s32 %v1918_v38, %v1917_v12  ;;  %v1990_v57 = vcvt.s32.f32 %v1988_v61  ;;  %v2058_v61 = vsel %vm2042_vm1, %v4884_v46, 0  ;;  %v2057_v38 = vsel %vm2041_vm2, %v4875_v2, 0 }
 0x50a   : > { %v2073_v12 = vadd.s32 %v2058_v61, %v2057_v38  ;;  %v2062_v61 = vsel %vm2046_vm4, %v4884_v46, 0  ;;  %vm2055_vm1 = vcmp.eq.s32.totalorder %v5008_v59, 8  ;;  %vm2193_vm2 = vcmp.eq.s32.totalorder %v4881_v45, 9 }
 0x50b   : > { %v5335_v49 = vpop.xlane.xlu2 %1548  ;;  %v2000_v50 = vand.u32 65535, %v1999_v42  ;;  %v2001_v27 = vshrl.u32 %v1999_v42, 16  ;;  %vm2195_vm4 = vcmp.eq.s32.totalorder %v4901_v34, 9 }
 0x50c   : > { %6980 = vst [vmem:[#allocation41_spill] sm:$0xff] %v5335_v49  ;;  %v5339_v15 = vpop.xlane.xlu1 %1561  ;;  %v5341_v23 = vpop.xlane.xlu0 %1550  ;;  %v1989_v49 = vcvt.s32.f32 %v1987_v16  ;;  %v2075_v42 = vshrl.u32 %v2073_v12, 16 }
 0x50d   : > { %6981 = vst [vmem:[#allocation42_spill] sm:$0xff] %v5339_v15  ;;  %v2002_v16 = vcvt.s32.f32 %v2000_v50 }
 0x50e   : > { %6982 = vst [vmem:[#allocation43_spill] sm:$0xff] %v5341_v23  ;;  %v2013_v23 = vand.u32 65535, %v2012_v19 }
 0x510   : > { %1980 = vadd.xlane.f32.xlu2 %v1977_v56  ;;  %v2015_v3 = vcvt.s32.f32 %v2013_v23  ;;  %v2014_v56 = vshrl.u32 %v2012_v19, 16  ;;  %v2060_v23 = vsel %vm2044_vm3, %v4884_v46, 0  ;;  %v2061_v19 = vsel %vm2045_vm6, %v4875_v2, 0 }
 0x511   : > { %1993 = vadd.xlane.f32.xlu1 %v1990_v57  ;;  %1991 = vadd.xlane.f32.xlu0 %v1989_v49  ;;  %v2003_v49 = vcvt.s32.f32 %v2001_v27  ;;  %v2074_v57 = vand.u32 65535, %v2073_v12  ;;  %vm2196_vm3 = vcmp.eq.s32.totalorder %v4909_v33, 9  ;;  %vm2200_vm6 = vcmp.eq.s32.totalorder %v4945_v13, 9 }
 0x512   : > { %v2016_v38 = vcvt.s32.f32 %v2014_v56 }
 0x513   : > { %v5347_v15 = vpop.xlane.xlu2 %1563 }
 0x514   : > { %6983 = vst [vmem:[#allocation44_spill] sm:$0xff] %v5347_v15  ;;  %v5350_v47 = vpop.xlane.xlu1 %1624  ;;  %v5352_v60 = vpop.xlane.xlu0 %1622 }
 0x515   : > { %6984 = vst [vmem:[#allocation45_spill] sm:$0xff] %v5350_v47 }
 0x516   : > { %6985 = vst [vmem:[#allocation46_spill] sm:$0xff] %v5352_v60  ;;  %v2099_v60 = vadd.s32 %v2062_v61, %v2061_v19 }
 0x518   : > { %2004 = vadd.xlane.f32.xlu2 %v2002_v16  ;;  %v2059_v16 = vsel %vm2043_vm5, %v4875_v2, 0  ;;  %vm2198_vm5 = vcmp.eq.s32.totalorder %v4939_v52, 9 }
 0x519   : > { %2017 = vadd.xlane.f32.xlu1 %v2015_v3  ;;  %2006 = vadd.xlane.f32.xlu0 %v2003_v49  ;;  %v2086_v3 = vadd.s32 %v2060_v23, %v2059_v16  ;;  %v2077_v49 = vcvt.s32.f32 %v2075_v42  ;;  %v2064_v42 = vsel %vm2048_vm7, %v4884_v46, 0  ;;  %v2063_v23 = vsel %vm2047_vm8, %v4875_v2, 0 }
 0x51a   : > { %v2112_v16 = vadd.s32 %v2064_v42, %v2063_v23  ;;  %v2068_v42 = vsel %vm2052_vm10, %v4884_v46, 0  ;;  %vm2197_vm7 = vcmp.eq.s32.totalorder %v4925_v48, 9  ;;  %vm2199_vm8 = vcmp.eq.s32.totalorder %v4921_v55, 9 }
 0x51b   : > { %v5359_v1 = vpop.xlane.xlu2 %1635  ;;  %v2087_v12 = vand.u32 65535, %v2086_v3  ;;  %v2088_v47 = vshrl.u32 %v2086_v3, 16  ;;  %vm2201_vm10 = vcmp.eq.s32.totalorder %v4958_v22, 9 }
 0x51c   : > { %6986 = vst [vmem:[#allocation47_spill] sm:$0xff] %v5359_v1  ;;  %v5363_v27 = vpop.xlane.xlu1 %1648  ;;  %v5365_v50 = vpop.xlane.xlu0 %1637  ;;  %v2076_v1 = vcvt.s32.f32 %v2074_v57  ;;  %v2114_v3 = vshrl.u32 %v2112_v16, 16 }
 0x51d   : > { %6987 = vst [vmem:[#allocation48_spill] sm:$0xff] %v5363_v27  ;;  %v2089_v57 = vcvt.s32.f32 %v2087_v12 }
 0x51e   : > { %6988 = vst [vmem:[#allocation49_spill] sm:$0xff] %v5365_v50  ;;  %v2100_v50 = vand.u32 65535, %v2099_v60 }
 0x520   : > { %2019 = vadd.xlane.f32.xlu2 %v2016_v38  ;;  %v2102_v61 = vcvt.s32.f32 %v2100_v50  ;;  %v2101_v38 = vshrl.u32 %v2099_v60, 16  ;;  %v2066_v50 = vsel %vm2050_vm9, %v4884_v46, 0  ;;  %v2067_v60 = vsel %vm2051_vm12, %v4875_v2, 0 }
 0x521   : > { %2080 = vadd.xlane.f32.xlu1 %v2077_v49  ;;  %2078 = vadd.xlane.f32.xlu0 %v2076_v1  ;;  %v2090_v1 = vcvt.s32.f32 %v2088_v47  ;;  %v2113_v49 = vand.u32 65535, %v2112_v16  ;;  %vm2202_vm9 = vcmp.eq.s32.totalorder %v4966_v18, 9  ;;  %vm2206_vm12 = vcmp.eq.s32.totalorder %v5015_v32, 9 }
 0x522   : > { %v2103_v23 = vcvt.s32.f32 %v2101_v38 }
 0x523   : > { %v5371_v27 = vpop.xlane.xlu2 %1650 }
 0x524   : > { %6989 = vst [vmem:[#allocation50_spill] sm:$0xff] %v5371_v27  ;;  %v5374_v15 = vpop.xlane.xlu1 %1663  ;;  %v5376_v56 = vpop.xlane.xlu0 %1661 }
 0x525   : > { %6990 = vst [vmem:[#allocation51_spill] sm:$0xff] %v5374_v15 }
 0x526   : > { %6991 = vst [vmem:[#allocation52_spill] sm:$0xff] %v5376_v56  ;;  %v2138_v56 = vadd.s32 %v2068_v42, %v2067_v60 }
 0x528   : > { %2091 = vadd.xlane.f32.xlu2 %v2089_v57  ;;  %v2065_v57 = vsel %vm2049_vm11, %v4875_v2, 0  ;;  %vm2204_vm11 = vcmp.eq.s32.totalorder %v4987_v5, 9 }
 0x529   : > { %2104 = vadd.xlane.f32.xlu1 %v2102_v61  ;;  %2093 = vadd.xlane.f32.xlu0 %v2090_v1  ;;  %v2125_v61 = vadd.s32 %v2066_v50, %v2065_v57  ;;  %v2116_v1 = vcvt.s32.f32 %v2114_v3  ;;  %v2070_v3 = vsel %vm2054_vm13, %v4884_v46, 0  ;;  %v2069_v50 = vsel %vm2053_vm14, %v4875_v2, 0 }
 0x52a   : > { %v2151_v57 = vadd.s32 %v2070_v3, %v2069_v50  ;;  %v2210_v3 = vsel %vm2194_vm0, %v4884_v46, 0  ;;  %vm2203_vm13 = vcmp.eq.s32.totalorder %v4977_v4, 9  ;;  %vm2205_vm14 = vcmp.eq.s32.totalorder %v4992_v26, 9 }
 0x52b   : > { %v5383_v19 = vpop.xlane.xlu2 %1674  ;;  %v2126_v16 = vand.u32 65535, %v2125_v61  ;;  %v2127_v15 = vshrl.u32 %v2125_v61, 16  ;;  %vm2207_vm0 = vcmp.eq.s32.totalorder %v5008_v59, 9 }
 0x52c   : > { %6992 = vst [vmem:[#allocation53_spill] sm:$0xff] %v5383_v19  ;;  %v5387_v47 = vpop.xlane.xlu1 %1687  ;;  %v5389_v12 = vpop.xlane.xlu0 %1676  ;;  %v2115_v19 = vcvt.s32.f32 %v2113_v49  ;;  %v2153_v61 = vshrl.u32 %v2151_v57, 16 }
 0x52d   : > { %6993 = vst [vmem:[#allocation54_spill] sm:$0xff] %v5387_v47  ;;  %v2128_v49 = vcvt.s32.f32 %v2126_v16 }
 0x52e   : > { %6994 = vst [vmem:[#allocation55_spill] sm:$0xff] %v5389_v12  ;;  %v2139_v12 = vand.u32 65535, %v2138_v56 }
 0x530   : > { %2106 = vadd.xlane.f32.xlu2 %v2103_v23  ;;  %v2141_v42 = vcvt.s32.f32 %v2139_v12  ;;  %v2140_v23 = vshrl.u32 %v2138_v56, 16  ;;  %v2072_v12 = vsel %vm2056_vm15, %v4884_v46, 0  ;;  %v2209_v56 = vsel %vm2193_vm2, %v4875_v2, 0 }
 0x531   : > { %2119 = vadd.xlane.f32.xlu1 %v2116_v1  ;;  %2117 = vadd.xlane.f32.xlu0 %v2115_v19  ;;  %v2129_v19 = vcvt.s32.f32 %v2127_v15  ;;  %v2152_v1 = vand.u32 65535, %v2151_v57  ;;  %vm2208_vm15 = vcmp.eq.s32.totalorder %v5020_v58, 9  ;;  %vm2348_vm2 = vcmp.eq.s32.totalorder %v4909_v33, 10 }
 0x532   : > { %v2142_v50 = vcvt.s32.f32 %v2140_v23 }
 0x533   : > { %v5395_v47 = vpop.xlane.xlu2 %1689 }
 0x534   : > { %6995 = vst [vmem:[#allocation56_spill] sm:$0xff] %v5395_v47  ;;  %v5398_v27 = vpop.xlane.xlu1 %1702  ;;  %v5400_v38 = vpop.xlane.xlu0 %1700 }
 0x535   : > { %6996 = vst [vmem:[#allocation57_spill] sm:$0xff] %v5398_v27 }
 0x536   : > { %6997 = vst [vmem:[#allocation58_spill] sm:$0xff] %v5400_v38  ;;  %v2225_v38 = vadd.s32 %v2210_v3, %v2209_v56 }
 0x538   : > { %2130 = vadd.xlane.f32.xlu2 %v2128_v49  ;;  %v2071_v49 = vsel %vm2055_vm1, %v4875_v2, 0  ;;  %vm2346_vm1 = vcmp.eq.s32.totalorder %v4889_v28, 10 }
 0x539   : > { %2143 = vadd.xlane.f32.xlu1 %v2141_v42  ;;  %2132 = vadd.xlane.f32.xlu0 %v2129_v19  ;;  %v2164_v42 = vadd.s32 %v2072_v12, %v2071_v49  ;;  %v2155_v19 = vcvt.s32.f32 %v2153_v61  ;;  %v2212_v61 = vsel %vm2196_vm3, %v4884_v46, 0  ;;  %v2211_v12 = vsel %vm2195_vm4, %v4875_v2, 0 }
 0x53a   : > { %v2238_v49 = vadd.s32 %v2212_v61, %v2211_v12  ;;  %v2216_v61 = vsel %vm2200_vm6, %v4884_v46, 0  ;;  %vm2345_vm3 = vcmp.eq.s32.totalorder %v4881_v45, 10  ;;  %vm2347_vm4 = vcmp.eq.s32.totalorder %v4901_v34, 10 }
 0x53b   : > { %v5407_v60 = vpop.xlane.xlu2 %1713  ;;  %v2165_v57 = vand.u32 65535, %v2164_v42  ;;  %v2166_v27 = vshrl.u32 %v2164_v42, 16  ;;  %vm2349_vm6 = vcmp.eq.s32.totalorder %v4925_v48, 10 }
 0x53c   : > { %6998 = vst [vmem:[#allocation59_spill] sm:$0xff] %v5407_v60  ;;  %v5411_v15 = vpop.xlane.xlu1 %1774  ;;  %v5413_v16 = vpop.xlane.xlu0 %1715  ;;  %v2154_v60 = vcvt.s32.f32 %v2152_v1  ;;  %v2240_v42 = vshrl.u32 %v2238_v49, 16 }
 0x53d   : > { %6999 = vst [vmem:[#allocation60_spill] sm:$0xff] %v5411_v15  ;;  %v2167_v1 = vcvt.s32.f32 %v2165_v57 }
 0x53e   : > { %7000 = vst [vmem:[#allocation61_spill] sm:$0xff] %v5413_v16  ;;  %v2226_v16 = vand.u32 65535, %v2225_v38 }
 0x540   : > { %2145 = vadd.xlane.f32.xlu2 %v2142_v50  ;;  %v2228_v3 = vcvt.s32.f32 %v2226_v16  ;;  %v2227_v50 = vshrl.u32 %v2225_v38, 16  ;;  %v2214_v16 = vsel %vm2198_vm5, %v4884_v46, 0  ;;  %v2215_v38 = vsel %vm2199_vm8, %v4875_v2, 0 }
 0x541   : > { %2158 = vadd.xlane.f32.xlu1 %v2155_v19  ;;  %2156 = vadd.xlane.f32.xlu0 %v2154_v60  ;;  %v2168_v60 = vcvt.s32.f32 %v2166_v27  ;;  %v2239_v19 = vand.u32 65535, %v2238_v49  ;;  %vm2350_vm5 = vcmp.eq.s32.totalorder %v4939_v52, 10  ;;  %vm2354_vm8 = vcmp.eq.s32.totalorder %v4966_v18, 10 }
 0x542   : > { %v2229_v12 = vcvt.s32.f32 %v2227_v50 }
 0x543   : > { %v5419_v15 = vpop.xlane.xlu2 %1776 }
 0x544   : > { %7001 = vst [vmem:[#allocation62_spill] sm:$0xff] %v5419_v15  ;;  %v5422_v47 = vpop.xlane.xlu1 %1789  ;;  %v5424_v23 = vpop.xlane.xlu0 %1787 }
 0x545   : > { %7002 = vst [vmem:[#allocation63_spill] sm:$0xff] %v5422_v47 }
 0x546   : > { %7003 = vst [vmem:[#allocation64_spill] sm:$0xff] %v5424_v23  ;;  %v2264_v23 = vadd.s32 %v2216_v61, %v2215_v38 }
 0x548   : > { %2169 = vadd.xlane.f32.xlu2 %v2167_v1  ;;  %v2213_v1 = vsel %vm2197_vm7, %v4875_v2, 0  ;;  %vm2352_vm7 = vcmp.eq.s32.totalorder %v4945_v13, 10 }
 0x549   : > { %2230 = vadd.xlane.f32.xlu1 %v2228_v3  ;;  %2171 = vadd.xlane.f32.xlu0 %v2168_v60  ;;  %v2251_v3 = vadd.s32 %v2214_v16, %v2213_v1  ;;  %v2242_v60 = vcvt.s32.f32 %v2240_v42  ;;  %v2218_v42 = vsel %vm2202_vm9, %v4884_v46, 0  ;;  %v2217_v16 = vsel %vm2201_vm10, %v4875_v2, 0 }
 0x54a   : > { %v2277_v1 = vadd.s32 %v2218_v42, %v2217_v16  ;;  %v2222_v42 = vsel %vm2206_vm12, %v4884_v46, 0  ;;  %vm2351_vm9 = vcmp.eq.s32.totalorder %v4921_v55, 10  ;;  %vm2353_vm10 = vcmp.eq.s32.totalorder %v4958_v22, 10 }
 0x54b   : > { %v5431_v56 = vpop.xlane.xlu2 %1800  ;;  %v2252_v49 = vand.u32 65535, %v2251_v3  ;;  %v2253_v47 = vshrl.u32 %v2251_v3, 16  ;;  %vm2355_vm12 = vcmp.eq.s32.totalorder %v4977_v4, 10 }
 0x54c   : > { %7004 = vst [vmem:[#allocation65_spill] sm:$0xff] %v5431_v56  ;;  %v5435_v27 = vpop.xlane.xlu1 %1813  ;;  %v5437_v57 = vpop.xlane.xlu0 %1802  ;;  %v2241_v56 = vcvt.s32.f32 %v2239_v19  ;;  %v2279_v3 = vshrl.u32 %v2277_v1, 16 }
 0x54d   : > { %7005 = vst [vmem:[#allocation66_spill] sm:$0xff] %v5435_v27  ;;  %v2254_v19 = vcvt.s32.f32 %v2252_v49 }
 0x54e   : > { %7006 = vst [vmem:[#allocation67_spill] sm:$0xff] %v5437_v57  ;;  %v2265_v57 = vand.u32 65535, %v2264_v23 }
 0x550   : > { %2232 = vadd.xlane.f32.xlu2 %v2229_v12  ;;  %v2267_v61 = vcvt.s32.f32 %v2265_v57  ;;  %v2266_v12 = vshrl.u32 %v2264_v23, 16  ;;  %v2220_v57 = vsel %vm2204_vm11, %v4884_v46, 0  ;;  %v2221_v23 = vsel %vm2205_vm14, %v4875_v2, 0 }
 0x551   : > { %2245 = vadd.xlane.f32.xlu1 %v2242_v60  ;;  %2243 = vadd.xlane.f32.xlu0 %v2241_v56  ;;  %v2255_v56 = vcvt.s32.f32 %v2253_v47  ;;  %v2278_v60 = vand.u32 65535, %v2277_v1  ;;  %vm2356_vm11 = vcmp.eq.s32.totalorder %v4987_v5, 10  ;;  %vm2360_vm14 = vcmp.eq.s32.totalorder %v5020_v58, 10 }
 0x552   : > { %v2268_v16 = vcvt.s32.f32 %v2266_v12 }
 0x553   : > { %v5443_v27 = vpop.xlane.xlu2 %1815 }
 0x554   : > { %7007 = vst [vmem:[#allocation68_spill] sm:$0xff] %v5443_v27  ;;  %v5446_v15 = vpop.xlane.xlu1 %1828  ;;  %v5448_v50 = vpop.xlane.xlu0 %1826 }
 0x555   : > { %7008 = vst [vmem:[#allocation69_spill] sm:$0xff] %v5446_v15 }
 0x556   : > { %7009 = vst [vmem:[#allocation70_spill] sm:$0xff] %v5448_v50  ;;  %v2303_v50 = vadd.s32 %v2222_v42, %v2221_v23 }
 0x558   : > { %2256 = vadd.xlane.f32.xlu2 %v2254_v19  ;;  %v2219_v19 = vsel %vm2203_vm13, %v4875_v2, 0  ;;  %vm2358_vm13 = vcmp.eq.s32.totalorder %v5015_v32, 10 }
 0x559   : > { %2269 = vadd.xlane.f32.xlu1 %v2267_v61  ;;  %2258 = vadd.xlane.f32.xlu0 %v2255_v56  ;;  %v2290_v61 = vadd.s32 %v2220_v57, %v2219_v19  ;;  %v2281_v56 = vcvt.s32.f32 %v2279_v3  ;;  %v2224_v3 = vsel %vm2208_vm15, %v4884_v46, 0  ;;  %v2223_v57 = vsel %vm2207_vm0, %v4875_v2, 0 }
 0x55a   : > { %v2316_v19 = vadd.s32 %v2224_v3, %v2223_v57  ;;  %v2364_v3 = vsel %vm2348_vm2, %v4884_v46, 0  ;;  %vm2357_vm15 = vcmp.eq.s32.totalorder %v4992_v26, 10  ;;  %vm2359_vm0 = vcmp.eq.s32.totalorder %v5008_v59, 10 }
 0x55b   : > { %v5455_v38 = vpop.xlane.xlu2 %1839  ;;  %v2291_v1 = vand.u32 65535, %v2290_v61  ;;  %v2292_v15 = vshrl.u32 %v2290_v61, 16  ;;  %vm2497_vm2 = vcmp.eq.s32.totalorder %v4881_v45, 11 }
 0x55c   : > { %7010 = vst [vmem:[#allocation71_spill] sm:$0xff] %v5455_v38  ;;  %v5459_v47 = vpop.xlane.xlu1 %1852  ;;  %v5461_v49 = vpop.xlane.xlu0 %1841  ;;  %v2280_v38 = vcvt.s32.f32 %v2278_v60  ;;  %v2318_v61 = vshrl.u32 %v2316_v19, 16 }
 0x55d   : > { %7011 = vst [vmem:[#allocation72_spill] sm:$0xff] %v5459_v47  ;;  %v2293_v60 = vcvt.s32.f32 %v2291_v1 }
 0x55e   : > { %7012 = vst [vmem:[#allocation73_spill] sm:$0xff] %v5461_v49  ;;  %v2304_v49 = vand.u32 65535, %v2303_v50 }
 0x560   : > { %2271 = vadd.xlane.f32.xlu2 %v2268_v16  ;;  %v2306_v42 = vcvt.s32.f32 %v2304_v49  ;;  %v2305_v16 = vshrl.u32 %v2303_v50, 16  ;;  %v2362_v49 = vsel %vm2346_vm1, %v4884_v46, 0  ;;  %v2363_v50 = vsel %vm2347_vm4, %v4875_v2, 0 }
 0x561   : > { %2284 = vadd.xlane.f32.xlu1 %v2281_v56  ;;  %2282 = vadd.xlane.f32.xlu0 %v2280_v38  ;;  %v2294_v38 = vcvt.s32.f32 %v2292_v15  ;;  %v2317_v56 = vand.u32 65535, %v2316_v19  ;;  %vm2498_vm1 = vcmp.eq.s32.totalorder %v4889_v28, 11  ;;  %vm2502_vm4 = vcmp.eq.s32.totalorder %v4939_v52, 11 }
 0x562   : > { %v2307_v57 = vcvt.s32.f32 %v2305_v16 }
 0x563   : > { %v5467_v47 = vpop.xlane.xlu2 %1854 }
 0x564   : > { %7013 = vst [vmem:[#allocation74_spill] sm:$0xff] %v5467_v47  ;;  %v5470_v27 = vpop.xlane.xlu1 %1867  ;;  %v5472_v12 = vpop.xlane.xlu0 %1865 }
 0x565   : > { %7014 = vst [vmem:[#allocation75_spill] sm:$0xff] %v5470_v27 }
 0x566   : > { %7015 = vst [vmem:[#allocation76_spill] sm:$0xff] %v5472_v12  ;;  %v2390_v12 = vadd.s32 %v2364_v3, %v2363_v50 }
 0x568   : > { %2295 = vadd.xlane.f32.xlu2 %v2293_v60  ;;  %v2361_v60 = vsel %vm2345_vm3, %v4875_v2, 0  ;;  %vm2500_vm3 = vcmp.eq.s32.totalorder %v4909_v33, 11 }
 0x569   : > { %2308 = vadd.xlane.f32.xlu1 %v2306_v42  ;;  %2297 = vadd.xlane.f32.xlu0 %v2294_v38  ;;  %v2377_v42 = vadd.s32 %v2362_v49, %v2361_v60  ;;  %v2320_v38 = vcvt.s32.f32 %v2318_v61  ;;  %v2366_v61 = vsel %vm2350_vm5, %v4884_v46, 0  ;;  %v2365_v49 = vsel %vm2349_vm6, %v4875_v2, 0 }
 0x56a   : > { %v2403_v60 = vadd.s32 %v2366_v61, %v2365_v49  ;;  %v2370_v61 = vsel %vm2354_vm8, %v4884_v46, 0  ;;  %vm2499_vm5 = vcmp.eq.s32.totalorder %v4901_v34, 11  ;;  %vm2501_vm6 = vcmp.eq.s32.totalorder %v4925_v48, 11 }
 0x56b   : > { %v5479_v23 = vpop.xlane.xlu2 %1926  ;;  %v2378_v19 = vand.u32 65535, %v2377_v42  ;;  %v2379_v27 = vshrl.u32 %v2377_v42, 16  ;;  %vm2503_vm8 = vcmp.eq.s32.totalorder %v4921_v55, 11 }
 0x56c   : > { %7016 = vst [vmem:[#allocation77_spill] sm:$0xff] %v5479_v23  ;;  %v5483_v15 = vpop.xlane.xlu1 %1939  ;;  %v5485_v1 = vpop.xlane.xlu0 %1928  ;;  %v2319_v23 = vcvt.s32.f32 %v2317_v56  ;;  %v2405_v42 = vshrl.u32 %v2403_v60, 16 }
 0x56d   : > { %7017 = vst [vmem:[#allocation78_spill] sm:$0xff] %v5483_v15  ;;  %v2380_v56 = vcvt.s32.f32 %v2378_v19 }
 0x56e   : > { %7018 = vst [vmem:[#allocation79_spill] sm:$0xff] %v5485_v1  ;;  %v2391_v1 = vand.u32 65535, %v2390_v12 }
 0x570   : > { %2310 = vadd.xlane.f32.xlu2 %v2307_v57  ;;  %v2393_v3 = vcvt.s32.f32 %v2391_v1  ;;  %v2392_v57 = vshrl.u32 %v2390_v12, 16  ;;  %v2368_v1 = vsel %vm2352_vm7, %v4884_v46, 0  ;;  %v2369_v12 = vsel %vm2353_vm10, %v4875_v2, 0 }
 0x571   : > { %2323 = vadd.xlane.f32.xlu1 %v2320_v38  ;;  %2321 = vadd.xlane.f32.xlu0 %v2319_v23  ;;  %v2381_v23 = vcvt.s32.f32 %v2379_v27  ;;  %v2404_v38 = vand.u32 65535, %v2403_v60  ;;  %vm2504_vm7 = vcmp.eq.s32.totalorder %v4945_v13, 11  ;;  %vm2508_vm10 = vcmp.eq.s32.totalorder %v4987_v5, 11 }
 0x572   : > { %v2394_v49 = vcvt.s32.f32 %v2392_v57 }
 0x573   : > { %v5491_v15 = vpop.xlane.xlu2 %1941 }
 0x574   : > { %7019 = vst [vmem:[#allocation80_spill] sm:$0xff] %v5491_v15  ;;  %v5494_v47 = vpop.xlane.xlu1 %1954  ;;  %v5496_v16 = vpop.xlane.xlu0 %1952 }
 0x575   : > { %7020 = vst [vmem:[#allocation81_spill] sm:$0xff] %v5494_v47 }
 0x576   : > { %7021 = vst [vmem:[#allocation82_spill] sm:$0xff] %v5496_v16  ;;  %v2429_v16 = vadd.s32 %v2370_v61, %v2369_v12 }
 0x578   : > { %2382 = vadd.xlane.f32.xlu2 %v2380_v56  ;;  %v2367_v56 = vsel %vm2351_vm9, %v4875_v2, 0  ;;  %vm2506_vm9 = vcmp.eq.s32.totalorder %v4966_v18, 11 }
 0x579   : > { %2395 = vadd.xlane.f32.xlu1 %v2393_v3  ;;  %2384 = vadd.xlane.f32.xlu0 %v2381_v23  ;;  %v2416_v3 = vadd.s32 %v2368_v1, %v2367_v56  ;;  %v2407_v23 = vcvt.s32.f32 %v2405_v42  ;;  %v2372_v42 = vsel %vm2356_vm11, %v4884_v46, 0  ;;  %v2371_v1 = vsel %vm2355_vm12, %v4875_v2, 0 }
 0x57a   : > { %v2442_v56 = vadd.s32 %v2372_v42, %v2371_v1  ;;  %v2376_v42 = vsel %vm2360_vm14, %v4884_v46, 0  ;;  %vm2505_vm11 = vcmp.eq.s32.totalorder %v4958_v22, 11  ;;  %vm2507_vm12 = vcmp.eq.s32.totalorder %v4977_v4, 11 }
 0x57b   : > { %v5503_v50 = vpop.xlane.xlu2 %1965  ;;  %v2417_v60 = vand.u32 65535, %v2416_v3  ;;  %v2418_v47 = vshrl.u32 %v2416_v3, 16  ;;  %vm2509_vm14 = vcmp.eq.s32.totalorder %v4992_v26, 11 }
 0x57c   : > { %7022 = vst [vmem:[#allocation83_spill] sm:$0xff] %v5503_v50  ;;  %v5507_v27 = vpop.xlane.xlu1 %1978  ;;  %v5509_v19 = vpop.xlane.xlu0 %1967  ;;  %v2406_v50 = vcvt.s32.f32 %v2404_v38  ;;  %v2444_v3 = vshrl.u32 %v2442_v56, 16 }
 0x57d   : > { %7023 = vst [vmem:[#allocation84_spill] sm:$0xff] %v5507_v27  ;;  %v2419_v38 = vcvt.s32.f32 %v2417_v60 }
 0x57e   : > { %7024 = vst [vmem:[#allocation85_spill] sm:$0xff] %v5509_v19  ;;  %v2430_v19 = vand.u32 65535, %v2429_v16 }
 0x580   : > { %2397 = vadd.xlane.f32.xlu2 %v2394_v49  ;;  %v2432_v61 = vcvt.s32.f32 %v2430_v19  ;;  %v2431_v49 = vshrl.u32 %v2429_v16, 16  ;;  %v2374_v19 = vsel %vm2358_vm13, %v4884_v46, 0  ;;  %v2375_v16 = vsel %vm2359_vm0, %v4875_v2, 0 }
 0x581   : > { %2410 = vadd.xlane.f32.xlu1 %v2407_v23  ;;  %2408 = vadd.xlane.f32.xlu0 %v2406_v50  ;;  %v2420_v50 = vcvt.s32.f32 %v2418_v47  ;;  %v2443_v23 = vand.u32 65535, %v2442_v56  ;;  %vm2510_vm13 = vcmp.eq.s32.totalorder %v5015_v32, 11  ;;  %vm2650_vm0 = vcmp.eq.s32.totalorder %v4889_v28, 12 }
 0x582   : > { %v2433_v1 = vcvt.s32.f32 %v2431_v49 }
 0x583   : > { %v5515_v27 = vpop.xlane.xlu2 %1980 }
 0x584   : > { %7025 = vst [vmem:[#allocation86_spill] sm:$0xff] %v5515_v27  ;;  %v5518_v15 = vpop.xlane.xlu1 %1993  ;;  %v5520_v57 = vpop.xlane.xlu0 %1991 }
 0x585   : > { %7026 = vst [vmem:[#allocation87_spill] sm:$0xff] %v5518_v15 }
 0x586   : > { %7027 = vst [vmem:[#allocation88_spill] sm:$0xff] %v5520_v57  ;;  %v2468_v57 = vadd.s32 %v2376_v42, %v2375_v16 }
 0x588   : > { %2421 = vadd.xlane.f32.xlu2 %v2419_v38  ;;  %v2373_v38 = vsel %vm2357_vm15, %v4875_v2, 0  ;;  %vm2512_vm15 = vcmp.eq.s32.totalorder %v5020_v58, 11 }
 0x589   : > { %2434 = vadd.xlane.f32.xlu1 %v2432_v61  ;;  %2423 = vadd.xlane.f32.xlu0 %v2420_v50  ;;  %v2455_v61 = vadd.s32 %v2374_v19, %v2373_v38  ;;  %v2446_v50 = vcvt.s32.f32 %v2444_v3  ;;  %v2514_v3 = vsel %vm2498_vm1, %v4884_v46, 0  ;;  %v2513_v19 = vsel %vm2497_vm2, %v4875_v2, 0 }
 0x58a   : > { %v2529_v38 = vadd.s32 %v2514_v3, %v2513_v19  ;;  %v2518_v3 = vsel %vm2502_vm4, %v4884_v46, 0  ;;  %vm2511_vm1 = vcmp.eq.s32.totalorder %v5008_v59, 11  ;;  %vm2649_vm2 = vcmp.eq.s32.totalorder %v4881_v45, 12 }
 0x58b   : > { %v5527_v12 = vpop.xlane.xlu2 %2004  ;;  %v2456_v56 = vand.u32 65535, %v2455_v61  ;;  %v2457_v15 = vshrl.u32 %v2455_v61, 16  ;;  %vm2651_vm4 = vcmp.eq.s32.totalorder %v4901_v34, 12 }
 0x58c   : > { %7028 = vst [vmem:[#allocation89_spill] sm:$0xff] %v5527_v12  ;;  %v5531_v47 = vpop.xlane.xlu1 %2017  ;;  %v5533_v60 = vpop.xlane.xlu0 %2006  ;;  %v2445_v12 = vcvt.s32.f32 %v2443_v23  ;;  %v2531_v61 = vshrl.u32 %v2529_v38, 16 }
 0x58d   : > { %7029 = vst [vmem:[#allocation90_spill] sm:$0xff] %v5531_v47  ;;  %v2458_v23 = vcvt.s32.f32 %v2456_v56 }
 0x58e   : > { %7030 = vst [vmem:[#allocation91_spill] sm:$0xff] %v5533_v60  ;;  %v2469_v60 = vand.u32 65535, %v2468_v57 }
 0x590   : > { %2436 = vadd.xlane.f32.xlu2 %v2433_v1  ;;  %v2471_v42 = vcvt.s32.f32 %v2469_v60  ;;  %v2470_v1 = vshrl.u32 %v2468_v57, 16  ;;  %v2516_v60 = vsel %vm2500_vm3, %v4884_v46, 0  ;;  %v2517_v57 = vsel %vm2501_vm6, %v4875_v2, 0 }
 0x591   : > { %2449 = vadd.xlane.f32.xlu1 %v2446_v50  ;;  %2447 = vadd.xlane.f32.xlu0 %v2445_v12  ;;  %v2459_v12 = vcvt.s32.f32 %v2457_v15  ;;  %v2530_v50 = vand.u32 65535, %v2529_v38  ;;  %vm2652_vm3 = vcmp.eq.s32.totalorder %v4909_v33, 12  ;;  %vm2656_vm6 = vcmp.eq.s32.totalorder %v4945_v13, 12 }
 0x592   : > { %v2472_v19 = vcvt.s32.f32 %v2470_v1 }
 0x593   : > { %v5539_v47 = vpop.xlane.xlu2 %2019 }
 0x594   : > { %7031 = vst [vmem:[#allocation92_spill] sm:$0xff] %v5539_v47  ;;  %v5542_v27 = vpop.xlane.xlu1 %2080  ;;  %v5544_v49 = vpop.xlane.xlu0 %2078 }
 0x595   : > { %7032 = vst [vmem:[#allocation93_spill] sm:$0xff] %v5542_v27 }
 0x596   : > { %7033 = vst [vmem:[#allocation94_spill] sm:$0xff] %v5544_v49  ;;  %v2555_v49 = vadd.s32 %v2518_v3, %v2517_v57 }
 0x598   : > { %2460 = vadd.xlane.f32.xlu2 %v2458_v23  ;;  %v2515_v23 = vsel %vm2499_vm5, %v4875_v2, 0  ;;  %vm2654_vm5 = vcmp.eq.s32.totalorder %v4939_v52, 12 }
 0x599   : > { %2473 = vadd.xlane.f32.xlu1 %v2471_v42  ;;  %2462 = vadd.xlane.f32.xlu0 %v2459_v12  ;;  %v2542_v42 = vadd.s32 %v2516_v60, %v2515_v23  ;;  %v2533_v12 = vcvt.s32.f32 %v2531_v61  ;;  %v2520_v61 = vsel %vm2504_vm7, %v4884_v46, 0  ;;  %v2519_v60 = vsel %vm2503_vm8, %v4875_v2, 0 }
 0x59a   : > { %v2568_v23 = vadd.s32 %v2520_v61, %v2519_v60  ;;  %v2524_v61 = vsel %vm2508_vm10, %v4884_v46, 0  ;;  %vm2653_vm7 = vcmp.eq.s32.totalorder %v4925_v48, 12  ;;  %vm2655_vm8 = vcmp.eq.s32.totalorder %v4921_v55, 12 }
 0x59b   : > { %v5551_v16 = vpop.xlane.xlu2 %2091  ;;  %v2543_v38 = vand.u32 65535, %v2542_v42  ;;  %v2544_v27 = vshrl.u32 %v2542_v42, 16  ;;  %vm2657_vm10 = vcmp.eq.s32.totalorder %v4958_v22, 12 }
 0x59c   : > { %7034 = vst [vmem:[#allocation95_spill] sm:$0xff] %v5551_v16  ;;  %v5555_v15 = vpop.xlane.xlu1 %2104  ;;  %v5557_v56 = vpop.xlane.xlu0 %2093  ;;  %v2532_v16 = vcvt.s32.f32 %v2530_v50  ;;  %v2570_v42 = vshrl.u32 %v2568_v23, 16 }
 0x59d   : > { %7035 = vst [vmem:[#allocation96_spill] sm:$0xff] %v5555_v15  ;;  %v2545_v50 = vcvt.s32.f32 %v2543_v38 }
 0x59e   : > { %7036 = vst [vmem:[#allocation97_spill] sm:$0xff] %v5557_v56  ;;  %v2556_v56 = vand.u32 65535, %v2555_v49 }
 0x5a0   : > { %2475 = vadd.xlane.f32.xlu2 %v2472_v19  ;;  %v2558_v3 = vcvt.s32.f32 %v2556_v56  ;;  %v2557_v19 = vshrl.u32 %v2555_v49, 16  ;;  %v2522_v56 = vsel %vm2506_vm9, %v4884_v46, 0  ;;  %v2523_v49 = vsel %vm2507_vm12, %v4875_v2, 0 }
 0x5a1   : > { %2536 = vadd.xlane.f32.xlu1 %v2533_v12  ;;  %2534 = vadd.xlane.f32.xlu0 %v2532_v16  ;;  %v2546_v16 = vcvt.s32.f32 %v2544_v27  ;;  %v2569_v12 = vand.u32 65535, %v2568_v23  ;;  %vm2658_vm9 = vcmp.eq.s32.totalorder %v4966_v18, 12  ;;  %vm2662_vm12 = vcmp.eq.s32.totalorder %v5015_v32, 12 }
 0x5a2   : > { %v2559_v60 = vcvt.s32.f32 %v2557_v19 }
 0x5a3   : > { %v5563_v15 = vpop.xlane.xlu2 %2106 }
 0x5a4   : > { %7037 = vst [vmem:[#allocation98_spill] sm:$0xff] %v5563_v15  ;;  %v5566_v47 = vpop.xlane.xlu1 %2119  ;;  %v5568_v1 = vpop.xlane.xlu0 %2117 }
 0x5a5   : > { %7038 = vst [vmem:[#allocation99_spill] sm:$0xff] %v5566_v47 }
 0x5a6   : > { %7039 = vst [vmem:[#allocation100_spill] sm:$0xff] %v5568_v1  ;;  %v2594_v1 = vadd.s32 %v2524_v61, %v2523_v49 }
 0x5a8   : > { %2547 = vadd.xlane.f32.xlu2 %v2545_v50  ;;  %v2521_v50 = vsel %vm2505_vm11, %v4875_v2, 0  ;;  %vm2660_vm11 = vcmp.eq.s32.totalorder %v4987_v5, 12 }
 0x5a9   : > { %2560 = vadd.xlane.f32.xlu1 %v2558_v3  ;;  %2549 = vadd.xlane.f32.xlu0 %v2546_v16  ;;  %v2581_v3 = vadd.s32 %v2522_v56, %v2521_v50  ;;  %v2572_v16 = vcvt.s32.f32 %v2570_v42  ;;  %v2526_v42 = vsel %vm2510_vm13, %v4884_v46, 0  ;;  %v2525_v56 = vsel %vm2509_vm14, %v4875_v2, 0 }
 0x5aa   : > { %v2607_v50 = vadd.s32 %v2526_v42, %v2525_v56  ;;  %v2666_v42 = vsel %vm2650_vm0, %v4884_v46, 0  ;;  %vm2659_vm13 = vcmp.eq.s32.totalorder %v4977_v4, 12  ;;  %vm2661_vm14 = vcmp.eq.s32.totalorder %v4992_v26, 12 }
 0x5ab   : > { %v5575_v57 = vpop.xlane.xlu2 %2130  ;;  %v2582_v23 = vand.u32 65535, %v2581_v3  ;;  %v2583_v47 = vshrl.u32 %v2581_v3, 16  ;;  %vm2663_vm0 = vcmp.eq.s32.totalorder %v5008_v59, 12 }
 0x5ac   : > { %7040 = vst [vmem:[#allocation101_spill] sm:$0xff] %v5575_v57  ;;  %v5579_v27 = vpop.xlane.xlu1 %2143  ;;  %v5581_v38 = vpop.xlane.xlu0 %2132  ;;  %v2571_v57 = vcvt.s32.f32 %v2569_v12  ;;  %v2609_v3 = vshrl.u32 %v2607_v50, 16 }
 0x5ad   : > { %7041 = vst [vmem:[#allocation102_spill] sm:$0xff] %v5579_v27  ;;  %v2584_v12 = vcvt.s32.f32 %v2582_v23 }
 0x5ae   : > { %7042 = vst [vmem:[#allocation103_spill] sm:$0xff] %v5581_v38  ;;  %v2595_v38 = vand.u32 65535, %v2594_v1 }
 0x5b0   : > { %2562 = vadd.xlane.f32.xlu2 %v2559_v60  ;;  %v2597_v61 = vcvt.s32.f32 %v2595_v38  ;;  %v2596_v60 = vshrl.u32 %v2594_v1, 16  ;;  %v2528_v38 = vsel %vm2512_vm15, %v4884_v46, 0  ;;  %v2665_v1 = vsel %vm2649_vm2, %v4875_v2, 0 }
 0x5b1   : > { %2575 = vadd.xlane.f32.xlu1 %v2572_v16  ;;  %2573 = vadd.xlane.f32.xlu0 %v2571_v57  ;;  %v2585_v57 = vcvt.s32.f32 %v2583_v47  ;;  %v2608_v16 = vand.u32 65535, %v2607_v50  ;;  %vm2664_vm15 = vcmp.eq.s32.totalorder %v5020_v58, 12  ;;  %vm2804_vm2 = vcmp.eq.s32.totalorder %v4909_v33, 13 }
 0x5b2   : > { %v2598_v56 = vcvt.s32.f32 %v2596_v60 }
 0x5b3   : > { %v5587_v27 = vpop.xlane.xlu2 %2145 }
 0x5b4   : > { %7043 = vst [vmem:[#allocation104_spill] sm:$0xff] %v5587_v27  ;;  %v5590_v15 = vpop.xlane.xlu1 %2158  ;;  %v5592_v19 = vpop.xlane.xlu0 %2156 }
 0x5b5   : > { %7044 = vst [vmem:[#allocation105_spill] sm:$0xff] %v5590_v15 }
 0x5b6   : > { %7045 = vst [vmem:[#allocation106_spill] sm:$0xff] %v5592_v19  ;;  %v2681_v19 = vadd.s32 %v2666_v42, %v2665_v1 }
 0x5b8   : > { %2586 = vadd.xlane.f32.xlu2 %v2584_v12  ;;  %v2527_v12 = vsel %vm2511_vm1, %v4875_v2, 0  ;;  %vm2802_vm1 = vcmp.eq.s32.totalorder %v4889_v28, 13 }
 0x5b9   : > { %2599 = vadd.xlane.f32.xlu1 %v2597_v61  ;;  %2588 = vadd.xlane.f32.xlu0 %v2585_v57  ;;  %v2620_v61 = vadd.s32 %v2528_v38, %v2527_v12  ;;  %v2611_v57 = vcvt.s32.f32 %v2609_v3  ;;  %v2668_v3 = vsel %vm2652_vm3, %v4884_v46, 0  ;;  %v2667_v38 = vsel %vm2651_vm4, %v4875_v2, 0 }
 0x5ba   : > { %v2694_v12 = vadd.s32 %v2668_v3, %v2667_v38  ;;  %v2672_v3 = vsel %vm2656_vm6, %v4884_v46, 0  ;;  %vm2801_vm3 = vcmp.eq.s32.totalorder %v4881_v45, 13  ;;  %vm2803_vm4 = vcmp.eq.s32.totalorder %v4901_v34, 13 }
 0x5bb   : > { %v5599_v49 = vpop.xlane.xlu2 %2169  ;;  %v2621_v50 = vand.u32 65535, %v2620_v61  ;;  %v2622_v15 = vshrl.u32 %v2620_v61, 16  ;;  %vm2805_vm6 = vcmp.eq.s32.totalorder %v4925_v48, 13 }
 0x5bc   : > { %7046 = vst [vmem:[#allocation107_spill] sm:$0xff] %v5599_v49  ;;  %v5603_v47 = vpop.xlane.xlu1 %2230  ;;  %v5605_v23 = vpop.xlane.xlu0 %2171  ;;  %v2610_v49 = vcvt.s32.f32 %v2608_v16  ;;  %v2696_v61 = vshrl.u32 %v2694_v12, 16 }
 0x5bd   : > { %7047 = vst [vmem:[#allocation108_spill] sm:$0xff] %v5603_v47  ;;  %v2623_v16 = vcvt.s32.f32 %v2621_v50 }
 0x5be   : > { %7048 = vst [vmem:[#allocation109_spill] sm:$0xff] %v5605_v23  ;;  %v2682_v23 = vand.u32 65535, %v2681_v19 }
 0x5c0   : > { %2601 = vadd.xlane.f32.xlu2 %v2598_v56  ;;  %v2684_v42 = vcvt.s32.f32 %v2682_v23  ;;  %v2683_v56 = vshrl.u32 %v2681_v19, 16  ;;  %v2670_v23 = vsel %vm2654_vm5, %v4884_v46, 0  ;;  %v2671_v19 = vsel %vm2655_vm8, %v4875_v2, 0 }
 0x5c1   : > { %2614 = vadd.xlane.f32.xlu1 %v2611_v57  ;;  %2612 = vadd.xlane.f32.xlu0 %v2610_v49  ;;  %v2624_v49 = vcvt.s32.f32 %v2622_v15  ;;  %v2695_v57 = vand.u32 65535, %v2694_v12  ;;  %vm2806_vm5 = vcmp.eq.s32.totalorder %v4939_v52, 13  ;;  %vm2810_vm8 = vcmp.eq.s32.totalorder %v4966_v18, 13 }
 0x5c2   : > { %v2685_v38 = vcvt.s32.f32 %v2683_v56 }
 0x5c3   : > { %v5611_v47 = vpop.xlane.xlu2 %2232 }
 0x5c4   : > { %7049 = vst [vmem:[#allocation110_spill] sm:$0xff] %v5611_v47  ;;  %v5614_v27 = vpop.xlane.xlu1 %2245  ;;  %v5616_v60 = vpop.xlane.xlu0 %2243 }
 0x5c5   : > { %7050 = vst [vmem:[#allocation111_spill] sm:$0xff] %v5614_v27 }
 0x5c6   : > { %7051 = vst [vmem:[#allocation112_spill] sm:$0xff] %v5616_v60  ;;  %v2720_v60 = vadd.s32 %v2672_v3, %v2671_v19 }
 0x5c8   : > { %2625 = vadd.xlane.f32.xlu2 %v2623_v16  ;;  %v2669_v16 = vsel %vm2653_vm7, %v4875_v2, 0  ;;  %vm2808_vm7 = vcmp.eq.s32.totalorder %v4945_v13, 13 }
 0x5c9   : > { %2686 = vadd.xlane.f32.xlu1 %v2684_v42  ;;  %2627 = vadd.xlane.f32.xlu0 %v2624_v49  ;;  %v2707_v42 = vadd.s32 %v2670_v23, %v2669_v16  ;;  %v2698_v49 = vcvt.s32.f32 %v2696_v61  ;;  %v2674_v61 = vsel %vm2658_vm9, %v4884_v46, 0  ;;  %v2673_v23 = vsel %vm2657_vm10, %v4875_v2, 0 }
 0x5ca   : > { %v2733_v16 = vadd.s32 %v2674_v61, %v2673_v23  ;;  %v2678_v61 = vsel %vm2662_vm12, %v4884_v46, 0  ;;  %vm2807_vm9 = vcmp.eq.s32.totalorder %v4921_v55, 13  ;;  %vm2809_vm10 = vcmp.eq.s32.totalorder %v4958_v22, 13 }
 0x5cb   : > { %v5623_v1 = vpop.xlane.xlu2 %2256  ;;  %v2708_v12 = vand.u32 65535, %v2707_v42  ;;  %v2709_v27 = vshrl.u32 %v2707_v42, 16  ;;  %vm2811_vm12 = vcmp.eq.s32.totalorder %v4977_v4, 13 }
 0x5cc   : > { %7052 = vst [vmem:[#allocation113_spill] sm:$0xff] %v5623_v1  ;;  %v5627_v15 = vpop.xlane.xlu1 %2269  ;;  %v5629_v50 = vpop.xlane.xlu0 %2258  ;;  %v2697_v1 = vcvt.s32.f32 %v2695_v57  ;;  %v2735_v42 = vshrl.u32 %v2733_v16, 16 }
 0x5cd   : > { %7053 = vst [vmem:[#allocation114_spill] sm:$0xff] %v5627_v15  ;;  %v2710_v57 = vcvt.s32.f32 %v2708_v12 }
 0x5ce   : > { %7054 = vst [vmem:[#allocation115_spill] sm:$0xff] %v5629_v50  ;;  %v2721_v50 = vand.u32 65535, %v2720_v60 }
 0x5d0   : > { %2688 = vadd.xlane.f32.xlu2 %v2685_v38  ;;  %v2723_v3 = vcvt.s32.f32 %v2721_v50  ;;  %v2722_v38 = vshrl.u32 %v2720_v60, 16  ;;  %v2676_v50 = vsel %vm2660_vm11, %v4884_v46, 0  ;;  %v2677_v60 = vsel %vm2661_vm14, %v4875_v2, 0 }
 0x5d1   : > { %2701 = vadd.xlane.f32.xlu1 %v2698_v49  ;;  %2699 = vadd.xlane.f32.xlu0 %v2697_v1  ;;  %v2711_v1 = vcvt.s32.f32 %v2709_v27  ;;  %v2734_v49 = vand.u32 65535, %v2733_v16  ;;  %vm2812_vm11 = vcmp.eq.s32.totalorder %v4987_v5, 13  ;;  %vm2816_vm14 = vcmp.eq.s32.totalorder %v5020_v58, 13 }
 0x5d2   : > { %v2724_v23 = vcvt.s32.f32 %v2722_v38 }
 0x5d3   : > { %v5635_v15 = vpop.xlane.xlu2 %2271 }
 0x5d4   : > { %7055 = vst [vmem:[#allocation116_spill] sm:$0xff] %v5635_v15  ;;  %v5638_v47 = vpop.xlane.xlu1 %2284  ;;  %v5640_v56 = vpop.xlane.xlu0 %2282 }
 0x5d5   : > { %7056 = vst [vmem:[#allocation117_spill] sm:$0xff] %v5638_v47 }
 0x5d6   : > { %7057 = vst [vmem:[#allocation118_spill] sm:$0xff] %v5640_v56  ;;  %v2759_v56 = vadd.s32 %v2678_v61, %v2677_v60 }
 0x5d8   : > { %2712 = vadd.xlane.f32.xlu2 %v2710_v57  ;;  %v2675_v57 = vsel %vm2659_vm13, %v4875_v2, 0  ;;  %vm2814_vm13 = vcmp.eq.s32.totalorder %v5015_v32, 13 }
 0x5d9   : > { %2725 = vadd.xlane.f32.xlu1 %v2723_v3  ;;  %2714 = vadd.xlane.f32.xlu0 %v2711_v1  ;;  %v2746_v3 = vadd.s32 %v2676_v50, %v2675_v57  ;;  %v2737_v1 = vcvt.s32.f32 %v2735_v42  ;;  %v2680_v42 = vsel %vm2664_vm15, %v4884_v46, 0  ;;  %v2679_v50 = vsel %vm2663_vm0, %v4875_v2, 0 }
 0x5da   : > { %v2772_v57 = vadd.s32 %v2680_v42, %v2679_v50  ;;  %v2820_v42 = vsel %vm2804_vm2, %v4884_v46, 0  ;;  %vm2813_vm15 = vcmp.eq.s32.totalorder %v4992_v26, 13  ;;  %vm2815_vm0 = vcmp.eq.s32.totalorder %v5008_v59, 13 }
 0x5db   : > { %v5647_v19 = vpop.xlane.xlu2 %2295  ;;  %v2747_v16 = vand.u32 65535, %v2746_v3  ;;  %v2748_v47 = vshrl.u32 %v2746_v3, 16  ;;  %vm2953_vm2 = vcmp.eq.s32.totalorder %v4881_v45, 14 }
 0x5dc   : > { %7058 = vst [vmem:[#allocation119_spill] sm:$0xff] %v5647_v19  ;;  %v5651_v27 = vpop.xlane.xlu1 %2308  ;;  %v5653_v12 = vpop.xlane.xlu0 %2297  ;;  %v2736_v19 = vcvt.s32.f32 %v2734_v49  ;;  %v2774_v3 = vshrl.u32 %v2772_v57, 16 }
 0x5dd   : > { %7059 = vst [vmem:[#allocation120_spill] sm:$0xff] %v5651_v27  ;;  %v2749_v49 = vcvt.s32.f32 %v2747_v16 }
 0x5de   : > { %7060 = vst [vmem:[#allocation121_spill] sm:$0xff] %v5653_v12  ;;  %v2760_v12 = vand.u32 65535, %v2759_v56 }
 0x5e0   : > { %2727 = vadd.xlane.f32.xlu2 %v2724_v23  ;;  %v2762_v61 = vcvt.s32.f32 %v2760_v12  ;;  %v2761_v23 = vshrl.u32 %v2759_v56, 16  ;;  %v2818_v12 = vsel %vm2802_vm1, %v4884_v46, 0  ;;  %v2819_v56 = vsel %vm2803_vm4, %v4875_v2, 0 }
 0x5e1   : > { %2740 = vadd.xlane.f32.xlu1 %v2737_v1  ;;  %2738 = vadd.xlane.f32.xlu0 %v2736_v19  ;;  %v2750_v19 = vcvt.s32.f32 %v2748_v47  ;;  %v2773_v1 = vand.u32 65535, %v2772_v57  ;;  %vm2954_vm1 = vcmp.eq.s32.totalorder %v4889_v28, 14  ;;  %vm2958_vm4 = vcmp.eq.s32.totalorder %v4939_v52, 14 }
 0x5e2   : > { %v2763_v50 = vcvt.s32.f32 %v2761_v23 }
 0x5e3   : > { %v5659_v27 = vpop.xlane.xlu2 %2310 }
 0x5e4   : > { %7061 = vst [vmem:[#allocation122_spill] sm:$0xff] %v5659_v27  ;;  %v5662_v15 = vpop.xlane.xlu1 %2323  ;;  %v5664_v38 = vpop.xlane.xlu0 %2321 }
 0x5e5   : > { %7062 = vst [vmem:[#allocation123_spill] sm:$0xff] %v5662_v15 }
 0x5e6   : > { %7063 = vst [vmem:[#allocation124_spill] sm:$0xff] %v5664_v38  ;;  %v2846_v38 = vadd.s32 %v2820_v42, %v2819_v56 }
 0x5e8   : > { %2751 = vadd.xlane.f32.xlu2 %v2749_v49  ;;  %v2817_v49 = vsel %vm2801_vm3, %v4875_v2, 0  ;;  %vm2956_vm3 = vcmp.eq.s32.totalorder %v4909_v33, 14 }
 0x5e9   : > { %2764 = vadd.xlane.f32.xlu1 %v2762_v61  ;;  %2753 = vadd.xlane.f32.xlu0 %v2750_v19  ;;  %v2833_v61 = vadd.s32 %v2818_v12, %v2817_v49  ;;  %v2776_v19 = vcvt.s32.f32 %v2774_v3  ;;  %v2822_v3 = vsel %vm2806_vm5, %v4884_v46, 0  ;;  %v2821_v12 = vsel %vm2805_vm6, %v4875_v2, 0 }
 0x5ea   : > { %v2859_v49 = vadd.s32 %v2822_v3, %v2821_v12  ;;  %v2826_v3 = vsel %vm2810_vm8, %v4884_v46, 0  ;;  %vm2955_vm5 = vcmp.eq.s32.totalorder %v4901_v34, 14  ;;  %vm2957_vm6 = vcmp.eq.s32.totalorder %v4925_v48, 14 }
 0x5eb   : > { %v5671_v60 = vpop.xlane.xlu2 %2382  ;;  %v2834_v57 = vand.u32 65535, %v2833_v61  ;;  %v2835_v15 = vshrl.u32 %v2833_v61, 16  ;;  %vm2959_vm8 = vcmp.eq.s32.totalorder %v4921_v55, 14 }
 0x5ec   : > { %7064 = vst [vmem:[#allocation125_spill] sm:$0xff] %v5671_v60  ;;  %v5675_v47 = vpop.xlane.xlu1 %2395  ;;  %v5677_v16 = vpop.xlane.xlu0 %2384  ;;  %v2775_v60 = vcvt.s32.f32 %v2773_v1  ;;  %v2861_v61 = vshrl.u32 %v2859_v49, 16 }
 0x5ed   : > { %7065 = vst [vmem:[#allocation126_spill] sm:$0xff] %v5675_v47  ;;  %v2836_v1 = vcvt.s32.f32 %v2834_v57 }
 0x5ee   : > { %7066 = vst [vmem:[#allocation127_spill] sm:$0xff] %v5677_v16  ;;  %v2847_v16 = vand.u32 65535, %v2846_v38 }
 0x5f0   : > { %2766 = vadd.xlane.f32.xlu2 %v2763_v50  ;;  %v2849_v42 = vcvt.s32.f32 %v2847_v16  ;;  %v2848_v50 = vshrl.u32 %v2846_v38, 16  ;;  %v2824_v16 = vsel %vm2808_vm7, %v4884_v46, 0  ;;  %v2825_v38 = vsel %vm2809_vm10, %v4875_v2, 0 }
 0x5f1   : > { %2779 = vadd.xlane.f32.xlu1 %v2776_v19  ;;  %2777 = vadd.xlane.f32.xlu0 %v2775_v60  ;;  %v2837_v60 = vcvt.s32.f32 %v2835_v15  ;;  %v2860_v19 = vand.u32 65535, %v2859_v49  ;;  %vm2960_vm7 = vcmp.eq.s32.totalorder %v4945_v13, 14  ;;  %vm2964_vm10 = vcmp.eq.s32.totalorder %v4987_v5, 14 }
 0x5f2   : > { %v2850_v12 = vcvt.s32.f32 %v2848_v50 }
 0x5f3   : > { %v5683_v47 = vpop.xlane.xlu2 %2397 }
 0x5f4   : > { %7067 = vst [vmem:[#allocation128_spill] sm:$0xff] %v5683_v47  ;;  %v5686_v27 = vpop.xlane.xlu1 %2410  ;;  %v5688_v23 = vpop.xlane.xlu0 %2408 }
 0x5f5   : > { %7068 = vst [vmem:[#allocation129_spill] sm:$0xff] %v5686_v27 }
 0x5f6   : > { %7069 = vst [vmem:[#allocation130_spill] sm:$0xff] %v5688_v23  ;;  %v2885_v23 = vadd.s32 %v2826_v3, %v2825_v38 }
 0x5f8   : > { %2838 = vadd.xlane.f32.xlu2 %v2836_v1  ;;  %v2823_v1 = vsel %vm2807_vm9, %v4875_v2, 0  ;;  %vm2962_vm9 = vcmp.eq.s32.totalorder %v4966_v18, 14 }
 0x5f9   : > { %2851 = vadd.xlane.f32.xlu1 %v2849_v42  ;;  %2840 = vadd.xlane.f32.xlu0 %v2837_v60  ;;  %v2872_v42 = vadd.s32 %v2824_v16, %v2823_v1  ;;  %v2863_v60 = vcvt.s32.f32 %v2861_v61  ;;  %v2828_v61 = vsel %vm2812_vm11, %v4884_v46, 0  ;;  %v2827_v16 = vsel %vm2811_vm12, %v4875_v2, 0 }
 0x5fa   : > { %v2898_v1 = vadd.s32 %v2828_v61, %v2827_v16  ;;  %v2832_v61 = vsel %vm2816_vm14, %v4884_v46, 0  ;;  %vm2961_vm11 = vcmp.eq.s32.totalorder %v4958_v22, 14  ;;  %vm2963_vm12 = vcmp.eq.s32.totalorder %v4977_v4, 14 }
 0x5fb   : > { %v5695_v56 = vpop.xlane.xlu2 %2421  ;;  %v2873_v49 = vand.u32 65535, %v2872_v42  ;;  %v2874_v27 = vshrl.u32 %v2872_v42, 16  ;;  %vm2965_vm14 = vcmp.eq.s32.totalorder %v4992_v26, 14 }
 0x5fc   : > { %7070 = vst [vmem:[#allocation131_spill] sm:$0xff] %v5695_v56  ;;  %v5699_v15 = vpop.xlane.xlu1 %2434  ;;  %v5701_v57 = vpop.xlane.xlu0 %2423  ;;  %v2862_v56 = vcvt.s32.f32 %v2860_v19  ;;  %v2900_v42 = vshrl.u32 %v2898_v1, 16 }
 0x5fd   : > { %7071 = vst [vmem:[#allocation132_spill] sm:$0xff] %v5699_v15  ;;  %v2875_v19 = vcvt.s32.f32 %v2873_v49 }
 0x5fe   : > { %7072 = vst [vmem:[#allocation133_spill] sm:$0xff] %v5701_v57  ;;  %v2886_v57 = vand.u32 65535, %v2885_v23 }
 0x600   : > { %2853 = vadd.xlane.f32.xlu2 %v2850_v12  ;;  %v2888_v3 = vcvt.s32.f32 %v2886_v57  ;;  %v2887_v12 = vshrl.u32 %v2885_v23, 16  ;;  %v2830_v57 = vsel %vm2814_vm13, %v4884_v46, 0  ;;  %v2831_v23 = vsel %vm2815_vm0, %v4875_v2, 0 }
 0x601   : > { %2866 = vadd.xlane.f32.xlu1 %v2863_v60  ;;  %2864 = vadd.xlane.f32.xlu0 %v2862_v56  ;;  %v2876_v56 = vcvt.s32.f32 %v2874_v27  ;;  %v2899_v60 = vand.u32 65535, %v2898_v1  ;;  %vm2966_vm13 = vcmp.eq.s32.totalorder %v5015_v32, 14  ;;  %vm3106_vm0 = vcmp.eq.s32.totalorder %v4889_v28, 15 }
 0x602   : > { %v2889_v16 = vcvt.s32.f32 %v2887_v12 }
 0x603   : > { %v5707_v15 = vpop.xlane.xlu2 %2436 }
 0x604   : > { %7073 = vst [vmem:[#allocation134_spill] sm:$0xff] %v5707_v15  ;;  %v5710_v47 = vpop.xlane.xlu1 %2449  ;;  %v5712_v50 = vpop.xlane.xlu0 %2447 }
 0x605   : > { %7074 = vst [vmem:[#allocation135_spill] sm:$0xff] %v5710_v47 }
 0x606   : > { %7075 = vst [vmem:[#allocation136_spill] sm:$0xff] %v5712_v50  ;;  %v2924_v50 = vadd.s32 %v2832_v61, %v2831_v23 }
 0x608   : > { %2877 = vadd.xlane.f32.xlu2 %v2875_v19  ;;  %v2829_v19 = vsel %vm2813_vm15, %v4875_v2, 0  ;;  %vm2968_vm15 = vcmp.eq.s32.totalorder %v5020_v58, 14 }
 0x609   : > { %2890 = vadd.xlane.f32.xlu1 %v2888_v3  ;;  %2879 = vadd.xlane.f32.xlu0 %v2876_v56  ;;  %v2911_v3 = vadd.s32 %v2830_v57, %v2829_v19  ;;  %v2902_v56 = vcvt.s32.f32 %v2900_v42  ;;  %v2970_v42 = vsel %vm2954_vm1, %v4884_v46, 0  ;;  %v2969_v57 = vsel %vm2953_vm2, %v4875_v2, 0 }
 0x60a   : > { %v2985_v19 = vadd.s32 %v2970_v42, %v2969_v57  ;;  %v2974_v42 = vsel %vm2958_vm4, %v4884_v46, 0  ;;  %vm2967_vm1 = vcmp.eq.s32.totalorder %v5008_v59, 14  ;;  %vm3105_vm2 = vcmp.eq.s32.totalorder %v4881_v45, 15 }
 0x60b   : > { %v5719_v38 = vpop.xlane.xlu2 %2460  ;;  %v2912_v1 = vand.u32 65535, %v2911_v3  ;;  %v2913_v47 = vshrl.u32 %v2911_v3, 16  ;;  %vm3107_vm4 = vcmp.eq.s32.totalorder %v4901_v34, 15 }
 0x60c   : > { %7076 = vst [vmem:[#allocation137_spill] sm:$0xff] %v5719_v38  ;;  %v5723_v27 = vpop.xlane.xlu1 %2473  ;;  %v5725_v49 = vpop.xlane.xlu0 %2462  ;;  %v2901_v38 = vcvt.s32.f32 %v2899_v60  ;;  %v2987_v3 = vshrl.u32 %v2985_v19, 16 }
 0x60d   : > { %7077 = vst [vmem:[#allocation138_spill] sm:$0xff] %v5723_v27  ;;  %v2914_v60 = vcvt.s32.f32 %v2912_v1 }
 0x60e   : > { %7078 = vst [vmem:[#allocation139_spill] sm:$0xff] %v5725_v49  ;;  %v2925_v49 = vand.u32 65535, %v2924_v50 }
 0x610   : > { %2892 = vadd.xlane.f32.xlu2 %v2889_v16  ;;  %v2927_v61 = vcvt.s32.f32 %v2925_v49  ;;  %v2926_v16 = vshrl.u32 %v2924_v50, 16  ;;  %v2972_v49 = vsel %vm2956_vm3, %v4884_v46, 0  ;;  %v2973_v50 = vsel %vm2957_vm6, %v4875_v2, 0 }
 0x611   : > { %2905 = vadd.xlane.f32.xlu1 %v2902_v56  ;;  %2903 = vadd.xlane.f32.xlu0 %v2901_v38  ;;  %v2915_v38 = vcvt.s32.f32 %v2913_v47  ;;  %v2986_v56 = vand.u32 65535, %v2985_v19  ;;  %vm3108_vm3 = vcmp.eq.s32.totalorder %v4909_v33, 15  ;;  %vm3112_vm6 = vcmp.eq.s32.totalorder %v4945_v13, 15 }
 0x612   : > { %v2928_v57 = vcvt.s32.f32 %v2926_v16 }
 0x613   : > { %v5731_v27 = vpop.xlane.xlu2 %2475 }
 0x614   : > { %7079 = vst [vmem:[#allocation140_spill] sm:$0xff] %v5731_v27  ;;  %v5734_v15 = vpop.xlane.xlu1 %2536  ;;  %v5736_v12 = vpop.xlane.xlu0 %2534 }
 0x615   : > { %7080 = vst [vmem:[#allocation141_spill] sm:$0xff] %v5734_v15 }
 0x616   : > { %7081 = vst [vmem:[#allocation142_spill] sm:$0xff] %v5736_v12  ;;  %v3011_v12 = vadd.s32 %v2974_v42, %v2973_v50 }
 0x618   : > { %2916 = vadd.xlane.f32.xlu2 %v2914_v60  ;;  %v2971_v60 = vsel %vm2955_vm5, %v4875_v2, 0  ;;  %vm3110_vm5 = vcmp.eq.s32.totalorder %v4939_v52, 15 }
 0x619   : > { %2929 = vadd.xlane.f32.xlu1 %v2927_v61  ;;  %2918 = vadd.xlane.f32.xlu0 %v2915_v38  ;;  %v2998_v61 = vadd.s32 %v2972_v49, %v2971_v60  ;;  %v2989_v38 = vcvt.s32.f32 %v2987_v3  ;;  %v2976_v3 = vsel %vm2960_vm7, %v4884_v46, 0  ;;  %v2975_v49 = vsel %vm2959_vm8, %v4875_v2, 0 }
 0x61a   : > { %v3024_v60 = vadd.s32 %v2976_v3, %v2975_v49  ;;  %v2980_v3 = vsel %vm2964_vm10, %v4884_v46, 0  ;;  %vm3109_vm7 = vcmp.eq.s32.totalorder %v4925_v48, 15  ;;  %vm3111_vm8 = vcmp.eq.s32.totalorder %v4921_v55, 15 }
 0x61b   : > { %v5743_v23 = vpop.xlane.xlu2 %2547  ;;  %v2999_v19 = vand.u32 65535, %v2998_v61  ;;  %v3000_v15 = vshrl.u32 %v2998_v61, 16  ;;  %vm3113_vm10 = vcmp.eq.s32.totalorder %v4958_v22, 15 }
 0x61c   : > { %7082 = vst [vmem:[#allocation143_spill] sm:$0xff] %v5743_v23  ;;  %v5747_v47 = vpop.xlane.xlu1 %2560  ;;  %v5749_v1 = vpop.xlane.xlu0 %2549  ;;  %v2988_v23 = vcvt.s32.f32 %v2986_v56  ;;  %v3026_v61 = vshrl.u32 %v3024_v60, 16 }
 0x61d   : > { %7083 = vst [vmem:[#allocation144_spill] sm:$0xff] %v5747_v47  ;;  %v3001_v56 = vcvt.s32.f32 %v2999_v19 }
 0x61e   : > { %7084 = vst [vmem:[#allocation145_spill] sm:$0xff] %v5749_v1  ;;  %v3012_v1 = vand.u32 65535, %v3011_v12 }
 0x620   : > { %2931 = vadd.xlane.f32.xlu2 %v2928_v57  ;;  %v3014_v42 = vcvt.s32.f32 %v3012_v1  ;;  %v3013_v57 = vshrl.u32 %v3011_v12, 16  ;;  %v2978_v1 = vsel %vm2962_vm9, %v4884_v46, 0  ;;  %v2979_v12 = vsel %vm2963_vm12, %v4875_v2, 0 }
 0x621   : > { %2992 = vadd.xlane.f32.xlu1 %v2989_v38  ;;  %2990 = vadd.xlane.f32.xlu0 %v2988_v23  ;;  %v3002_v23 = vcvt.s32.f32 %v3000_v15  ;;  %v3025_v38 = vand.u32 65535, %v3024_v60  ;;  %vm3114_vm9 = vcmp.eq.s32.totalorder %v4966_v18, 15  ;;  %vm3118_vm12 = vcmp.eq.s32.totalorder %v5015_v32, 15 }
 0x622   : > { %v3015_v49 = vcvt.s32.f32 %v3013_v57 }
 0x623   : > { %v5755_v47 = vpop.xlane.xlu2 %2562 }
 0x624   : > { %7085 = vst [vmem:[#allocation146_spill] sm:$0xff] %v5755_v47  ;;  %v5758_v27 = vpop.xlane.xlu1 %2575  ;;  %v5760_v16 = vpop.xlane.xlu0 %2573 }
 0x625   : > { %7086 = vst [vmem:[#allocation147_spill] sm:$0xff] %v5758_v27 }
 0x626   : > { %7087 = vst [vmem:[#allocation148_spill] sm:$0xff] %v5760_v16  ;;  %v3050_v16 = vadd.s32 %v2980_v3, %v2979_v12 }
 0x628   : > { %3003 = vadd.xlane.f32.xlu2 %v3001_v56  ;;  %v2977_v56 = vsel %vm2961_vm11, %v4875_v2, 0  ;;  %vm3116_vm11 = vcmp.eq.s32.totalorder %v4987_v5, 15 }
 0x629   : > { %3016 = vadd.xlane.f32.xlu1 %v3014_v42  ;;  %3005 = vadd.xlane.f32.xlu0 %v3002_v23  ;;  %v3037_v42 = vadd.s32 %v2978_v1, %v2977_v56  ;;  %v3028_v23 = vcvt.s32.f32 %v3026_v61  ;;  %v2982_v61 = vsel %vm2966_vm13, %v4884_v46, 0  ;;  %v2981_v1 = vsel %vm2965_vm14, %v4875_v2, 0 }
 0x62a   : > { %v3063_v56 = vadd.s32 %v2982_v61, %v2981_v1  ;;  %v3122_v61 = vsel %vm3106_vm0, %v4884_v46, 0  ;;  %vm3115_vm13 = vcmp.eq.s32.totalorder %v4977_v4, 15  ;;  %vm3117_vm14 = vcmp.eq.s32.totalorder %v4992_v26, 15 }
 0x62b   : > { %v5767_v50 = vpop.xlane.xlu2 %2586  ;;  %v3038_v60 = vand.u32 65535, %v3037_v42  ;;  %v3039_v27 = vshrl.u32 %v3037_v42, 16  ;;  %vm3119_vm0 = vcmp.eq.s32.totalorder %v5008_v59, 15 }
 0x62c   : > { %7088 = vst [vmem:[#allocation149_spill] sm:$0xff] %v5767_v50  ;;  %v5771_v15 = vpop.xlane.xlu1 %2599  ;;  %v5773_v19 = vpop.xlane.xlu0 %2588  ;;  %v3027_v50 = vcvt.s32.f32 %v3025_v38  ;;  %v3065_v42 = vshrl.u32 %v3063_v56, 16 }
 0x62d   : > { %7089 = vst [vmem:[#allocation150_spill] sm:$0xff] %v5771_v15  ;;  %v3040_v38 = vcvt.s32.f32 %v3038_v60 }
 0x62e   : > { %7090 = vst [vmem:[#allocation151_spill] sm:$0xff] %v5773_v19  ;;  %v3051_v19 = vand.u32 65535, %v3050_v16 }
 0x630   : > { %3018 = vadd.xlane.f32.xlu2 %v3015_v49  ;;  %v3053_v3 = vcvt.s32.f32 %v3051_v19  ;;  %v3052_v49 = vshrl.u32 %v3050_v16, 16  ;;  %v2984_v19 = vsel %vm2968_vm15, %v4884_v46, 0  ;;  %v3121_v16 = vsel %vm3105_vm2, %v4875_v2, 0 }
 0x631   : > { %3031 = vadd.xlane.f32.xlu1 %v3028_v23  ;;  %3029 = vadd.xlane.f32.xlu0 %v3027_v50  ;;  %v3041_v50 = vcvt.s32.f32 %v3039_v27  ;;  %v3064_v23 = vand.u32 65535, %v3063_v56  ;;  %vm3120_vm15 = vcmp.eq.s32.totalorder %v5020_v58, 15  ;;  %vm3260_vm2 = vcmp.eq.s32.totalorder %v4909_v33, 16 }
 0x632   : > { %v3054_v1 = vcvt.s32.f32 %v3052_v49 }
 0x633   : > { %v5779_v15 = vpop.xlane.xlu2 %2601 }
 0x634   : > { %7091 = vst [vmem:[#allocation152_spill] sm:$0xff] %v5779_v15  ;;  %v5782_v47 = vpop.xlane.xlu1 %2614  ;;  %v5784_v57 = vpop.xlane.xlu0 %2612 }
 0x635   : > { %7092 = vst [vmem:[#allocation153_spill] sm:$0xff] %v5782_v47 }
 0x636   : > { %7093 = vst [vmem:[#allocation154_spill] sm:$0xff] %v5784_v57  ;;  %v3137_v57 = vadd.s32 %v3122_v61, %v3121_v16 }
 0x638   : > { %3042 = vadd.xlane.f32.xlu2 %v3040_v38  ;;  %v2983_v38 = vsel %vm2967_vm1, %v4875_v2, 0  ;;  %vm3258_vm1 = vcmp.eq.s32.totalorder %v4889_v28, 16  ;;  %v3276_v28 = vsel %vm3260_vm2, %v4884_v46, 0  ;;  %vm1266_vm2 = vcmp.gt.s32.totalorder %v4903_v37, 1 }
 0x639   : > { %3055 = vadd.xlane.f32.xlu1 %v3053_v3  ;;  %3044 = vadd.xlane.f32.xlu0 %v3041_v50  ;;  %v3076_v3 = vadd.s32 %v2984_v19, %v2983_v38  ;;  %v3067_v50 = vcvt.s32.f32 %v3065_v42  ;;  %v3124_v42 = vsel %vm3108_vm3, %v4884_v46, 0  ;;  %v3123_v19 = vsel %vm3107_vm4, %v4875_v2, 0 }
 0x63a   : > { %v3150_v38 = vadd.s32 %v3124_v42, %v3123_v19  ;;  %v3128_v42 = vsel %vm3112_vm6, %v4884_v46, 0  ;;  %vm3257_vm3 = vcmp.eq.s32.totalorder %v4881_v45, 16  ;;  %vm3259_vm4 = vcmp.eq.s32.totalorder %v4901_v34, 16 }
 0x63b   : > { %v5791_v12 = vpop.xlane.xlu2 %2625  ;;  %v3077_v56 = vand.u32 65535, %v3076_v3  ;;  %v3078_v47 = vshrl.u32 %v3076_v3, 16  ;;  %vm3261_vm6 = vcmp.eq.s32.totalorder %v4925_v48, 16 }
 0x63c   : > { %7094 = vst [vmem:[#allocation155_spill] sm:$0xff] %v5791_v12  ;;  %v5795_v27 = vpop.xlane.xlu1 %2686  ;;  %v5797_v60 = vpop.xlane.xlu0 %2627  ;;  %v3066_v12 = vcvt.s32.f32 %v3064_v23  ;;  %v3152_v3 = vshrl.u32 %v3150_v38, 16 }
 0x63d   : > { %7095 = vst [vmem:[#allocation156_spill] sm:$0xff] %v5795_v27  ;;  %v3079_v23 = vcvt.s32.f32 %v3077_v56 }
 0x63e   : > { %7096 = vst [vmem:[#allocation157_spill] sm:$0xff] %v5797_v60  ;;  %v3138_v60 = vand.u32 65535, %v3137_v57 }
 0x640   : > { %3057 = vadd.xlane.f32.xlu2 %v3054_v1  ;;  %v3140_v61 = vcvt.s32.f32 %v3138_v60  ;;  %v3139_v1 = vshrl.u32 %v3137_v57, 16  ;;  %v3126_v60 = vsel %vm3110_vm5, %v4884_v46, 0  ;;  %v3127_v57 = vsel %vm3111_vm8, %v4875_v2, 0 }
 0x641   : > { %3070 = vadd.xlane.f32.xlu1 %v3067_v50  ;;  %3068 = vadd.xlane.f32.xlu0 %v3066_v12  ;;  %v3080_v12 = vcvt.s32.f32 %v3078_v47  ;;  %v3151_v50 = vand.u32 65535, %v3150_v38  ;;  %vm3262_vm5 = vcmp.eq.s32.totalorder %v4939_v52, 16  ;;  %vm3266_vm8 = vcmp.eq.s32.totalorder %v4966_v18, 16 }
 0x642   : > { %v3141_v19 = vcvt.s32.f32 %v3139_v1 }
 0x643   : > { %v5803_v27 = vpop.xlane.xlu2 %2688 }
 0x644   : > { %7097 = vst [vmem:[#allocation158_spill] sm:$0xff] %v5803_v27  ;;  %v5806_v15 = vpop.xlane.xlu1 %2701  ;;  %v5808_v49 = vpop.xlane.xlu0 %2699 }
 0x645   : > { %7098 = vst [vmem:[#allocation159_spill] sm:$0xff] %v5806_v15 }
 0x646   : > { %7099 = vst [vmem:[#allocation160_spill] sm:$0xff] %v5808_v49  ;;  %v3176_v49 = vadd.s32 %v3128_v42, %v3127_v57 }
 0x648   : > { %3081 = vadd.xlane.f32.xlu2 %v3079_v23  ;;  %v3125_v23 = vsel %vm3109_vm7, %v4875_v2, 0  ;;  %vm3264_vm7 = vcmp.eq.s32.totalorder %v4945_v13, 16  ;;  %v3282_v13 = vsel %vm3266_vm8, %v4884_v46, 0 }
 0x649   : > { %3142 = vadd.xlane.f32.xlu1 %v3140_v61  ;;  %3083 = vadd.xlane.f32.xlu0 %v3080_v12  ;;  %v3163_v61 = vadd.s32 %v3126_v60, %v3125_v23  ;;  %v3154_v12 = vcvt.s32.f32 %v3152_v3  ;;  %v3130_v3 = vsel %vm3114_vm9, %v4884_v46, 0  ;;  %v3129_v60 = vsel %vm3113_vm10, %v4875_v2, 0 }
 0x64a   : > { %v3189_v23 = vadd.s32 %v3130_v3, %v3129_v60  ;;  %v3134_v3 = vsel %vm3118_vm12, %v4884_v46, 0  ;;  %vm3263_vm9 = vcmp.eq.s32.totalorder %v4921_v55, 16  ;;  %vm3265_vm10 = vcmp.eq.s32.totalorder %v4958_v22, 16 }
 0x64b   : > { %v5815_v16 = vpop.xlane.xlu2 %2712  ;;  %v3164_v38 = vand.u32 65535, %v3163_v61  ;;  %v3165_v15 = vshrl.u32 %v3163_v61, 16  ;;  %vm3267_vm12 = vcmp.eq.s32.totalorder %v4977_v4, 16 }
 0x64c   : > { %7100 = vst [vmem:[#allocation161_spill] sm:$0xff] %v5815_v16  ;;  %v5819_v47 = vpop.xlane.xlu1 %2725  ;;  %v5821_v56 = vpop.xlane.xlu0 %2714  ;;  %v3153_v16 = vcvt.s32.f32 %v3151_v50  ;;  %v3191_v61 = vshrl.u32 %v3189_v23, 16 }
 0x64d   : > { %7101 = vst [vmem:[#allocation162_spill] sm:$0xff] %v5819_v47  ;;  %v3166_v50 = vcvt.s32.f32 %v3164_v38 }
 0x64e   : > { %7102 = vst [vmem:[#allocation163_spill] sm:$0xff] %v5821_v56  ;;  %v3177_v56 = vand.u32 65535, %v3176_v49 }
 0x650   : > { %3144 = vadd.xlane.f32.xlu2 %v3141_v19  ;;  %v3179_v42 = vcvt.s32.f32 %v3177_v56  ;;  %v3178_v19 = vshrl.u32 %v3176_v49, 16  ;;  %v3132_v56 = vsel %vm3116_vm11, %v4884_v46, 0  ;;  %v3133_v49 = vsel %vm3117_vm14, %v4875_v2, 0 }
 0x651   : > { %3157 = vadd.xlane.f32.xlu1 %v3154_v12  ;;  %3155 = vadd.xlane.f32.xlu0 %v3153_v16  ;;  %v3167_v16 = vcvt.s32.f32 %v3165_v15  ;;  %v3190_v12 = vand.u32 65535, %v3189_v23  ;;  %vm3268_vm11 = vcmp.eq.s32.totalorder %v4987_v5, 16  ;;  %vm3272_vm14 = vcmp.eq.s32.totalorder %v5020_v58, 16 }
 0x652   : > { %v3180_v60 = vcvt.s32.f32 %v3178_v19 }
 0x653   : > { %v5827_v47 = vpop.xlane.xlu2 %2727 }
 0x654   : > { %7103 = vst [vmem:[#allocation164_spill] sm:$0xff] %v5827_v47  ;;  %v5830_v27 = vpop.xlane.xlu1 %2740  ;;  %v5832_v1 = vpop.xlane.xlu0 %2738 }
 0x655   : > { %7104 = vst [vmem:[#allocation165_spill] sm:$0xff] %v5830_v27 }
 0x656   : > { %7105 = vst [vmem:[#allocation166_spill] sm:$0xff] %v5832_v1  ;;  %v3215_v1 = vadd.s32 %v3134_v3, %v3133_v49 }
 0x658   : > { %3168 = vadd.xlane.f32.xlu2 %v3166_v50  ;;  %v3131_v50 = vsel %vm3115_vm13, %v4875_v2, 0  ;;  %vm3270_vm13 = vcmp.eq.s32.totalorder %v5015_v32, 16  ;;  %v3288_v32 = vsel %vm3272_vm14, %v4884_v46, 0 }
 0x659   : > { %3181 = vadd.xlane.f32.xlu1 %v3179_v42  ;;  %3170 = vadd.xlane.f32.xlu0 %v3167_v16  ;;  %v3202_v42 = vadd.s32 %v3132_v56, %v3131_v50  ;;  %v3193_v16 = vcvt.s32.f32 %v3191_v61  ;;  %v3136_v61 = vsel %vm3120_vm15, %v4884_v46, 0  ;;  %v3135_v56 = vsel %vm3119_vm0, %v4875_v2, 0 }
 0x65a   : > { %v3228_v50 = vadd.s32 %v3136_v61, %v3135_v56  ;;  %v3273_v61 = vsel %vm3257_vm3, %v4875_v2, 0  ;;  %vm3269_vm15 = vcmp.eq.s32.totalorder %v4992_v26, 16  ;;  %vm3271_vm0 = vcmp.eq.s32.totalorder %v5008_v59, 16 }
 0x65b   : > { %v5839_v57 = vpop.xlane.xlu2 %2751  ;;  %v3203_v23 = vand.u32 65535, %v3202_v42  ;;  %v3204_v27 = vshrl.u32 %v3202_v42, 16  ;;  %vm1268_vm3 = vcmp.gt.s32.totalorder %v4932_v6, 1 }
 0x65c   : > { %7106 = vst [vmem:[#allocation167_spill] sm:$0xff] %v5839_v57  ;;  %v5843_v15 = vpop.xlane.xlu1 %2764  ;;  %v5845_v38 = vpop.xlane.xlu0 %2753  ;;  %v3192_v57 = vcvt.s32.f32 %v3190_v12  ;;  %v3230_v42 = vshrl.u32 %v3228_v50, 16 }
 0x65d   : > { %7107 = vst [vmem:[#allocation168_spill] sm:$0xff] %v5843_v15  ;;  %v3205_v12 = vcvt.s32.f32 %v3203_v23 }
 0x65e   : > { %7108 = vst [vmem:[#allocation169_spill] sm:$0xff] %v5845_v38  ;;  %v3216_v38 = vand.u32 65535, %v3215_v1 }
 0x660   : > { %3183 = vadd.xlane.f32.xlu2 %v3180_v60  ;;  %v3218_v3 = vcvt.s32.f32 %v3216_v38  ;;  %v3217_v60 = vshrl.u32 %v3215_v1, 16  ;;  %v3274_v38 = vsel %vm3258_vm1, %v4884_v46, 0  ;;  %v3275_v1 = vsel %vm3259_vm4, %v4875_v2, 0 }
 0x661   : > { %3196 = vadd.xlane.f32.xlu1 %v3193_v16  ;;  %3194 = vadd.xlane.f32.xlu0 %v3192_v57  ;;  %v3206_v57 = vcvt.s32.f32 %v3204_v27  ;;  %v3229_v16 = vand.u32 65535, %v3228_v50  ;;  %v3289_v45 = vadd.s32 %v3274_v38, %v3273_v61  ;;  %v3277_v38 = vsel %vm3261_vm6, %v4875_v2, 0 }
 0x662   : > { %v3219_v33 = vcvt.s32.f32 %v3217_v60  ;;  %vm1265_vm1 = vcmp.gt.s32.totalorder %v4877_v54, 1 }
 0x663   : > { %v5851_v15 = vpop.xlane.xlu2 %2766  ;;  %v3231_v56 = vcvt.s32.f32 %v3229_v16  ;;  %v3290_v34 = vand.u32 65535, %v3289_v45 }
 0x664   : > { %v5854_v47 = vpop.xlane.xlu1 %2779  ;;  %v5856_v19 = vpop.xlane.xlu0 %2777 }
 0x665   : > { %v3292_v16 = vcvt.s32.f32 %v3290_v34  ;;  %v3279_v34 = vsel %vm3263_vm9, %v4875_v2, 0  ;;  %vm1417_vm9 = vcmp.gt.s32.totalorder %v4877_v54, 2 }
 0x668   : > { %3207 = vadd.xlane.f32.xlu2 %v3205_v12  ;;  %v3232_v12 = vcvt.s32.f32 %v3230_v42  ;;  %v3278_v42 = vsel %vm3262_vm5, %v4884_v46, 0 }
 0x669   : > { %3220 = vadd.xlane.f32.xlu1 %v3218_v3  ;;  %3209 = vadd.xlane.f32.xlu0 %v3206_v57  ;;  %v3302_v3 = vadd.s32 %v3276_v28, %v3275_v1 }
 0x66b   : > { %v5863_v49 = vpop.xlane.xlu2 %2838  ;;  %v3303_v50 = vand.u32 65535, %v3302_v3  ;;  %v3304_v48 = vshrl.u32 %v3302_v3, 16  ;;  %v3281_v3 = vsel %vm3265_vm10, %v4875_v2, 0  ;;  %vm1418_vm10 = vcmp.gt.s32.totalorder %v4903_v37, 2 }
 0x66c   : > { %7109 = vst [vmem:[#allocation170_spill] sm:$0xff] %v5863_v49  ;;  %v5867_v27 = vpop.xlane.xlu1 %2851  ;;  %v5869_v23 = vpop.xlane.xlu0 %2840 }
 0x66d   : > { %7110 = vst [vmem:[#allocation171_spill] sm:$0xff] %v5867_v27  ;;  %v3291_v27 = vshrl.u32 %v3289_v45, 16  ;;  %v3305_v28 = vcvt.s32.f32 %v3303_v50  ;;  %v3306_v18 = vcvt.s32.f32 %v3304_v48 }
 0x66f   : > { %v3293_v61 = vcvt.s32.f32 %v3291_v27 }
 0x670   : > { %3222 = vadd.xlane.f32.xlu2 %v3219_v33  ;;  %v3315_v33 = vadd.s32 %v3278_v42, %v3277_v38 }
 0x671   : > { %3235 = vadd.xlane.f32.xlu1 %v3232_v12  ;;  %3233 = vadd.xlane.f32.xlu0 %v3231_v56  ;;  %v3280_v12 = vsel %vm3264_vm7, %v4884_v46, 0 }
 0x672   : > { %v3317_v1 = vshrl.u32 %v3315_v33, 16  ;;  %v3316_v45 = vand.u32 65535, %v3315_v33  ;;  %v3328_v55 = vadd.s32 %v3280_v12, %v3279_v34  ;;  %v3283_v12 = vsel %vm3267_vm12, %v4875_v2, 0 }
 0x673   : > { %v5875_v57 = vpop.xlane.xlu2 %2853  ;;  %vm1420_vm12 = vcmp.gt.s32.totalorder %v4932_v6, 2 }
 0x674   : > { %v5878_v49 = vpop.xlane.xlu1 %2866  ;;  %v5880_v60 = vpop.xlane.xlu0 %2864  ;;  %v3319_v50 = vcvt.s32.f32 %v3317_v1  ;;  %v3318_v42 = vcvt.s32.f32 %v3316_v45  ;;  %v3329_v22 = vand.u32 65535, %v3328_v55  ;;  %v3284_v1 = vsel %vm3268_vm11, %v4884_v46, 0 }
 0x676   : > { %v3331_v45 = vcvt.s32.f32 %v3329_v22 }
 0x678   : > { %3294 = vadd.xlane.f32.xlu2 %v3292_v16  ;;  %v3341_v16 = vadd.s32 %v3282_v13, %v3281_v3 }
 0x679   : > { %3307 = vadd.xlane.f32.xlu1 %v3305_v28  ;;  %3296 = vadd.xlane.f32.xlu0 %v3293_v61  ;;  %v3330_v61 = vshrl.u32 %v3328_v55, 16 }
 0x67a   : > { %v3342_v28 = vand.u32 65535, %v3341_v16  ;;  %v3343_v4 = vshrl.u32 %v3341_v16, 16  ;;  %v3287_v16 = vsel %vm3271_vm0, %v4875_v2, 0 }
 0x67b   : > { %v5887_v52 = vpop.xlane.xlu2 %2877  ;;  %v3332_v34 = vcvt.s32.f32 %v3330_v61 }
 0x67c   : > { %v5891_v27 = vpop.xlane.xlu1 %2890  ;;  %v5893_v56 = vpop.xlane.xlu0 %2879  ;;  %v3344_v13 = vcvt.s32.f32 %v3342_v28  ;;  %v3285_v28 = vsel %vm3269_vm15, %v4875_v2, 0  ;;  %v3345_v58 = vcvt.s32.f32 %v3343_v4 }
 0x680   : > { %3309 = vadd.xlane.f32.xlu2 %v3306_v18  ;;  %v3354_v18 = vadd.s32 %v3284_v1, %v3283_v12 }
 0x681   : > { %3322 = vadd.xlane.f32.xlu1 %v3319_v50  ;;  %3320 = vadd.xlane.f32.xlu0 %v3318_v42  ;;  %v3286_v50 = vsel %vm3270_vm13, %v4884_v46, 0 }
 0x682   : > { %v3356_v3 = vshrl.u32 %v3354_v18, 16  ;;  %v3355_v55 = vand.u32 65535, %v3354_v18  ;;  %v3367_v26 = vadd.s32 %v3286_v50, %v3285_v28  ;;  %v1171_v28 = vcvt.f32.s32 %v5158_v8 }
 0x683   : > { %v5899_v38 = vpop.xlane.xlu2 %2892 }
 0x684   : > { %v5902_v33 = vpop.xlane.xlu1 %2905  ;;  %v5904_v48 = vpop.xlane.xlu0 %2903  ;;  %v3358_v61 = vcvt.s32.f32 %v3356_v3  ;;  %v3357_v1 = vcvt.s32.f32 %v3355_v55  ;;  %v3368_v59 = vand.u32 65535, %v3367_v26 }
 0x688   : > { %3333 = vadd.xlane.f32.xlu2 %v3331_v45  ;;  %v3380_v45 = vadd.s32 %v3288_v32, %v3287_v16 }
 0x689   : > { %3346 = vadd.xlane.f32.xlu1 %v3344_v13  ;;  %3335 = vadd.xlane.f32.xlu0 %v3332_v34  ;;  %v3369_v34 = vshrl.u32 %v3367_v26, 16  ;;  %v1172_v26 = vshll.u32 %v1171_v28, 16  ;;  %v1183_v28 = vcvt.f32.s32 %v5167_v31  ;;  %v1223_v31 = vcvt.f32.s32 %v5197_v20 }
 0x68a   : > { %v3381_v13 = vand.u32 65535, %v3380_v45  ;;  %v3382_v2 = vshrl.u32 %v3380_v45, 16  ;;  %v1170_v45 = vcvt.f32.s32 %v5160_v7 }
 0x68b   : > { %v5911_v5 = vpop.xlane.xlu2 %2916  ;;  %v1224_v20 = vshll.u32 %v1223_v31, 16  ;;  %v1126_v31 = vcvt.f32.s32 %v5155_v53  ;;  %v7127_v53 = vld [vmem:[#allocation11_spill] sm:$0xff] }
 0x68c   : > { %7111 = vst [vmem:[#allocation172_spill] sm:$0xff] %v5911_v5  ;;  %v5915_v42 = vpop.xlane.xlu1 %2929  ;;  %v5917_v22 = vpop.xlane.xlu0 %2918  ;;  %v3383_v4 = vcvt.s32.f32 %v3381_v13  ;;  %v3371_v5 = vcvt.s32.f32 %v3369_v34  ;;  %v3384_v32 = vcvt.s32.f32 %v3382_v2  ;;  %v1034_v13 = vcvt.f32.s32 %v5098_v14 }
 0x68d   : > { %7112 = vst [vmem:[#allocation173_spill] sm:$0xff] %v5915_v42  ;;  %v3370_v42 = vcvt.s32.f32 %v3368_v59  ;;  %v1048_v59 = vcvt.f32.s32 %v5106_v9  ;;  %v1173_v8 = vadd.s32 %v1172_v26, %v1170_v45  ;;  %v1210_v34 = vcvt.f32.s32 %v5182_v29 }
 0x68e   : > { %v1074_v2 = vcvt.f32.s32 %v5125_v43  ;;  %v1061_v9 = vcvt.f32.s32 %v5109_v51  ;;  %v1047_v43 = vcvt.f32.s32 %v5092_v62  ;;  %v1209_v45 = vcvt.f32.s32 %v5184_v21 }
 0x68f   : > { %v1211_v14 = vshll.u32 %v1210_v34, 16  ;;  %v1196_v62 = vcvt.f32.s32 %v5171_v40 }
 0x690   : > { %3348 = vadd.xlane.f32.xlu2 %v3345_v58  ;;  %v1035_v58 = vcvt.f32.s32 %v5096_v30  ;;  %v1062_v34 = vshll.u32 %v1061_v9, 16 }
 0x691   : > { %3361 = vadd.xlane.f32.xlu1 %v3358_v61  ;;  %3359 = vadd.xlane.f32.xlu0 %v3357_v1 }
 0x692   : > { %v1036_v1 = vshll.u32 %v1035_v58, 16 }
 0x693   : > { %v5922_v12 = vpop.xlane.xlu2 %2931 }
 0x694   : > { %v5924_v18 = vpop.xlane.xlu1 %2992  ;;  %v5926_v46 = vpop.xlane.xlu0 %2990 }
 0x698   : > { %3372 = vadd.xlane.f32.xlu2 %v3370_v42 }
 0x699   : > { %3385 = vadd.xlane.f32.xlu1 %v3383_v4  ;;  %3374 = vadd.xlane.f32.xlu0 %v3371_v5  ;;  %v1184_v5 = vcvt.f32.s32 %v5173_v11  ;;  %v5947_v4 = vadd.s32 %v1036_v1, %v1034_v13  ;;  %v1197_v11 = vcvt.f32.s32 %v5179_v35  ;;  %v1087_v35 = vcvt.f32.s32 %v5131_v63 }
 0x69a   : > { %v1075_v1 = vshll.u32 %v1074_v2, 16  ;;  %v1060_v63 = vcvt.f32.s32 %v5111_v10 }
 0x69b   : > { %v5928_v3 = vpop.xlane.xlu2 %3003  ;;  %v1185_v30 = vshll.u32 %v1184_v5, 16  ;;  %v1273_v26 = vsel %vm1265_vm1, %v1173_v8, %v5947_v4  ;;  %v1198_v13 = vshll.u32 %v1197_v11, 16  ;;  %v1236_v8 = vcvt.f32.s32 %v5203_v17 }
 0x69c   : > { %v5930_v55 = vpop.xlane.xlu1 %3016  ;;  %v5932_v50 = vpop.xlane.xlu0 %3005  ;;  %v1088_v2 = vshll.u32 %v1087_v35, 16  ;;  %v1249_v17 = vcvt.f32.s32 %v5206_v39  ;;  %v5983_v40 = vadd.s32 %v1062_v34, %v1060_v63  ;;  %v1262_v39 = vcvt.f32.s32 %v5221_v36  ;;  %v7122_v35 = vld [vmem:[#allocation10_spill] sm:$0xff]  ;;  %v7126_v36 = vld [vmem:[#allocation3_spill] sm:$0xff] }
 0x69d   : > { %7113 = vst [vmem:[#allocation174_spill] sm:$0xff] %v5930_v55  ;;  %v1186_v5 = vadd.s32 %v1185_v30, %v1183_v28  ;;  %v1222_v28 = vcvt.f32.s32 %v5191_v44  ;;  %v1237_v9 = vshll.u32 %v1236_v8, 16  ;;  %v7125_v8 = vld [vmem:[#allocation14_spill] sm:$0xff]  ;;  %vm1269_vm5 = vcmp.gt.s32.totalorder %v7126_v36, 1 }
 0x69e   : > { %v1263_v63 = vshll.u32 %v1262_v39, 16  ;;  %vm1421_vm13 = vcmp.gt.s32.totalorder %v7126_v36, 2  ;;  %vm1569_vm1 = vcmp.gt.s32.totalorder %v4877_v54, 3 }
 0x69f   : > { %v1225_v44 = vadd.s32 %v1224_v20, %v1222_v28  ;;  %v7128_v28 = vld [vmem:[#allocation8_spill] sm:$0xff] }
 0x6a0   : > { %3387 = vadd.xlane.f32.xlu2 %v3384_v32  ;;  %v1049_v32 = vshll.u32 %v1048_v59, 16  ;;  %v1073_v59 = vcvt.f32.s32 %v5117_v25  ;;  %v1199_v25 = vadd.s32 %v1198_v13, %v1196_v62  ;;  %v1250_v13 = vshll.u32 %v1249_v17, 16 }
 0x6a1   : > { %v1323_v62 = vcvt.f32.s32 %v7125_v8  ;;  %v1112_v17 = vcvt.f32.s32 %v7128_v28 }
 0x6a2   : > { %v5966_v51 = vadd.s32 %v1049_v32, %v1047_v43  ;;  %v5974_v21 = vadd.s32 %v1075_v1, %v1073_v59  ;;  %v1100_v32 = vcvt.f32.s32 %v5134_v0  ;;  %v1113_v43 = vcvt.f32.s32 %v5149_v24 }
 0x6a3   : > { %v5936_v16 = vpop.xlane.xlu2 %3018  ;;  %v1235_v1 = vcvt.f32.s32 %v7122_v35  ;;  %v7130_v35 = vld [vmem:[#allocation15_spill] sm:$0xff] }
 0x6a4   : > { %v5938_v61 = vpop.xlane.xlu1 %3031  ;;  %v5940_v42 = vpop.xlane.xlu0 %3029  ;;  %v1274_v30 = vsel %vm1266_vm2, %v1186_v5, %v5966_v51  ;;  %v1101_v5 = vshll.u32 %v1100_v32, 16  ;;  %v1114_v20 = vshll.u32 %v1113_v43, 16  ;;  %v7132_v43 = vld [vmem:[#allocation4_spill] sm:$0xff]  ;;  %vm1570_vm2 = vcmp.gt.s32.totalorder %v4903_v37, 3 }
 0x6a5   : > { %7114 = vst [vmem:[#allocation175_spill] sm:$0xff] %v5938_v61  ;;  %v1238_v24 = vadd.s32 %v1237_v9, %v1235_v1  ;;  %v1336_v1 = vcvt.f32.s32 %v7130_v35  ;;  %vm1270_vm6 = vcmp.gt.s32.totalorder %v7132_v43, 1  ;;  %vm1422_vm14 = vcmp.gt.s32.totalorder %v7132_v43, 2 }
 0x6a6   : > { %7115 = vst [vmem:[#allocation176_spill] sm:$0xff] %v5940_v42  ;;  %v6021_v8 = vadd.s32 %v1114_v20, %v1112_v17  ;;  %v7140_v20 = vld [vmem:[#allocation6_spill] sm:$0xff] }
 0x6a7   : > { %v1337_v35 = vshll.u32 %v1336_v1, 16  ;;  %vm1272_vm8 = vcmp.gt.s32.totalorder %v7140_v20, 1  ;;  %v7143_v1 = vld [vmem:[#allocation21_spill] sm:$0xff]  ;;  %vm1424_vm0 = vcmp.gt.s32.totalorder %v7140_v20, 2 }
 0x6ab   : > { %v5952_v58 = vpop.xlane.xlu2 %3042 }
 0x6ac   : > { %7116 = vst [vmem:[#allocation177_spill] sm:$0xff] %v5952_v58  ;;  %v5956_v7 = vpop.xlane.xlu1 %3055  ;;  %v5958_v29 = vpop.xlane.xlu0 %3044 }
 0x6ad   : > { %7117 = vst [vmem:[#allocation178_spill] sm:$0xff] %v5956_v7  ;;  %3409 = vrot.lane.b32.xlu0 %v1273_v26, %s4020_s28  ;;  %v1212_v7 = vadd.s32 %v1211_v14, %v1209_v45  ;;  %v1086_v26 = vcvt.f32.s32 %v5123_v41  ;;  %v7123_v45 = vld [vmem:[#allocation2_spill] sm:$0xff]  ;;  %v7124_v41 = vld [vmem:[#allocation7_spill] sm:$0xff] }
 0x6ae   : > { %7118 = vst [vmem:[#allocation179_spill] sm:$0xff] %v5958_v29  ;;  %vm1267_vm4 = vcmp.gt.s32.totalorder %v7123_v45, 1  ;;  %v1099_v34 = vcvt.f32.s32 %v7124_v41  ;;  %v1324_v41 = vshll.u32 %v1323_v62, 16  ;;  %vm1419_vm11 = vcmp.gt.s32.totalorder %v7123_v45, 2  ;;  %v7280_v29 = vld [vmem:[#allocation127_spill] sm:$0xff] }
 0x6af   : > { %v1276_v0 = vsel %vm1268_vm3, %v1212_v7, %v5974_v21  ;;  %v5997_v59 = vadd.s32 %v1088_v2, %v1086_v26  ;;  %v1275_v7 = vsel %vm1267_vm4, %v1199_v25, %v5983_v40  ;;  %v1127_v25 = vshll.u32 %v1126_v31, 16 }
 0x6b0   : > { %v6006_v2 = vadd.s32 %v1101_v5, %v1099_v34  ;;  %v7135_v34 = vld [vmem:[#allocation9_spill] sm:$0xff]  ;;  %vm1571_vm3 = vcmp.gt.s32.totalorder %v7123_v45, 3  ;;  %vm1572_vm4 = vcmp.gt.s32.totalorder %v4932_v6, 3 }
 0x6b1   : > { %v1277_v32 = vsel %vm1269_vm5, %v1225_v44, %v5997_v59  ;;  %v1125_v31 = vcvt.f32.s32 %v7135_v34  ;;  %vm1573_vm5 = vcmp.gt.s32.totalorder %v7126_v36, 3 }
 0x6b2   : > { %3411 = vrot.lane.b32.xlu1 %v1274_v30, %s4020_s28  ;;  %v1248_v30 = vcvt.f32.s32 %v7127_v53  ;;  %v1278_v5 = vsel %vm1270_vm6, %v1238_v24, %v6006_v2  ;;  %v7136_v53 = vld [vmem:[#allocation19_spill] sm:$0xff]  ;;  %v7139_v24 = vld [vmem:[#allocation20_spill] sm:$0xff]  ;;  %vm1574_vm6 = vcmp.gt.s32.totalorder %v7132_v43, 3 }
 0x6b3   : > { %v5980_v11 = vpop.xlane.xlu2 %3057  ;;  %v6027_v62 = vadd.s32 %v1127_v25, %v1125_v31  ;;  %v7142_v25 = vld [vmem:[#allocation17_spill] sm:$0xff] }
 0x6b4   : > { %7119 = vst [vmem:[#allocation180_spill] sm:$0xff] %v5980_v11  ;;  %v5985_v10 = vpop.xlane.xlu1 %3070  ;;  %v5987_v14 = vpop.xlane.xlu0 %3068  ;;  %v1251_v9 = vadd.s32 %v1250_v13, %v1248_v30  ;;  %v1349_v30 = vcvt.f32.s32 %v7136_v53  ;;  %v1348_v31 = vcvt.f32.s32 %v7142_v25  ;;  %v1375_v53 = vcvt.f32.s32 %v7143_v1  ;;  %v7149_v25 = vld [vmem:[#allocation26_spill] sm:$0xff] }
 0x6b5   : > { %7120 = vst [vmem:[#allocation181_spill] sm:$0xff] %v5985_v10  ;;  %3415 = vrot.lane.b32.xlu0 %v1276_v0, %s4020_s28  ;;  %v7129_v0 = vld [vmem:[#allocation12_spill] sm:$0xff]  ;;  %v1401_v1 = vcvt.f32.s32 %v7149_v25  ;;  %v7163_v11 = vld [vmem:[#allocation38_spill] sm:$0xff] }
 0x6b6   : > { %7121 = vst [vmem:[#allocation182_spill] sm:$0xff] %v5987_v14  ;;  %v1261_v26 = vcvt.f32.s32 %v7129_v0  ;;  %v7138_v0 = vld [vmem:[#allocation5_spill] sm:$0xff]  ;;  %v1362_v14 = vcvt.f32.s32 %v7139_v24 }
 0x6b7   : > { %vm1271_vm7 = vcmp.gt.s32.totalorder %v7138_v0, 1  ;;  %vm1423_vm15 = vcmp.gt.s32.totalorder %v7138_v0, 2 }
 0x6b8   : > { %3413 = vrot.lane.b32.xlu2 %v1275_v7, %s4020_s28  ;;  %v1264_v13 = vadd.s32 %v1263_v63, %v1261_v26  ;;  %v7141_v63 = vld [vmem:[#allocation16_spill] sm:$0xff]  ;;  %v1350_v26 = vshll.u32 %v1349_v30, 16 }
 0x6b9   : > { %v1335_v17 = vcvt.f32.s32 %v7141_v63 }
 0x6ba   : > { %3417 = vrot.lane.b32.xlu1 %v1277_v32, %s4020_s28  ;;  %v7137_v32 = vld [vmem:[#allocation13_spill] sm:$0xff] }
 0x6bb   : > { %v6012_v7 = vpop.xlane.xlu2 %3081  ;;  %v1322_v28 = vcvt.f32.s32 %v7137_v32  ;;  %v1338_v34 = vadd.s32 %v1337_v35, %v1335_v17  ;;  %v7148_v35 = vld [vmem:[#allocation18_spill] sm:$0xff]  ;;  %v1376_v17 = vshll.u32 %v1375_v53, 16  ;;  %v7152_v53 = vld [vmem:[#allocation27_spill] sm:$0xff] }
 0x6bc   : > { %7131 = vst [vmem:[#allocation10_spill] sm:$0xff] %v6012_v7  ;;  %v6015_v39 = vpop.xlane.xlu1 %3142  ;;  %v6017_v44 = vpop.xlane.xlu0 %3083  ;;  %v1361_v63 = vcvt.f32.s32 %v7148_v35  ;;  %v7151_v35 = vld [vmem:[#allocation23_spill] sm:$0xff] }
 0x6bd   : > { %7133 = vst [vmem:[#allocation2_spill] sm:$0xff] %v6015_v39  ;;  %3419 = vrot.lane.b32.xlu0 %v1278_v5, %s4020_s28  ;;  %v1279_v39 = vsel %vm1271_vm7, %v1251_v9, %v6021_v8  ;;  %v1325_v7 = vadd.s32 %v1324_v41, %v1322_v28  ;;  %v1280_v5 = vsel %vm1272_vm8, %v1264_v13, %v6027_v62  ;;  %v1363_v41 = vshll.u32 %v1362_v14, 16  ;;  %v7147_v13 = vld [vmem:[#allocation25_spill] sm:$0xff] }
 0x6be   : > { %7134 = vst [vmem:[#allocation7_spill] sm:$0xff] %v6017_v44  ;;  %v1351_v28 = vadd.s32 %v1350_v26, %v1348_v31  ;;  %v1388_v24 = vcvt.f32.s32 %v7147_v13  ;;  %vm1575_vm7 = vcmp.gt.s32.totalorder %v7138_v0, 3  ;;  %vm1576_vm8 = vcmp.gt.s32.totalorder %v7140_v20, 3 }
 0x6bf   : > { %v1425_v30 = vsel %vm1417_vm9, %v1325_v7, %v5947_v4  ;;  %v1364_v14 = vadd.s32 %v1363_v41, %v1361_v63  ;;  %v7150_v7 = vld [vmem:[#allocation22_spill] sm:$0xff]  ;;  %v1402_v41 = vshll.u32 %v1401_v1, 16  ;;  %vm1721_vm9 = vcmp.gt.s32.totalorder %v4877_v54, 4 }
 0x6c0   : > { %3421 = vrot.lane.b32.xlu2 %v1279_v39, %s4020_s28  ;;  %v1374_v26 = vcvt.f32.s32 %v7150_v7  ;;  %v1389_v31 = vshll.u32 %v1388_v24, 16  ;;  %v1427_v13 = vsel %vm1419_vm11, %v1351_v28, %v5983_v40  ;;  %v7155_v7 = vld [vmem:[#allocation31_spill] sm:$0xff]  ;;  %vm1723_vm11 = vcmp.gt.s32.totalorder %v7123_v45, 4 }
 0x6c1   : > { %v1428_v25 = vsel %vm1420_vm12, %v1364_v14, %v5974_v21  ;;  %v1475_v28 = vcvt.f32.s32 %v7155_v7  ;;  %v7158_v14 = vld [vmem:[#allocation28_spill] sm:$0xff]  ;;  %vm1724_vm12 = vcmp.gt.s32.totalorder %v4932_v6, 4 }
 0x6c2   : > { %3423 = vrot.lane.b32.xlu1 %v1280_v5, %s4020_s28  ;;  %v1426_v5 = vsel %vm1418_vm10, %v1338_v34, %v5966_v51  ;;  %vm1722_vm10 = vcmp.gt.s32.totalorder %v4903_v37, 4 }
 0x6c3   : > { %v6038_v9 = vpop.xlane.xlu2 %3144 }
 0x6c4   : > { %7144 = vst [vmem:[#allocation14_spill] sm:$0xff] %v6038_v9  ;;  %v6041_v39 = vpop.xlane.xlu1 %3157  ;;  %v6043_v32 = vpop.xlane.xlu0 %3155 }
 0x6c5   : > { %7145 = vst [vmem:[#allocation3_spill] sm:$0xff] %v6041_v39  ;;  %3425 = vrot.lane.b32.xlu0 %v1425_v30, %s4026_s6  ;;  %v1377_v30 = vadd.s32 %v1376_v17, %v1374_v26  ;;  %v1414_v39 = vcvt.f32.s32 %v7152_v53  ;;  %v7156_v17 = vld [vmem:[#allocation24_spill] sm:$0xff] }
 0x6c6   : > { %7146 = vst [vmem:[#allocation11_spill] sm:$0xff] %v6043_v32  ;;  %v1387_v32 = vcvt.f32.s32 %v7151_v35  ;;  %v1400_v26 = vcvt.f32.s32 %v7156_v17  ;;  %v7159_v17 = vld [vmem:[#allocation29_spill] sm:$0xff] }
 0x6c7   : > { %v1429_v35 = vsel %vm1421_vm13, %v1377_v30, %v5997_v59  ;;  %vm1725_vm13 = vcmp.gt.s32.totalorder %v7126_v36, 4 }
 0x6c8   : > { %3427 = vrot.lane.b32.xlu2 %v1426_v5, %s4026_s6  ;;  %v1390_v24 = vadd.s32 %v1389_v31, %v1387_v32  ;;  %v1403_v53 = vadd.s32 %v1402_v41, %v1400_v26  ;;  %v1413_v32 = vcvt.f32.s32 %v7158_v14  ;;  %v1476_v31 = vshll.u32 %v1475_v28, 16  ;;  %v7161_v28 = vld [vmem:[#allocation37_spill] sm:$0xff] }
 0x6c9   : > { %v1514_v10 = vcvt.f32.s32 %v7161_v28 }
 0x6ca   : > { %3429 = vrot.lane.b32.xlu1 %v1427_v13, %s4026_s6  ;;  %v1415_v13 = vshll.u32 %v1414_v39, 16  ;;  %v1430_v7 = vsel %vm1422_vm14, %v1390_v24, %v6006_v2  ;;  %v7160_v39 = vld [vmem:[#allocation33_spill] sm:$0xff]  ;;  %v1431_v44 = vsel %vm1423_vm15, %v1403_v53, %v6021_v8  ;;  %v1527_v53 = vcvt.f32.s32 %v7163_v11 }
 0x6cb   : > { %v6059_v34 = vpop.xlane.xlu2 %3168  ;;  %v1501_v9 = vcvt.f32.s32 %v7160_v39  ;;  %vm1726_vm14 = vcmp.gt.s32.totalorder %v7132_v43, 4  ;;  %vm1727_vm15 = vcmp.gt.s32.totalorder %v7138_v0, 4 }
 0x6cc   : > { %7153 = vst [vmem:[#allocation8_spill] sm:$0xff] %v6059_v34  ;;  %v3182_v63 = vpop.xlane.xlu1 %3181  ;;  %v6062_v5 = vpop.xlane.xlu0 %3170  ;;  %v7157_v34 = vld [vmem:[#allocation32_spill] sm:$0xff] }
 0x6cd   : > { %7154 = vst [vmem:[#allocation12_spill] sm:$0xff] %v6062_v5  ;;  %3431 = vrot.lane.b32.xlu0 %v1428_v25, %s4026_s6  ;;  %v1488_v1 = vcvt.f32.s32 %v7157_v34  ;;  %v1416_v25 = vadd.s32 %v1415_v13, %v1413_v32  ;;  %v1474_v5 = vcvt.f32.s32 %v7159_v17  ;;  %v7162_v13 = vld [vmem:[#allocation30_spill] sm:$0xff]  ;;  %v1502_v39 = vshll.u32 %v1501_v9, 16 }
 0x6ce   : > { %v1487_v32 = vcvt.f32.s32 %v7162_v13 }
 0x6cf   : > { %v1489_v34 = vshll.u32 %v1488_v1, 16  ;;  %v1477_v14 = vadd.s32 %v1476_v31, %v1474_v5 }
 0x6d0   : > { %3433 = vrot.lane.b32.xlu2 %v1429_v35, %s4026_s6 }
 0x6d1   : > { %v1490_v42 = vadd.s32 %v1489_v34, %v1487_v32  ;;  %v1577_v9 = vsel %vm1569_vm1, %v1477_v14, %v5947_v4  ;;  %v7170_v14 = vld [vmem:[#allocation36_spill] sm:$0xff]  ;;  %vm1873_vm1 = vcmp.gt.s32.totalorder %v4877_v54, 5 }
 0x6d2   : > { %3435 = vrot.lane.b32.xlu1 %v1430_v7, %s4026_s6  ;;  %v3185_v7 = vcvt.f32.s32 %v3182_v63  ;;  %v1515_v63 = vshll.u32 %v1514_v10, 16 }
 0x6d3   : > { %v3184_v30 = vpop.xlane.xlu2 %3183 }
 0x6d4   : > { %v3197_v41 = vpop.xlane.xlu1 %3196  ;;  %v3186_v26 = vcvt.f32.s32 %v3184_v30  ;;  %v3195_v35 = vpop.xlane.xlu0 %3194  ;;  %v1432_v30 = vsel %vm1424_vm0, %v1416_v25, %v6027_v62  ;;  %v7167_v25 = vld [vmem:[#allocation35_spill] sm:$0xff]  ;;  %vm1728_vm0 = vcmp.gt.s32.totalorder %v7140_v20, 4 }
 0x6d5   : > { %v3199_v24 = vcvt.f32.s32 %v3197_v41  ;;  %3437 = vrot.lane.b32.xlu0 %v1431_v44, %s4026_s6  ;;  %v3198_v1 = vcvt.f32.s32 %v3195_v35  ;;  %v7165_v44 = vld [vmem:[#allocation34_spill] sm:$0xff]  ;;  %v1513_v34 = vcvt.f32.s32 %v7167_v25  ;;  %v7168_v35 = vld [vmem:[#allocation39_spill] sm:$0xff]  ;;  %v7171_v25 = vld [vmem:[#allocation44_spill] sm:$0xff] }
 0x6d6   : > { %v3187_v17 = vshll.u32 %v3186_v26, 16  ;;  %v1500_v31 = vcvt.f32.s32 %v7165_v44  ;;  %v1540_v11 = vcvt.f32.s32 %v7168_v35  ;;  %v1566_v35 = vcvt.f32.s32 %v7171_v25 }
 0x6d7   : > { %v3200_v58 = vshll.u32 %v3199_v24, 16  ;;  %v1528_v24 = vshll.u32 %v1527_v53, 16  ;;  %v1516_v10 = vadd.s32 %v1515_v63, %v1513_v34 }
 0x6d8   : > { %v6086_v5 = vadd.s32 %v3187_v17, %v3185_v7  ;;  %3439 = vrot.lane.b32.xlu2 %v1432_v30, %s4026_s6  ;;  %v1503_v26 = vadd.s32 %v1502_v39, %v1500_v31  ;;  %v1578_v7 = vsel %vm1570_vm2, %v1490_v42, %v5966_v51  ;;  %v1526_v39 = vcvt.f32.s32 %v7170_v14  ;;  %v7172_v42 = vld [vmem:[#allocation40_spill] sm:$0xff] }
 0x6d9   : > { %v6091_v41 = vadd.s32 %v3200_v58, %v3198_v1  ;;  %v7169_v58 = vld [vmem:[#allocation43_spill] sm:$0xff]  ;;  %v1541_v30 = vshll.u32 %v1540_v11, 16  ;;  %v1539_v63 = vcvt.f32.s32 %v7172_v42  ;;  %v1567_v14 = vshll.u32 %v1566_v35, 16 }
 0x6da   : > { %7164 = vst [vmem:[#allocation15_spill] sm:$0xff] %v6086_v5  ;;  %3441 = vrot.lane.b32.xlu1 %v1577_v9, %s4021_s29  ;;  %v1553_v17 = vcvt.f32.s32 %v7169_v58  ;;  %v1579_v9 = vsel %vm1571_vm3, %v1503_v26, %v5983_v40  ;;  %v1529_v53 = vadd.s32 %v1528_v24, %v1526_v39  ;;  %v7175_v26 = vld [vmem:[#allocation45_spill] sm:$0xff]  ;;  %v7178_v5 = vld [vmem:[#allocation50_spill] sm:$0xff]  ;;  %vm1874_vm2 = vcmp.gt.s32.totalorder %v4903_v37, 5 }
 0x6db   : > { %7166 = vst [vmem:[#allocation4_spill] sm:$0xff] %v6091_v41  ;;  %v3208_v28 = vpop.xlane.xlu2 %3207  ;;  %v1542_v11 = vadd.s32 %v1541_v30, %v1539_v63  ;;  %v1627_v24 = vcvt.f32.s32 %v7175_v26  ;;  %v7177_v30 = vld [vmem:[#allocation42_spill] sm:$0xff]  ;;  %vm1875_vm3 = vcmp.gt.s32.totalorder %v7123_v45, 5 }
 0x6dc   : > { %v3221_v13 = vpop.xlane.xlu1 %3220  ;;  %v3210_v32 = vpop.xlane.xlu0 %3209  ;;  %v3211_v44 = vcvt.f32.s32 %v3208_v28  ;;  %v1554_v34 = vshll.u32 %v1553_v17, 16  ;;  %v7174_v28 = vld [vmem:[#allocation41_spill] sm:$0xff]  ;;  %v1581_v17 = vsel %vm1573_vm5, %v1529_v53, %v5997_v59  ;;  %v1565_v63 = vcvt.f32.s32 %v7177_v30 }
 0x6dd   : > { %v3212_v1 = vcvt.f32.s32 %v3210_v32  ;;  %3443 = vrot.lane.b32.xlu0 %v1578_v7, %s4021_s29  ;;  %v1580_v7 = vsel %vm1572_vm4, %v1516_v10, %v5974_v21  ;;  %v1552_v58 = vcvt.f32.s32 %v7174_v28  ;;  %v1628_v26 = vshll.u32 %v1627_v24, 16 }
 0x6de   : > { %v1568_v41 = vadd.s32 %v1567_v14, %v1565_v63  ;;  %v1653_v53 = vcvt.f32.s32 %v7178_v5  ;;  %vm1876_vm4 = vcmp.gt.s32.totalorder %v4932_v6, 5  ;;  %vm1877_vm5 = vcmp.gt.s32.totalorder %v7126_v36, 5 }
 0x6df   : > { %v3213_v31 = vshll.u32 %v3212_v1, 16 }
 0x6e0   : > { %3445 = vrot.lane.b32.xlu2 %v1579_v9, %s4021_s29 }
 0x6e1   : > { %v6108_v32 = vadd.s32 %v3213_v31, %v3211_v44  ;;  %v1555_v44 = vadd.s32 %v1554_v34, %v1552_v58  ;;  %v7176_v31 = vld [vmem:[#allocation49_spill] sm:$0xff]  ;;  %v7180_v58 = vld [vmem:[#allocation46_spill] sm:$0xff] }
 0x6e2   : > { %3447 = vrot.lane.b32.xlu1 %v1580_v7, %s4021_s29  ;;  %v1640_v42 = vcvt.f32.s32 %v7176_v31  ;;  %v3224_v7 = vcvt.f32.s32 %v3221_v13 }
 0x6e3   : > { %7173 = vst [vmem:[#allocation9_spill] sm:$0xff] %v6108_v32  ;;  %v3223_v1 = vpop.xlane.xlu2 %3222  ;;  %v1583_v24 = vsel %vm1575_vm7, %v1555_v44, %v6021_v8  ;;  %v7185_v44 = vld [vmem:[#allocation48_spill] sm:$0xff]  ;;  %vm1879_vm7 = vcmp.gt.s32.totalorder %v7138_v0, 5 }
 0x6e4   : > { %v3236_v39 = vpop.xlane.xlu1 %3235  ;;  %v3225_v9 = vcvt.f32.s32 %v3223_v1  ;;  %v3234_v25 = vpop.xlane.xlu0 %3233  ;;  %v1582_v1 = vsel %vm1574_vm6, %v1542_v11, %v6006_v2  ;;  %v1641_v13 = vshll.u32 %v1640_v42, 16  ;;  %v7182_v11 = vld [vmem:[#allocation47_spill] sm:$0xff]  ;;  %vm1878_vm6 = vcmp.gt.s32.totalorder %v7132_v43, 5 }
 0x6e5   : > { %v3238_v10 = vcvt.f32.s32 %v3236_v39  ;;  %3449 = vrot.lane.b32.xlu0 %v1581_v17, %s4021_s29  ;;  %v3237_v35 = vcvt.f32.s32 %v3234_v25  ;;  %v1626_v39 = vcvt.f32.s32 %v7180_v58  ;;  %v1639_v14 = vcvt.f32.s32 %v7182_v11  ;;  %v7183_v17 = vld [vmem:[#allocation51_spill] sm:$0xff]  ;;  %v7186_v11 = vld [vmem:[#allocation56_spill] sm:$0xff] }
 0x6e6   : > { %v3226_v28 = vshll.u32 %v3225_v9, 16  ;;  %v1666_v5 = vcvt.f32.s32 %v7183_v17  ;;  %v1692_v17 = vcvt.f32.s32 %v7186_v11 }
 0x6e7   : > { %v3239_v32 = vshll.u32 %v3238_v10, 16  ;;  %v1629_v25 = vadd.s32 %v1628_v26, %v1626_v39  ;;  %v1654_v10 = vshll.u32 %v1653_v53, 16  ;;  %v1642_v42 = vadd.s32 %v1641_v13, %v1639_v14 }
 0x6e8   : > { %v6122_v34 = vadd.s32 %v3226_v28, %v3224_v7  ;;  %3451 = vrot.lane.b32.xlu2 %v1582_v1, %s4021_s29  ;;  %v1584_v7 = vsel %vm1576_vm8, %v1568_v41, %v6027_v62  ;;  %v1652_v26 = vcvt.f32.s32 %v7185_v44  ;;  %v1667_v1 = vshll.u32 %v1666_v5, 16  ;;  %v7187_v41 = vld [vmem:[#allocation52_spill] sm:$0xff] }
 0x6e9   : > { %v6127_v9 = vadd.s32 %v3239_v32, %v3237_v35  ;;  %v7184_v32 = vld [vmem:[#allocation55_spill] sm:$0xff]  ;;  %v1665_v13 = vcvt.f32.s32 %v7187_v41  ;;  %v1693_v44 = vshll.u32 %v1692_v17, 16  ;;  %vm1880_vm8 = vcmp.gt.s32.totalorder %v7140_v20, 5 }
 0x6ea   : > { %7179 = vst [vmem:[#allocation19_spill] sm:$0xff] %v6122_v34  ;;  %3453 = vrot.lane.b32.xlu1 %v1583_v24, %s4021_s29  ;;  %v1679_v28 = vcvt.f32.s32 %v7184_v32  ;;  %v1729_v24 = vsel %vm1721_vm9, %v1629_v25, %v5947_v4  ;;  %v1655_v53 = vadd.s32 %v1654_v10, %v1652_v26  ;;  %v7190_v10 = vld [vmem:[#allocation57_spill] sm:$0xff]  ;;  %v7193_v34 = vld [vmem:[#allocation62_spill] sm:$0xff]  ;;  %vm2025_vm9 = vcmp.gt.s32.totalorder %v4877_v54, 6 }
 0x6eb   : > { %7181 = vst [vmem:[#allocation13_spill] sm:$0xff] %v6127_v9  ;;  %v3295_v31 = vpop.xlane.xlu2 %3294  ;;  %v1668_v5 = vadd.s32 %v1667_v1, %v1665_v13  ;;  %v1705_v32 = vcvt.f32.s32 %v7190_v10  ;;  %v7192_v1 = vld [vmem:[#allocation54_spill] sm:$0xff] }
 0x6ec   : > { %v3308_v30 = vpop.xlane.xlu1 %3307  ;;  %v3297_v63 = vpop.xlane.xlu0 %3296  ;;  %v3298_v58 = vcvt.f32.s32 %v3295_v31  ;;  %v1680_v14 = vshll.u32 %v1679_v28, 16  ;;  %v7189_v31 = vld [vmem:[#allocation53_spill] sm:$0xff]  ;;  %v1731_v28 = vsel %vm1723_vm11, %v1655_v53, %v5983_v40  ;;  %v1691_v13 = vcvt.f32.s32 %v7192_v1 }
 0x6ed   : > { %v3299_v35 = vcvt.f32.s32 %v3297_v63  ;;  %3455 = vrot.lane.b32.xlu0 %v1584_v7, %s4021_s29  ;;  %v1730_v7 = vsel %vm1722_vm10, %v1642_v42, %v5966_v51  ;;  %v1678_v25 = vcvt.f32.s32 %v7189_v31  ;;  %v1706_v10 = vshll.u32 %v1705_v32, 16 }
 0x6ee   : > { %v1694_v9 = vadd.s32 %v1693_v44, %v1691_v13  ;;  %v1779_v53 = vcvt.f32.s32 %v7193_v34  ;;  %vm2026_vm10 = vcmp.gt.s32.totalorder %v4903_v37, 6  ;;  %vm2027_vm11 = vcmp.gt.s32.totalorder %v7123_v45, 6 }
 0x6ef   : > { %v3300_v39 = vshll.u32 %v3299_v35, 16 }
 0x6f0   : > { %3457 = vrot.lane.b32.xlu2 %v1729_v24, %s4027_s7 }
 0x6f1   : > { %v6144_v63 = vadd.s32 %v3300_v39, %v3298_v58  ;;  %v1681_v58 = vadd.s32 %v1680_v14, %v1678_v25  ;;  %v7191_v39 = vld [vmem:[#allocation61_spill] sm:$0xff]  ;;  %v7195_v25 = vld [vmem:[#allocation58_spill] sm:$0xff] }
 0x6f2   : > { %3459 = vrot.lane.b32.xlu1 %v1730_v7, %s4027_s7  ;;  %v1718_v41 = vcvt.f32.s32 %v7191_v39  ;;  %v3311_v7 = vcvt.f32.s32 %v3308_v30 }
 0x6f3   : > { %7188 = vst [vmem:[#allocation5_spill] sm:$0xff] %v6144_v63  ;;  %v3310_v35 = vpop.xlane.xlu2 %3309  ;;  %v1733_v32 = vsel %vm1725_vm13, %v1681_v58, %v5997_v59  ;;  %v7200_v58 = vld [vmem:[#allocation60_spill] sm:$0xff]  ;;  %vm2029_vm13 = vcmp.gt.s32.totalorder %v7126_v36, 6 }
 0x6f4   : > { %v3323_v26 = vpop.xlane.xlu1 %3322  ;;  %v3312_v24 = vcvt.f32.s32 %v3310_v35  ;;  %v3321_v11 = vpop.xlane.xlu0 %3320  ;;  %v1732_v35 = vsel %vm1724_vm12, %v1668_v5, %v5974_v21  ;;  %v1719_v30 = vshll.u32 %v1718_v41, 16  ;;  %v7197_v5 = vld [vmem:[#allocation59_spill] sm:$0xff]  ;;  %vm2028_vm12 = vcmp.gt.s32.totalorder %v4932_v6, 6 }
 0x6f5   : > { %v3325_v42 = vcvt.f32.s32 %v3323_v26  ;;  %3461 = vrot.lane.b32.xlu0 %v1731_v28, %s4027_s7  ;;  %v3324_v17 = vcvt.f32.s32 %v3321_v11  ;;  %v1704_v26 = vcvt.f32.s32 %v7195_v25  ;;  %v1717_v44 = vcvt.f32.s32 %v7197_v5  ;;  %v7198_v28 = vld [vmem:[#allocation63_spill] sm:$0xff]  ;;  %v7201_v5 = vld [vmem:[#allocation68_spill] sm:$0xff] }
 0x6f6   : > { %v3313_v31 = vshll.u32 %v3312_v24, 16  ;;  %v1792_v34 = vcvt.f32.s32 %v7198_v28  ;;  %v1818_v28 = vcvt.f32.s32 %v7201_v5 }
 0x6f7   : > { %v3326_v63 = vshll.u32 %v3325_v42, 16  ;;  %v1707_v11 = vadd.s32 %v1706_v10, %v1704_v26  ;;  %v1780_v42 = vshll.u32 %v1779_v53, 16  ;;  %v1720_v41 = vadd.s32 %v1719_v30, %v1717_v44 }
 0x6f8   : > { %v6158_v14 = vadd.s32 %v3313_v31, %v3311_v7  ;;  %3463 = vrot.lane.b32.xlu2 %v1732_v35, %s4027_s7  ;;  %v1734_v7 = vsel %vm1726_vm14, %v1694_v9, %v6006_v2  ;;  %v1778_v10 = vcvt.f32.s32 %v7200_v58  ;;  %v1793_v35 = vshll.u32 %v1792_v34, 16  ;;  %v7202_v9 = vld [vmem:[#allocation64_spill] sm:$0xff] }
 0x6f9   : > { %v6163_v24 = vadd.s32 %v3326_v63, %v3324_v17  ;;  %v7199_v63 = vld [vmem:[#allocation67_spill] sm:$0xff]  ;;  %v1791_v30 = vcvt.f32.s32 %v7202_v9  ;;  %v1819_v58 = vshll.u32 %v1818_v28, 16  ;;  %vm2030_vm14 = vcmp.gt.s32.totalorder %v7132_v43, 6 }
 0x6fa   : > { %7194 = vst [vmem:[#allocation20_spill] sm:$0xff] %v6158_v14  ;;  %3465 = vrot.lane.b32.xlu1 %v1733_v32, %s4027_s7  ;;  %v1805_v31 = vcvt.f32.s32 %v7199_v63  ;;  %v1735_v32 = vsel %vm1727_vm15, %v1707_v11, %v6021_v8  ;;  %v1781_v53 = vadd.s32 %v1780_v42, %v1778_v10  ;;  %v7205_v11 = vld [vmem:[#allocation69_spill] sm:$0xff]  ;;  %vm2031_vm15 = vcmp.gt.s32.totalorder %v7138_v0, 6  ;;  %v7244_v14 = vld [vmem:[#allocation104_spill] sm:$0xff] }
 0x6fb   : > { %7196 = vst [vmem:[#allocation6_spill] sm:$0xff] %v6163_v24  ;;  %v3334_v39 = vpop.xlane.xlu2 %3333  ;;  %v1794_v34 = vadd.s32 %v1793_v35, %v1791_v30  ;;  %v1831_v42 = vcvt.f32.s32 %v7205_v11  ;;  %v7207_v35 = vld [vmem:[#allocation66_spill] sm:$0xff] }
 0x6fc   : > { %v3347_v1 = vpop.xlane.xlu1 %3346  ;;  %v3336_v13 = vpop.xlane.xlu0 %3335  ;;  %v3337_v25 = vcvt.f32.s32 %v3334_v39  ;;  %v1806_v44 = vshll.u32 %v1805_v31, 16  ;;  %v7204_v39 = vld [vmem:[#allocation65_spill] sm:$0xff]  ;;  %v1881_v31 = vsel %vm1873_vm1, %v1781_v53, %v5947_v4  ;;  %v1817_v30 = vcvt.f32.s32 %v7207_v35  ;;  %v7208_v53 = vld [vmem:[#allocation74_spill] sm:$0xff] }
 0x6fd   : > { %v3338_v17 = vcvt.f32.s32 %v3336_v13  ;;  %3467 = vrot.lane.b32.xlu0 %v1734_v7, %s4027_s7  ;;  %v1736_v7 = vsel %vm1728_vm0, %v1720_v41, %v6027_v62  ;;  %v1804_v63 = vcvt.f32.s32 %v7204_v39  ;;  %v1832_v11 = vshll.u32 %v1831_v42, 16 }
 0x6fe   : > { %v1820_v24 = vadd.s32 %v1819_v58, %v1817_v30  ;;  %vm2032_vm0 = vcmp.gt.s32.totalorder %v7140_v20, 6  ;;  %vm7240_vm1 = vcmask 7168  }
 0x6ff   : > { %v3339_v26 = vshll.u32 %v3338_v17, 16 }
 0x700   : > { %3469 = vrot.lane.b32.xlu2 %v1735_v32, %s4027_s7 }
 0x701   : > { %v6180_v13 = vadd.s32 %v3339_v26, %v3337_v25  ;;  %v1807_v25 = vadd.s32 %v1806_v44, %v1804_v63  ;;  %v7206_v26 = vld [vmem:[#allocation73_spill] sm:$0xff]  ;;  %v1857_v44 = vcvt.f32.s32 %v7208_v53 }
 0x702   : > { %3471 = vrot.lane.b32.xlu1 %v1736_v7, %s4027_s7  ;;  %v1844_v9 = vcvt.f32.s32 %v7206_v26  ;;  %v3350_v7 = vcvt.f32.s32 %v3347_v1  ;;  %v7213_v26 = vld [vmem:[#allocation75_spill] sm:$0xff] }
 0x703   : > { %7203 = vst [vmem:[#allocation16_spill] sm:$0xff] %v6180_v13  ;;  %v3349_v17 = vpop.xlane.xlu2 %3348  ;;  %v1883_v42 = vsel %vm1875_vm3, %v1807_v25, %v5983_v40  ;;  %v1858_v30 = vshll.u32 %v1857_v44, 16  ;;  %v7215_v25 = vld [vmem:[#allocation72_spill] sm:$0xff]  ;;  %vm2177_vm3 = vcmp.gt.s32.totalorder %v4877_v54, 7 }
 0x704   : > { %v3362_v10 = vpop.xlane.xlu1 %3361  ;;  %v3351_v32 = vcvt.f32.s32 %v3349_v17  ;;  %v3360_v5 = vpop.xlane.xlu0 %3359  ;;  %v1882_v17 = vsel %vm1874_vm2, %v1794_v34, %v5966_v51  ;;  %v1845_v1 = vshll.u32 %v1844_v9, 16  ;;  %v7212_v34 = vld [vmem:[#allocation71_spill] sm:$0xff]  ;;  %v1856_v53 = vcvt.f32.s32 %v7215_v25  ;;  %v7216_v44 = vld [vmem:[#allocation80_spill] sm:$0xff] }
 0x705   : > { %v3364_v41 = vcvt.f32.s32 %v3362_v10  ;;  %3473 = vrot.lane.b32.xlu0 %v1881_v31, %s4028_s8  ;;  %v3363_v13 = vcvt.f32.s32 %v3360_v5  ;;  %v7210_v10 = vld [vmem:[#allocation70_spill] sm:$0xff]  ;;  %v1843_v58 = vcvt.f32.s32 %v7212_v34  ;;  %v7214_v9 = vld [vmem:[#allocation79_spill] sm:$0xff]  ;;  %vm7241_vm2 = vcmask 15360  }
 0x706   : > { %v3352_v39 = vshll.u32 %v3351_v32, 16  ;;  %v1830_v31 = vcvt.f32.s32 %v7210_v10  ;;  %v1859_v34 = vadd.s32 %v1858_v30, %v1856_v53 }
 0x707   : > { %v3365_v28 = vshll.u32 %v3364_v41, 16  ;;  %v1870_v41 = vcvt.f32.s32 %v7213_v26  ;;  %v1944_v26 = vcvt.f32.s32 %v7216_v44 }
 0x708   : > { %v6194_v63 = vadd.s32 %v3352_v39, %v3350_v7  ;;  %3475 = vrot.lane.b32.xlu2 %v1882_v17, %s4028_s8  ;;  %v1833_v5 = vadd.s32 %v1832_v11, %v1830_v31  ;;  %v1884_v39 = vsel %vm1876_vm4, %v1820_v24, %v5974_v21  ;;  %v1846_v17 = vadd.s32 %v1845_v1, %v1843_v58  ;;  %v7217_v24 = vld [vmem:[#allocation76_spill] sm:$0xff] }
 0x709   : > { %v6199_v32 = vadd.s32 %v3365_v28, %v3363_v13  ;;  %v1931_v13 = vcvt.f32.s32 %v7214_v9  ;;  %v1871_v11 = vshll.u32 %v1870_v41, 16  ;;  %v1869_v1 = vcvt.f32.s32 %v7217_v24 }
 0x70a   : > { %7209 = vst [vmem:[#allocation17_spill] sm:$0xff] %v6194_v63  ;;  %3477 = vrot.lane.b32.xlu1 %v1883_v42, %s4028_s8  ;;  %v1885_v42 = vsel %vm1877_vm5, %v1833_v5, %v5997_v59  ;;  %v7220_v5 = vld [vmem:[#allocation81_spill] sm:$0xff]  ;;  %v1945_v53 = vshll.u32 %v1944_v26, 16  ;;  %v1887_v44 = vsel %vm1879_vm7, %v1859_v34, %v6021_v8  ;;  %v7225_v34 = vld [vmem:[#allocation82_spill] sm:$0xff]  ;;  %vm2178_vm4 = vcmp.gt.s32.totalorder %v4903_v37, 7  ;;  %vm7249_vm7 = vmmov %vm7241_vm2 }
 0x70b   : > { %7211 = vst [vmem:[#allocation21_spill] sm:$0xff] %v6199_v32  ;;  %v3373_v35 = vpop.xlane.xlu2 %3372  ;;  %v1932_v58 = vshll.u32 %v1931_v13, 16  ;;  %v1872_v41 = vadd.s32 %v1871_v11, %v1869_v1  ;;  %v1957_v30 = vcvt.f32.s32 %v7220_v5  ;;  %vm2179_vm5 = vcmp.gt.s32.totalorder %v7123_v45, 7 }
 0x70c   : > { %v3375_v7 = vpop.xlane.xlu0 %3374  ;;  %v3376_v10 = vcvt.f32.s32 %v3373_v35  ;;  %v7219_v35 = vld [vmem:[#allocation77_spill] sm:$0xff] }
 0x70d   : > { %v3377_v28 = vcvt.f32.s32 %v3375_v7  ;;  %3479 = vrot.lane.b32.xlu0 %v1884_v39, %s4028_s8  ;;  %v1886_v39 = vsel %vm1878_vm6, %v1846_v17, %v6006_v2  ;;  %v1930_v9 = vcvt.f32.s32 %v7219_v35  ;;  %v7222_v17 = vld [vmem:[#allocation78_spill] sm:$0xff]  ;;  %v1888_v35 = vsel %vm1880_vm8, %v1872_v41, %v6027_v62  ;;  %vm7248_vm6 = vmmov %vm7240_vm1 }
 0x70e   : > { %v1943_v24 = vcvt.f32.s32 %v7222_v17  ;;  %vm2180_vm8 = vcmp.gt.s32.totalorder %v4932_v6, 7 }
 0x70f   : > { %v3378_v31 = vshll.u32 %v3377_v28, 16  ;;  %v3386_v28 = vpop.xlane.xlu1 %3385  ;;  %v1933_v13 = vadd.s32 %v1932_v58, %v1930_v9  ;;  %v1956_v58 = vcvt.f32.s32 %v7225_v34 }
 0x710   : > { %3481 = vrot.lane.b32.xlu2 %v1885_v42, %s4028_s8  ;;  %v3389_v11 = vcvt.f32.s32 %v3386_v28  ;;  %v1946_v5 = vadd.s32 %v1945_v53, %v1943_v24  ;;  %v7227_v53 = vld [vmem:[#allocation87_spill] sm:$0xff] }
 0x711   : > { %v6216_v7 = vadd.s32 %v3378_v31, %v3376_v10  ;;  %v7221_v10 = vld [vmem:[#allocation85_spill] sm:$0xff]  ;;  %v2033_v28 = vsel %vm2025_vm9, %v1933_v13, %v5947_v4  ;;  %v7229_v13 = vld [vmem:[#allocation84_spill] sm:$0xff]  ;;  %vm7252_vm9 = vmmov %vm7240_vm1 }
 0x712   : > { %3483 = vrot.lane.b32.xlu1 %v1886_v39, %s4028_s8  ;;  %v1970_v31 = vcvt.f32.s32 %v7221_v10  ;;  %v1958_v39 = vshll.u32 %v1957_v30, 16  ;;  %v2034_v17 = vsel %vm2026_vm10, %v1946_v5, %v5966_v51  ;;  %v7231_v5 = vld [vmem:[#allocation88_spill] sm:$0xff]  ;;  %vm7254_vm10 = vmmov %vm7241_vm2 }
 0x713   : > { %7218 = vst [vmem:[#allocation25_spill] sm:$0xff] %v6216_v7  ;;  %v3388_v25 = vpop.xlane.xlu2 %3387  ;;  %v7223_v7 = vld [vmem:[#allocation86_spill] sm:$0xff] }
 0x714   : > { %v3390_v42 = vcvt.f32.s32 %v3388_v25  ;;  %v1983_v26 = vcvt.f32.s32 %v7223_v7  ;;  %v1971_v9 = vshll.u32 %v1970_v31, 16  ;;  %v1959_v30 = vadd.s32 %v1958_v39, %v1956_v58 }
 0x715   : > { %3485 = vrot.lane.b32.xlu0 %v1887_v44, %s4028_s8  ;;  %v1996_v44 = vcvt.f32.s32 %v7227_v53 }
 0x716   : > { %v3391_v1 = vshll.u32 %v3390_v42, 16  ;;  %v7226_v42 = vld [vmem:[#allocation83_spill] sm:$0xff]  ;;  %v1984_v10 = vshll.u32 %v1983_v26, 16  ;;  %v2035_v34 = vsel %vm2027_vm11, %v1959_v30, %v5983_v40  ;;  %v1995_v26 = vcvt.f32.s32 %v7231_v5  ;;  %v7234_v5 = vld [vmem:[#allocation97_spill] sm:$0xff] }
 0x717   : > { %v1969_v41 = vcvt.f32.s32 %v7226_v42  ;;  %v1997_v39 = vshll.u32 %v1996_v44, 16  ;;  %v7232_v44 = vld [vmem:[#allocation89_spill] sm:$0xff]  ;;  %vm2181_vm11 = vcmp.gt.s32.totalorder %v7126_v36, 7 }
 0x718   : > { %v6230_v25 = vadd.s32 %v3391_v1, %v3389_v11  ;;  %3487 = vrot.lane.b32.xlu2 %v1888_v35, %s4028_s8  ;;  %v7228_v11 = vld [vmem:[#allocation91_spill] sm:$0xff]  ;;  %v1982_v1 = vcvt.f32.s32 %v7229_v13 }
 0x719   : > { %v1972_v24 = vadd.s32 %v1971_v9, %v1969_v41  ;;  %v2009_v31 = vcvt.f32.s32 %v7228_v11  ;;  %v1998_v53 = vadd.s32 %v1997_v39, %v1995_v26  ;;  %v7233_v11 = vld [vmem:[#allocation93_spill] sm:$0xff] }
 0x71a   : > { %7224 = vst [vmem:[#allocation18_spill] sm:$0xff] %v6230_v25  ;;  %3489 = vrot.lane.b32.xlu1 %v2033_v28, %s4029_s9  ;;  %v1985_v58 = vadd.s32 %v1984_v10, %v1982_v1  ;;  %v7230_v28 = vld [vmem:[#allocation92_spill] sm:$0xff]  ;;  %v2083_v13 = vcvt.f32.s32 %v7233_v11  ;;  %v7236_v25 = vld [vmem:[#allocation98_spill] sm:$0xff] }
 0x71b   : > { %v6239_v7 = vpop.permute.xlu2 %3413  ;;  %v2022_v42 = vcvt.f32.s32 %v7230_v28  ;;  %v2010_v9 = vshll.u32 %v2009_v31, 16  ;;  %v2036_v41 = vsel %vm2028_vm12, %v1972_v24, %v5974_v21  ;;  %v2096_v31 = vcvt.f32.s32 %v7234_v5  ;;  %v7235_v24 = vld [vmem:[#allocation90_spill] sm:$0xff]  ;;  %v7238_v5 = vld [vmem:[#allocation95_spill] sm:$0xff] }
 0x71c   : > { %v2084_v39 = vshll.u32 %v2083_v13, 16  ;;  %vm2182_vm12 = vcmp.gt.s32.totalorder %v7132_v43, 7 }
 0x71d   : > { %3491 = vrot.lane.b32.xlu0 %v2034_v17, %s4029_s9  ;;  %v2008_v17 = vcvt.f32.s32 %v7232_v44  ;;  %v2023_v10 = vshll.u32 %v2022_v42, 16  ;;  %v2038_v44 = vsel %vm2030_vm14, %v1998_v53, %v6006_v2  ;;  %v2109_v42 = vcvt.f32.s32 %v7236_v25  ;;  %v7239_v53 = vld [vmem:[#allocation99_spill] sm:$0xff]  ;;  %vm7259_vm14 = vmmov %vm7240_vm1 }
 0x71f   : > { %v6247_v35 = vpop.permute.xlu0 %3409  ;;  %v2011_v28 = vadd.s32 %v2010_v9, %v2008_v17  ;;  %v2097_v17 = vshll.u32 %v2096_v31, 16 }
 0x720   : > { %3493 = vrot.lane.b32.xlu2 %v2035_v34, %s4029_s9  ;;  %v2037_v34 = vsel %vm2029_vm13, %v1985_v58, %v5997_v59  ;;  %v7237_v58 = vld [vmem:[#allocation94_spill] sm:$0xff]  ;;  %vm7258_vm13 = vmmov %vm7240_vm1 }
 0x721   : > { %v2082_v9 = vcvt.f32.s32 %v7237_v58 }
 0x722   : > { %3495 = vrot.lane.b32.xlu1 %v2036_v41, %s4029_s9  ;;  %v2021_v41 = vcvt.f32.s32 %v7235_v24  ;;  %v2095_v24 = vcvt.f32.s32 %v7238_v5 }
 0x723   : > { %v6258_v30 = vpop.permute.xlu2 %3421  ;;  %v2085_v13 = vadd.s32 %v2084_v39, %v2082_v9  ;;  %v7243_v39 = vld [vmem:[#allocation96_spill] sm:$0xff] }
 0x724   : > { %v3412_v1 = vpop.permute.xlu1 %3411  ;;  %v2024_v11 = vadd.s32 %v2023_v10, %v2021_v41  ;;  %v2122_v10 = vcvt.f32.s32 %v7239_v53  ;;  %v2098_v31 = vadd.s32 %v2097_v17, %v2095_v24  ;;  %v2108_v9 = vcvt.f32.s32 %v7243_v39 }
 0x725   : > { %3497 = vrot.lane.b32.xlu0 %v2037_v34, %s4029_s9  ;;  %v2039_v34 = vsel %vm2031_vm15, %v2011_v28, %v6021_v8  ;;  %v3650_v25 = vsel %vm7240_vm1, %v5966_v51, %v3412_v1  ;;  %v2185_v1 = vsel %vm2177_vm3, %v2085_v13, %v5947_v4  ;;  %v7247_v13 = vld [vmem:[#allocation105_spill] sm:$0xff]  ;;  %vm7260_vm15 = vmmov %vm7241_vm2  ;;  %vm2183_vm1 = vcmp.gt.s32.totalorder %v7138_v0, 7 }
 0x726   : > { %v2040_v28 = vsel %vm2032_vm0, %v2024_v11, %v6027_v62  ;;  %v2123_v5 = vshll.u32 %v2122_v10, 16  ;;  %v7245_v11 = vld [vmem:[#allocation100_spill] sm:$0xff]  ;;  %vm7262_vm0 = vmmov %vm7241_vm2 }
 0x727   : > { %v6266_v26 = vpop.permute.xlu0 %3415  ;;  %v2121_v17 = vcvt.f32.s32 %v7245_v11  ;;  %vm7266_vm3 = vmmov %vm7262_vm0 }
 0x728   : > { %3499 = vrot.lane.b32.xlu2 %v2038_v44, %s4029_s9  ;;  %v2110_v44 = vshll.u32 %v2109_v42, 16 }
 0x729   : > { %v2124_v10 = vadd.s32 %v2123_v5, %v2121_v17  ;;  %v7251_v5 = vld [vmem:[#allocation102_spill] sm:$0xff] }
 0x72a   : > { %3501 = vrot.lane.b32.xlu1 %v2039_v34, %s4029_s9  ;;  %v7242_v34 = vld [vmem:[#allocation103_spill] sm:$0xff]  ;;  %v2111_v42 = vadd.s32 %v2110_v44, %v2108_v9  ;;  %v2161_v44 = vcvt.f32.s32 %v7247_v13  ;;  %v2147_v17 = vcvt.f32.s32 %v7251_v5 }
 0x72b   : > { %v3428_v41 = vpop.permute.xlu2 %3427  ;;  %v2135_v63 = vcvt.f32.s32 %v7242_v34  ;;  %v2188_v13 = vsel %vm2180_vm8, %v2124_v10, %v5974_v21  ;;  %v7256_v10 = vld [vmem:[#allocation107_spill] sm:$0xff]  ;;  %vm7272_vm8 = vmmov %vm7262_vm0 }
 0x72c   : > { %v3418_v32 = vpop.permute.xlu1 %3417  ;;  %v6281_v58 = vsel %vm7241_vm2, %v3650_v25, %v3428_v41  ;;  %v2148_v25 = vcvt.f32.s32 %v7244_v14  ;;  %v2186_v41 = vsel %vm2178_vm4, %v2098_v31, %v5966_v51  ;;  %v7257_v5 = vld [vmem:[#allocation111_spill] sm:$0xff]  ;;  %vm7264_vm2 = vmmov %vm7248_vm6  ;;  %vm2184_vm4 = vcmp.gt.s32.totalorder %v7140_v20, 7 }
 0x72d   : > { %3503 = vrot.lane.b32.xlu0 %v2040_v28, %s4029_s9  ;;  %v2136_v24 = vshll.u32 %v2135_v63, 16  ;;  %v7246_v28 = vld [vmem:[#allocation101_spill] sm:$0xff]  ;;  %v3653_v14 = vsel %vm7248_vm6, %v5997_v59, %v3418_v32  ;;  %v2187_v63 = vsel %vm2179_vm5, %v2111_v42, %v5983_v40  ;;  %v3649_v32 = vsel %vm7252_vm9, %v5947_v4, %v6247_v35 }
 0x72e   : > { %v2134_v34 = vcvt.f32.s32 %v7246_v28  ;;  %v2149_v9 = vshll.u32 %v2148_v25, 16  ;;  %v2162_v28 = vshll.u32 %v2161_v44, 16  ;;  %vm3665_vm5 = vcmask 23552  }
 0x72f   : > { %v6288_v53 = vpop.permute.xlu0 %3419  ;;  %vm2329_vm6 = vcmp.gt.s32.totalorder %v4877_v54, 8  ;;  %vm2330_vm9 = vcmp.gt.s32.totalorder %v4903_v37, 8 }
 0x730   : > { %3505 = vrot.lane.b32.xlu2 %v2185_v1, %s4022_s30  ;;  %v2137_v31 = vadd.s32 %v2136_v24, %v2134_v34  ;;  %v7255_v34 = vld [vmem:[#allocation106_spill] sm:$0xff] }
 0x732   : > { %3507 = vrot.lane.b32.xlu1 %v2186_v41, %s4022_s30  ;;  %v7250_v41 = vld [vmem:[#allocation109_spill] sm:$0xff] }
 0x733   : > { %v3434_v39 = vpop.permute.xlu2 %3433  ;;  %v2174_v55 = vcvt.f32.s32 %v7250_v41  ;;  %v2189_v41 = vsel %vm2181_vm11, %v2137_v31, %v5997_v59  ;;  %vm7276_vm11 = vmmov %vm7262_vm0 }
 0x734   : > { %v3424_v1 = vpop.permute.xlu1 %3423  ;;  %v6303_v11 = vsel %vm7249_vm7, %v3653_v14, %v3434_v39  ;;  %v2150_v14 = vadd.s32 %v2149_v9, %v2147_v17  ;;  %v7253_v39 = vld [vmem:[#allocation110_spill] sm:$0xff]  ;;  %v2173_v9 = vcvt.f32.s32 %v7256_v10  ;;  %v2248_v17 = vcvt.f32.s32 %v7257_v5  ;;  %vm7270_vm7 = vmmov %vm7264_vm2 }
 0x735   : > { %3509 = vrot.lane.b32.xlu0 %v2187_v63, %s4022_s30  ;;  %v2235_v42 = vcvt.f32.s32 %v7253_v39  ;;  %v2160_v63 = vcvt.f32.s32 %v7255_v34  ;;  %v2175_v44 = vshll.u32 %v2174_v55, 16  ;;  %v3651_v55 = vsel %vm7259_vm14, %v5983_v40, %v6239_v7 }
 0x736   : > { %v2190_v34 = vsel %vm2182_vm12, %v2150_v14, %v6006_v2  ;;  %v3652_v7 = vsel %vm7264_vm2, %v5974_v21, %v6266_v26  ;;  %vm2331_vm12 = vcmp.gt.s32.totalorder %v7123_v45, 8  ;;  %vm2333_vm14 = vcmp.gt.s32.totalorder %v7126_v36, 8 }
 0x737   : > { %v3426_v25 = vpop.permute.xlu0 %3425  ;;  %v2163_v35 = vadd.s32 %v2162_v28, %v2160_v63  ;;  %v2176_v28 = vadd.s32 %v2175_v44, %v2173_v9  ;;  %v7261_v63 = vld [vmem:[#allocation115_spill] sm:$0xff]  ;;  %v7265_v44 = vld [vmem:[#allocation116_spill] sm:$0xff] }
 0x738   : > { %v6316_v24 = vsel %vm7254_vm10, %v3649_v32, %v3426_v25  ;;  %3511 = vrot.lane.b32.xlu2 %v2188_v13, %s4022_s30  ;;  %v3656_v32 = vsel %vm7258_vm13, %v6027_v62, %v3424_v1  ;;  %v2236_v13 = vshll.u32 %v2235_v42, 16  ;;  %v7263_v1 = vld [vmem:[#allocation108_spill] sm:$0xff]  ;;  %v2249_v42 = vshll.u32 %v2248_v17, 16  ;;  %vm7274_vm10 = vmmov %vm7264_vm2 }
 0x739   : > { %v2234_v5 = vcvt.f32.s32 %v7263_v1  ;;  %v2274_v9 = vcvt.f32.s32 %v7265_v44  ;;  %v7269_v1 = vld [vmem:[#allocation117_spill] sm:$0xff]  ;;  %vm2332_vm13 = vcmp.gt.s32.totalorder %v4932_v6, 8  ;;  %vm2336_vm2 = vcmp.gt.s32.totalorder %v7140_v20, 8 }
 0x73a   : > { %3513 = vrot.lane.b32.xlu1 %v2189_v41, %s4022_s30  ;;  %v2261_v41 = vcvt.f32.s32 %v7261_v63 }
 0x73b   : > { %v3440_v25 = vpop.permute.xlu2 %3439  ;;  %v2237_v14 = vadd.s32 %v2236_v13, %v2234_v5  ;;  %v2287_v5 = vcvt.f32.s32 %v7269_v1 }
 0x73c   : > { %v3430_v39 = vpop.permute.xlu1 %3429  ;;  %v6332_v31 = vsel %vm7260_vm15, %v3656_v32, %v3440_v25  ;;  %v2191_v25 = vsel %vm2183_vm1, %v2163_v35, %v6021_v8  ;;  %v2262_v17 = vshll.u32 %v2261_v41, 16  ;;  %v7268_v35 = vld [vmem:[#allocation113_spill] sm:$0xff]  ;;  %vm2334_vm15 = vcmp.gt.s32.totalorder %v7132_v43, 8 }
 0x73d   : > { %v3659_v10 = vsel %vm7262_vm0, %v3651_v55, %v3430_v39  ;;  %3515 = vrot.lane.b32.xlu0 %v2190_v34, %s4022_s30  ;;  %v7267_v55 = vld [vmem:[#allocation112_spill] sm:$0xff]  ;;  %v2192_v34 = vsel %vm2184_vm4, %v2176_v28, %v6027_v62  ;;  %v2260_v13 = vcvt.f32.s32 %v7268_v35  ;;  %v2337_v28 = vsel %vm2329_vm6, %v2237_v14, %v5947_v4  ;;  %v7273_v35 = vld [vmem:[#allocation114_spill] sm:$0xff] }
 0x73e   : > { %v2247_v39 = vcvt.f32.s32 %v7267_v55  ;;  %v2288_v1 = vshll.u32 %v2287_v5, 16  ;;  %vm2335_vm0 = vcmp.gt.s32.totalorder %v7138_v0, 8  ;;  %vm7286_vm1 = vcmask 31744  }
 0x73f   : > { %v3432_v32 = vpop.permute.xlu0 %3431  ;;  %v2263_v55 = vadd.s32 %v2262_v17, %v2260_v13  ;;  %v7275_v13 = vld [vmem:[#allocation122_spill] sm:$0xff]  ;;  %vm2482_vm4 = vcmp.gt.s32.totalorder %v4903_v37, 9  ;;  %vm7293_vm6 = vmmov %vm7286_vm1 }
 0x740   : > { %v6346_v63 = vsel %vm7266_vm3, %v3652_v7, %v3432_v32  ;;  %3517 = vrot.lane.b32.xlu2 %v2191_v25, %s4022_s30  ;;  %v2250_v26 = vadd.s32 %v2249_v42, %v2247_v39  ;;  %v2275_v7 = vshll.u32 %v2274_v9, 16  ;;  %v3654_v32 = vsel %vm7270_vm7, %v6006_v2, %v6288_v53  ;;  %v7271_v42 = vld [vmem:[#allocation121_spill] sm:$0xff] }
 0x741   : > { %v2300_v39 = vcvt.f32.s32 %v7271_v42  ;;  %v2273_v9 = vcvt.f32.s32 %v7273_v35  ;;  %v3655_v53 = vsel %vm7274_vm10, %v6021_v8, %v6258_v30  ;;  %v2339_v42 = vsel %vm2331_vm12, %v2263_v55, %v5983_v40  ;;  %v7278_v35 = vld [vmem:[#allocation119_spill] sm:$0xff]  ;;  %vm7302_vm10 = vmmov %vm7286_vm1 }
 0x742   : > { %3519 = vrot.lane.b32.xlu1 %v2192_v34, %s4022_s30  ;;  %v2338_v14 = vsel %vm2330_vm9, %v2250_v26, %v5966_v51  ;;  %v2299_v26 = vcvt.f32.s32 %v7278_v35  ;;  %v2387_v55 = vcvt.f32.s32 %v7280_v29  ;;  %v7283_v29 = vld [vmem:[#allocation124_spill] sm:$0xff]  ;;  %vm2481_vm3 = vcmp.gt.s32.totalorder %v4877_v54, 9  ;;  %vm7300_vm9 = vmmov %vm7286_vm1 }
 0x743   : > { %v3446_v44 = vpop.permute.xlu2 %3445  ;;  %v2276_v17 = vadd.s32 %v2275_v7, %v2273_v9  ;;  %v2301_v5 = vshll.u32 %v2300_v39, 16  ;;  %v7279_v7 = vld [vmem:[#allocation123_spill] sm:$0xff]  ;;  %vm2483_vm7 = vcmp.gt.s32.totalorder %v7123_v45, 9  ;;  %vm7305_vm12 = vmmov %vm7286_vm1 }
 0x744   : > { %v3436_v25 = vpop.permute.xlu1 %3435  ;;  %v6360_v41 = vsel %vm3665_vm5, %v3659_v10, %v3446_v44  ;;  %v2313_v44 = vcvt.f32.s32 %v7275_v13  ;;  %v2326_v9 = vcvt.f32.s32 %v7279_v7 }
 0x745   : > { %v3662_v34 = vsel %vm7272_vm8, %v3654_v32, %v3436_v25  ;;  %3521 = vrot.lane.b32.xlu0 %v2337_v28, %s4030_s10  ;;  %v7277_v25 = vld [vmem:[#allocation118_spill] sm:$0xff]  ;;  %v2302_v39 = vadd.s32 %v2301_v5, %v2299_v26  ;;  %v2388_v5 = vshll.u32 %v2387_v55, 16  ;;  %vm2484_vm8 = vcmp.gt.s32.totalorder %v4932_v6, 9 }
 0x746   : > { %v2286_v28 = vcvt.f32.s32 %v7277_v25  ;;  %v2340_v25 = vsel %vm2332_vm13, %v2276_v17, %v5974_v21  ;;  %v2327_v35 = vshll.u32 %v2326_v9, 16  ;;  %vm2487_vm13 = vcmp.gt.s32.totalorder %v7138_v0, 9 }
 0x747   : > { %v3438_v10 = vpop.permute.xlu0 %3437  ;;  %v2342_v26 = vsel %vm2334_vm15, %v2302_v39, %v6006_v2  ;;  %vm2488_vm15 = vcmp.gt.s32.totalorder %v7140_v20, 9 }
 0x748   : > { %v6374_v32 = vsel %vm7276_vm11, %v3655_v53, %v3438_v10  ;;  %3523 = vrot.lane.b32.xlu2 %v2338_v14, %s4030_s10  ;;  %v2289_v30 = vadd.s32 %v2288_v1, %v2286_v28  ;;  %v2314_v53 = vshll.u32 %v2313_v44, 16  ;;  %v7281_v28 = vld [vmem:[#allocation120_spill] sm:$0xff]  ;;  %vm2486_vm11 = vcmp.gt.s32.totalorder %v7132_v43, 9 }
 0x74a   : > { %3525 = vrot.lane.b32.xlu1 %v2339_v42, %s4030_s10  ;;  %v2312_v42 = vcvt.f32.s32 %v7281_v28  ;;  %v2341_v7 = vsel %vm2333_vm14, %v2289_v30, %v5997_v59  ;;  %v7284_v30 = vld [vmem:[#allocation125_spill] sm:$0xff]  ;;  %vm3682_vm14 = vcmask 39936  }
 0x74b   : > { %v3452_v13 = vpop.permute.xlu2 %3451 }
 0x74c   : > { %v3442_v10 = vpop.permute.xlu1 %3441  ;;  %v6385_v14 = vsel %vm3665_vm5, %v3662_v34, %v3452_v13  ;;  %v2315_v34 = vadd.s32 %v2314_v53, %v2312_v42  ;;  %v7282_v13 = vld [vmem:[#allocation128_spill] sm:$0xff]  ;;  %v2386_v53 = vcvt.f32.s32 %v7284_v30 }
 0x74d   : > { %v3666_v1 = vsel %vm3665_vm5, %v6316_v24, %v3442_v10  ;;  %3527 = vrot.lane.b32.xlu0 %v2340_v25, %s4030_s10  ;;  %v2400_v61 = vcvt.f32.s32 %v7282_v13  ;;  %v2325_v24 = vcvt.f32.s32 %v7283_v29  ;;  %v7285_v10 = vld [vmem:[#allocation129_spill] sm:$0xff]  ;;  %v7288_v29 = vld [vmem:[#allocation126_spill] sm:$0xff] }
 0x74e   : > { %v2413_v25 = vcvt.f32.s32 %v7285_v10  ;;  %v2389_v55 = vadd.s32 %v2388_v5, %v2386_v53  ;;  %v7287_v13 = vld [vmem:[#allocation133_spill] sm:$0xff]  ;;  %v7289_v10 = vld [vmem:[#allocation134_spill] sm:$0xff] }
 0x74f   : > { %v3444_v44 = vpop.permute.xlu0 %3443  ;;  %v2328_v9 = vadd.s32 %v2327_v35, %v2325_v24  ;;  %v2426_v39 = vcvt.f32.s32 %v7287_v13  ;;  %v2399_v24 = vcvt.f32.s32 %v7288_v29 }
 0x750   : > { %v6398_v17 = vsel %vm3665_vm5, %v6281_v58, %v3444_v44  ;;  %3529 = vrot.lane.b32.xlu2 %v2341_v7, %s4030_s10  ;;  %v2401_v58 = vshll.u32 %v2400_v61, 16  ;;  %v2343_v7 = vsel %vm2335_vm0, %v2315_v34, %v6021_v8  ;;  %vm7310_vm0 = vmmov %vm7286_vm1 }
 0x751   : > { %v2344_v30 = vsel %vm2336_vm2, %v2328_v9, %v6027_v62  ;;  %v2427_v53 = vshll.u32 %v2426_v39, 16  ;;  %vm7313_vm2 = vmmov %vm7310_vm0 }
 0x752   : > { %3531 = vrot.lane.b32.xlu1 %v2342_v26, %s4030_s10  ;;  %v2414_v26 = vshll.u32 %v2413_v25, 16  ;;  %v7291_v25 = vld [vmem:[#allocation131_spill] sm:$0xff] }
 0x753   : > { %v3458_v28 = vpop.permute.xlu2 %3457 }
 0x754   : > { %v3448_v42 = vpop.permute.xlu1 %3447  ;;  %v6409_v44 = vsel %vm7286_vm1, %v3666_v1, %v3458_v28  ;;  %v2402_v1 = vadd.s32 %v2401_v58, %v2399_v24  ;;  %v2439_v28 = vcvt.f32.s32 %v7289_v10  ;;  %v2425_v58 = vcvt.f32.s32 %v7291_v25 }
 0x755   : > { %v3669_v35 = vsel %vm3665_vm5, %v6346_v63, %v3448_v42  ;;  %3533 = vrot.lane.b32.xlu0 %v2343_v7, %s4030_s10  ;;  %v7290_v63 = vld [vmem:[#allocation130_spill] sm:$0xff]  ;;  %v2489_v42 = vsel %vm2481_vm3, %v2389_v55, %v5947_v4  ;;  %v7292_v7 = vld [vmem:[#allocation135_spill] sm:$0xff]  ;;  %vm2633_vm1 = vcmp.gt.s32.totalorder %v4877_v54, 10  ;;  %vm2634_vm3 = vcmp.gt.s32.totalorder %v4903_v37, 10 }
 0x756   : > { %v2412_v5 = vcvt.f32.s32 %v7290_v63  ;;  %v2452_v13 = vcvt.f32.s32 %v7292_v7  ;;  %v2490_v39 = vsel %vm2482_vm4, %v2402_v1, %v5966_v51  ;;  %v7294_v55 = vld [vmem:[#allocation139_spill] sm:$0xff]  ;;  %v7295_v63 = vld [vmem:[#allocation132_spill] sm:$0xff]  ;;  %vm2635_vm4 = vcmp.gt.s32.totalorder %v7123_v45, 10 }
 0x757   : > { %v3450_v61 = vpop.permute.xlu0 %3449  ;;  %v2465_v10 = vcvt.f32.s32 %v7294_v55  ;;  %v7296_v7 = vld [vmem:[#allocation140_spill] sm:$0xff] }
 0x758   : > { %v6422_v34 = vsel %vm3665_vm5, %v6303_v11, %v3450_v61  ;;  %3535 = vrot.lane.b32.xlu2 %v2344_v30, %s4030_s10  ;;  %v2415_v9 = vadd.s32 %v2414_v26, %v2412_v5  ;;  %v2440_v11 = vshll.u32 %v2439_v28, 16  ;;  %v2428_v30 = vadd.s32 %v2427_v53, %v2425_v58 }
 0x759   : > { %v2438_v5 = vcvt.f32.s32 %v7295_v63  ;;  %v2466_v58 = vshll.u32 %v2465_v10, 16 }
 0x75a   : > { %3537 = vrot.lane.b32.xlu1 %v2489_v42, %s4031_s16  ;;  %v2453_v42 = vshll.u32 %v2452_v13, 16  ;;  %v2491_v25 = vsel %vm2483_vm7, %v2415_v9, %v5983_v40  ;;  %v7298_v9 = vld [vmem:[#allocation137_spill] sm:$0xff]  ;;  %vm2636_vm7 = vcmp.gt.s32.totalorder %v4932_v6, 10 }
 0x75b   : > { %v3464_v29 = vpop.permute.xlu2 %3463 }
 0x75c   : > { %v3454_v24 = vpop.permute.xlu1 %3453  ;;  %v6433_v61 = vsel %vm7293_vm6, %v3669_v35, %v3464_v29  ;;  %v2441_v35 = vadd.s32 %v2440_v11, %v2438_v5  ;;  %v2478_v29 = vcvt.f32.s32 %v7296_v7  ;;  %v2464_v11 = vcvt.f32.s32 %v7298_v9  ;;  %v7301_v7 = vld [vmem:[#allocation145_spill] sm:$0xff]  ;;  %vm7318_vm6 = vmmov %vm7310_vm0 }
 0x75d   : > { %v3672_v26 = vsel %vm3665_vm5, %v6374_v32, %v3454_v24  ;;  %3539 = vrot.lane.b32.xlu0 %v2490_v39, %s4031_s16  ;;  %v7297_v32 = vld [vmem:[#allocation136_spill] sm:$0xff]  ;;  %v2492_v24 = vsel %vm2484_vm8, %v2428_v30, %v5974_v21  ;;  %v7299_v39 = vld [vmem:[#allocation141_spill] sm:$0xff]  ;;  %v2552_v30 = vcvt.f32.s32 %v7301_v7  ;;  %vm2637_vm8 = vcmp.gt.s32.totalorder %v7126_v36, 10 }
 0x75e   : > { %v2451_v53 = vcvt.f32.s32 %v7297_v32  ;;  %v2539_v55 = vcvt.f32.s32 %v7299_v39  ;;  %v2467_v10 = vadd.s32 %v2466_v58, %v2464_v11  ;;  %v7303_v32 = vld [vmem:[#allocation138_spill] sm:$0xff] }
 0x75f   : > { %v3456_v28 = vpop.permute.xlu0 %3455  ;;  %v7304_v39 = vld [vmem:[#allocation146_spill] sm:$0xff]  ;;  %v2553_v11 = vshll.u32 %v2552_v30, 16 }
 0x760   : > { %v6446_v1 = vsel %vm3665_vm5, %v6332_v31, %v3456_v28  ;;  %3541 = vrot.lane.b32.xlu2 %v2491_v25, %s4031_s16  ;;  %v2454_v13 = vadd.s32 %v2453_v42, %v2451_v53  ;;  %vm2485_vm5 = vcmp.gt.s32.totalorder %v7126_v36, 9  ;;  %v2479_v31 = vshll.u32 %v2478_v29, 16 }
 0x761   : > { %v2493_v25 = vsel %vm2485_vm5, %v2441_v35, %v5997_v59  ;;  %v2477_v53 = vcvt.f32.s32 %v7303_v32  ;;  %vm2638_vm5 = vcmp.gt.s32.totalorder %v7132_v43, 10 }
 0x762   : > { %3543 = vrot.lane.b32.xlu1 %v2492_v24, %s4031_s16  ;;  %v2540_v24 = vshll.u32 %v2539_v55, 16  ;;  %v2494_v9 = vsel %vm2486_vm11, %v2454_v13, %v6006_v2  ;;  %v7307_v55 = vld [vmem:[#allocation143_spill] sm:$0xff]  ;;  %vm3691_vm11 = vcmask 48128  }
 0x763   : > { %v3470_v63 = vpop.permute.xlu2 %3469 }
 0x764   : > { %v3460_v5 = vpop.permute.xlu1 %3459  ;;  %v6457_v28 = vsel %vm7300_vm9, %v3672_v26, %v3470_v63  ;;  %v2480_v26 = vadd.s32 %v2479_v31, %v2477_v53  ;;  %v2565_v63 = vcvt.f32.s32 %v7304_v39  ;;  %v2551_v31 = vcvt.f32.s32 %v7307_v55 }
 0x765   : > { %v3675_v42 = vsel %vm7302_vm10, %v6398_v17, %v3460_v5  ;;  %3545 = vrot.lane.b32.xlu0 %v2493_v25, %s4031_s16  ;;  %v7306_v17 = vld [vmem:[#allocation142_spill] sm:$0xff]  ;;  %v2495_v5 = vsel %vm2487_vm13, %v2467_v10, %v6021_v8  ;;  %v7308_v25 = vld [vmem:[#allocation147_spill] sm:$0xff]  ;;  %vm2639_vm9 = vcmp.gt.s32.totalorder %v7138_v0, 10  ;;  %vm2640_vm10 = vcmp.gt.s32.totalorder %v7140_v20, 10 }
 0x766   : > { %v2538_v58 = vcvt.f32.s32 %v7306_v17  ;;  %v2578_v7 = vcvt.f32.s32 %v7308_v25  ;;  %v2496_v30 = vsel %vm2488_vm15, %v2480_v26, %v6027_v62  ;;  %v7309_v10 = vld [vmem:[#allocation151_spill] sm:$0xff]  ;;  %v7311_v17 = vld [vmem:[#allocation144_spill] sm:$0xff]  ;;  %vm2786_vm13 = vcmp.gt.s32.totalorder %v4903_v37, 11 }
 0x767   : > { %v3462_v29 = vpop.permute.xlu0 %3461  ;;  %v2591_v39 = vcvt.f32.s32 %v7309_v10  ;;  %v7312_v25 = vld [vmem:[#allocation152_spill] sm:$0xff]  ;;  %vm2787_vm15 = vcmp.gt.s32.totalorder %v7123_v45, 11 }
 0x768   : > { %v6470_v35 = vsel %vm7305_vm12, %v6360_v41, %v3462_v29  ;;  %3547 = vrot.lane.b32.xlu2 %v2494_v9, %s4031_s16  ;;  %v2541_v13 = vadd.s32 %v2540_v24, %v2538_v58  ;;  %v2566_v41 = vshll.u32 %v2565_v63, 16  ;;  %v2554_v9 = vadd.s32 %v2553_v11, %v2551_v31 }
 0x769   : > { %v2564_v58 = vcvt.f32.s32 %v7311_v17  ;;  %v2592_v31 = vshll.u32 %v2591_v39, 16  ;;  %vm2785_vm12 = vcmp.gt.s32.totalorder %v4877_v54, 11 }
 0x76a   : > { %3549 = vrot.lane.b32.xlu1 %v2495_v5, %s4031_s16  ;;  %v2579_v5 = vshll.u32 %v2578_v7, 16  ;;  %v2641_v55 = vsel %vm2633_vm1, %v2541_v13, %v5947_v4  ;;  %v2642_v7 = vsel %vm2634_vm3, %v2554_v9, %v5966_v51  ;;  %vm2790_vm1 = vcmp.gt.s32.totalorder %v7132_v43, 11 }
 0x76b   : > { %v3476_v32 = vpop.permute.xlu2 %3475  ;;  %vm2791_vm3 = vcmp.gt.s32.totalorder %v7138_v0, 11 }
 0x76c   : > { %v3466_v53 = vpop.permute.xlu1 %3465  ;;  %v6481_v29 = vsel %vm3682_vm14, %v3675_v42, %v3476_v32  ;;  %v2567_v42 = vadd.s32 %v2566_v41, %v2564_v58  ;;  %v2604_v32 = vcvt.f32.s32 %v7312_v25  ;;  %v7315_v41 = vld [vmem:[#allocation149_spill] sm:$0xff] }
 0x76d   : > { %v3678_v24 = vsel %vm7310_vm0, %v6422_v34, %v3466_v53  ;;  %3551 = vrot.lane.b32.xlu0 %v2496_v30, %s4031_s16  ;;  %v7314_v34 = vld [vmem:[#allocation148_spill] sm:$0xff]  ;;  %v2590_v53 = vcvt.f32.s32 %v7315_v41  ;;  %v7316_v30 = vld [vmem:[#allocation153_spill] sm:$0xff]  ;;  %vm2789_vm0 = vcmp.gt.s32.totalorder %v7126_v36, 11 }
 0x76e   : > { %v2577_v11 = vcvt.f32.s32 %v7314_v34  ;;  %v2617_v10 = vcvt.f32.s32 %v7316_v30  ;;  %v7317_v25 = vld [vmem:[#allocation157_spill] sm:$0xff]  ;;  %v7319_v34 = vld [vmem:[#allocation150_spill] sm:$0xff] }
 0x76f   : > { %v3468_v63 = vpop.permute.xlu0 %3467  ;;  %v2593_v39 = vadd.s32 %v2592_v31, %v2590_v53  ;;  %v2630_v9 = vcvt.f32.s32 %v7317_v25  ;;  %v7320_v30 = vld [vmem:[#allocation158_spill] sm:$0xff] }
 0x770   : > { %v6494_v26 = vsel %vm7313_vm2, %v6385_v14, %v3468_v63  ;;  %3553 = vrot.lane.b32.xlu2 %v2641_v55, %s4032_s17  ;;  %v2580_v13 = vadd.s32 %v2579_v5, %v2577_v11  ;;  %v2605_v14 = vshll.u32 %v2604_v32, 16  ;;  %v2643_v55 = vsel %vm2635_vm4, %v2567_v42, %v5983_v40 }
 0x771   : > { %v2603_v11 = vcvt.f32.s32 %v7319_v34  ;;  %v2631_v53 = vshll.u32 %v2630_v9, 16  ;;  %vm3700_vm2 = vcmask 56320   ;;  %vm2792_vm4 = vcmp.gt.s32.totalorder %v7140_v20, 11 }
 0x772   : > { %3555 = vrot.lane.b32.xlu1 %v2642_v7, %s4032_s17  ;;  %v2618_v7 = vshll.u32 %v2617_v10, 16  ;;  %v2644_v41 = vsel %vm2636_vm7, %v2580_v13, %v5974_v21  ;;  %v7322_v13 = vld [vmem:[#allocation155_spill] sm:$0xff]  ;;  %vm2938_vm7 = vcmp.gt.s32.totalorder %v4903_v37, 12 }
 0x773   : > { %v3482_v17 = vpop.permute.xlu2 %3481 }
 0x774   : > { %v3472_v58 = vpop.permute.xlu1 %3471  ;;  %v6505_v63 = vsel %vm3682_vm14, %v3678_v24, %v3482_v17  ;;  %v2606_v24 = vadd.s32 %v2605_v14, %v2603_v11  ;;  %v2691_v17 = vcvt.f32.s32 %v7320_v30  ;;  %v2629_v14 = vcvt.f32.s32 %v7322_v13  ;;  %v7324_v30 = vld [vmem:[#allocation163_spill] sm:$0xff] }
 0x775   : > { %v3681_v5 = vsel %vm7318_vm6, %v6446_v1, %v3472_v58  ;;  %3557 = vrot.lane.b32.xlu0 %v2643_v55, %s4032_s17  ;;  %v7321_v1 = vld [vmem:[#allocation154_spill] sm:$0xff]  ;;  %v2645_v58 = vsel %vm2637_vm8, %v2593_v39, %v5997_v59  ;;  %v7323_v55 = vld [vmem:[#allocation159_spill] sm:$0xff]  ;;  %v2717_v39 = vcvt.f32.s32 %v7324_v30  ;;  %vm2937_vm6 = vcmp.gt.s32.totalorder %v4877_v54, 12 }
 0x776   : > { %v2616_v31 = vcvt.f32.s32 %v7321_v1  ;;  %v2704_v25 = vcvt.f32.s32 %v7323_v55  ;;  %v2632_v9 = vadd.s32 %v2631_v53, %v2629_v14  ;;  %v7325_v1 = vld [vmem:[#allocation156_spill] sm:$0xff]  ;;  %vm2939_vm8 = vcmp.gt.s32.totalorder %v7123_v45, 12 }
 0x777   : > { %v3474_v32 = vpop.permute.xlu0 %3473  ;;  %v7326_v55 = vld [vmem:[#allocation164_spill] sm:$0xff]  ;;  %v2718_v14 = vshll.u32 %v2717_v39, 16 }
 0x778   : > { %v6518_v42 = vsel %vm3682_vm14, %v6409_v44, %v3474_v32  ;;  %3559 = vrot.lane.b32.xlu2 %v2644_v41, %s4032_s17  ;;  %v2619_v10 = vadd.s32 %v2618_v7, %v2616_v31  ;;  %v2692_v44 = vshll.u32 %v2691_v17, 16  ;;  %v2646_v41 = vsel %vm2638_vm5, %v2606_v24, %v6006_v2 }
 0x779   : > { %v2690_v31 = vcvt.f32.s32 %v7325_v1  ;;  %vm2940_vm5 = vcmp.gt.s32.totalorder %v4932_v6, 12 }
 0x77a   : > { %3561 = vrot.lane.b32.xlu1 %v2645_v58, %s4032_s17  ;;  %v2705_v58 = vshll.u32 %v2704_v25, 16  ;;  %v2647_v13 = vsel %vm2639_vm9, %v2619_v10, %v6021_v8  ;;  %v7328_v25 = vld [vmem:[#allocation161_spill] sm:$0xff]  ;;  %vm2941_vm9 = vcmp.gt.s32.totalorder %v7126_v36, 12 }
 0x77b   : > { %v3488_v34 = vpop.permute.xlu2 %3487 }
 0x77c   : > { %v3478_v11 = vpop.permute.xlu1 %3477  ;;  %v6529_v32 = vsel %vm3682_vm14, %v3681_v5, %v3488_v34  ;;  %v2693_v5 = vadd.s32 %v2692_v44, %v2690_v31  ;;  %v2730_v34 = vcvt.f32.s32 %v7326_v55  ;;  %v2716_v44 = vcvt.f32.s32 %v7328_v25 }
 0x77d   : > { %v3685_v7 = vsel %vm3682_vm14, %v6470_v35, %v3478_v11  ;;  %3563 = vrot.lane.b32.xlu0 %v2646_v41, %s4032_s17  ;;  %v7327_v35 = vld [vmem:[#allocation160_spill] sm:$0xff]  ;;  %v2648_v11 = vsel %vm2640_vm10, %v2632_v9, %v6027_v62  ;;  %v7329_v41 = vld [vmem:[#allocation165_spill] sm:$0xff]  ;;  %vm2942_vm10 = vcmp.gt.s32.totalorder %v7132_v43, 12 }
 0x77e   : > { %v2703_v53 = vcvt.f32.s32 %v7327_v35  ;;  %v2743_v30 = vcvt.f32.s32 %v7329_v41  ;;  %v2793_v39 = vsel %vm2785_vm12, %v2693_v5, %v5947_v4  ;;  %v7330_v9 = vld [vmem:[#allocation169_spill] sm:$0xff]  ;;  %v7331_v35 = vld [vmem:[#allocation162_spill] sm:$0xff]  ;;  %v2769_v5 = vcvt.f32.s32 %v5851_v15 }
 0x77f   : > { %v3480_v17 = vpop.permute.xlu0 %3479  ;;  %v2756_v55 = vcvt.f32.s32 %v7330_v9  ;;  %v2782_v15 = vcvt.f32.s32 %v5854_v47  ;;  %vm2944_vm12 = vcmp.gt.s32.totalorder %v7140_v20, 12 }
 0x780   : > { %v6542_v24 = vsel %vm3682_vm14, %v6433_v61, %v3480_v17  ;;  %3565 = vrot.lane.b32.xlu2 %v2647_v13, %s4032_s17  ;;  %v2706_v10 = vadd.s32 %v2705_v58, %v2703_v53  ;;  %v2731_v61 = vshll.u32 %v2730_v34, 16  ;;  %v2719_v13 = vadd.s32 %v2718_v14, %v2716_v44 }
 0x781   : > { %v2729_v53 = vcvt.f32.s32 %v7331_v35  ;;  %v2744_v34 = vshll.u32 %v2743_v30, 16  ;;  %v2757_v41 = vshll.u32 %v2756_v55, 16 }
 0x782   : > { %3567 = vrot.lane.b32.xlu1 %v2648_v11, %s4032_s17 }
 0x783   : > { %v3494_v1 = vpop.permute.xlu2 %3493  ;;  %v2732_v25 = vadd.s32 %v2731_v61, %v2729_v53 }
 0x784   : > { %v3484_v31 = vpop.permute.xlu1 %3483  ;;  %v6553_v17 = vsel %vm3691_vm11, %v3685_v7, %v3494_v1  ;;  %v2794_v7 = vsel %vm2786_vm13, %v2706_v10, %v5966_v51  ;;  %v2795_v1 = vsel %vm2787_vm15, %v2719_v13, %v5983_v40  ;;  %v7333_v10 = vld [vmem:[#allocation167_spill] sm:$0xff]  ;;  %v2843_v13 = vcvt.f32.s32 %v5869_v23 }
 0x785   : > { %v3688_v58 = vsel %vm3682_vm14, %v6494_v26, %v3484_v31  ;;  %3569 = vrot.lane.b32.xlu0 %v2793_v39, %s4033_s20  ;;  %v7332_v26 = vld [vmem:[#allocation166_spill] sm:$0xff]  ;;  %v2755_v61 = vcvt.f32.s32 %v7333_v10  ;;  %v2781_v23 = vcvt.f32.s32 %v5856_v19  ;;  %vm7340_vm13 = vcmask 64512  }
 0x786   : > { %v2742_v44 = vcvt.f32.s32 %v7332_v26  ;;  %v2856_v26 = vcvt.f32.s32 %v5875_v57  ;;  %v2869_v57 = vcvt.f32.s32 %v5878_v49  ;;  %vm3089_vm15 = vcmp.gt.s32.totalorder %v4877_v54, 13 }
 0x787   : > { %v3486_v11 = vpop.permute.xlu0 %3485  ;;  %v2758_v55 = vadd.s32 %v2757_v41, %v2755_v61 }
 0x788   : > { %v6566_v14 = vsel %vm3682_vm14, %v6457_v28, %v3486_v11  ;;  %3571 = vrot.lane.b32.xlu2 %v2794_v7, %s4033_s20  ;;  %v2745_v30 = vadd.s32 %v2744_v34, %v2742_v44  ;;  %vm2788_vm14 = vcmp.gt.s32.totalorder %v4932_v6, 11  ;;  %v2770_v28 = vshll.u32 %v2769_v5, 16  ;;  %v7334_v34 = vld [vmem:[#allocation168_spill] sm:$0xff] }
 0x789   : > { %v2796_v35 = vsel %vm2788_vm14, %v2732_v25, %v5974_v21  ;;  %v2768_v47 = vcvt.f32.s32 %v7334_v34  ;;  %v2783_v11 = vshll.u32 %v2782_v15, 16  ;;  %v2798_v44 = vsel %vm2790_vm1, %v2758_v55, %v6006_v2  ;;  %vm7347_vm1 = vmmov %vm7340_vm13 }
 0x78a   : > { %3573 = vrot.lane.b32.xlu1 %v2795_v1, %s4033_s20  ;;  %v2797_v5 = vsel %vm2789_vm0, %v2745_v30, %v5997_v59  ;;  %v7335_v1 = vld [vmem:[#allocation170_spill] sm:$0xff]  ;;  %v2870_v55 = vshll.u32 %v2869_v57, 16  ;;  %vm3090_vm14 = vcmp.gt.s32.totalorder %v4903_v37, 13  ;;  %vm3091_vm0 = vcmp.gt.s32.totalorder %v7123_v45, 13 }
 0x78b   : > { %v3500_v31 = vpop.permute.xlu2 %3499  ;;  %v2784_v41 = vadd.s32 %v2783_v11, %v2781_v23  ;;  %v2842_v30 = vcvt.f32.s32 %v7335_v1 }
 0x78c   : > { %v3490_v39 = vpop.permute.xlu1 %3489  ;;  %v6577_v9 = vsel %vm3691_vm11, %v3688_v58, %v3500_v31  ;;  %v2771_v58 = vadd.s32 %v2770_v28, %v2768_v47  ;;  %v2882_v28 = vcvt.f32.s32 %v5893_v56  ;;  %v2895_v47 = vcvt.f32.s32 %v5899_v38 }
 0x78d   : > { %v3692_v53 = vsel %vm3691_vm11, %v6518_v42, %v3490_v39  ;;  %3575 = vrot.lane.b32.xlu0 %v2796_v35, %s4033_s20  ;;  %v2844_v42 = vshll.u32 %v2843_v13, 16  ;;  %v7336_v35 = vld [vmem:[#allocation171_spill] sm:$0xff]  ;;  %v2800_v34 = vsel %vm2792_vm4, %v2784_v41, %v6027_v62  ;;  %v2868_v56 = vcvt.f32.s32 %v5880_v60  ;;  %vm7351_vm4 = vmmov %vm7347_vm1 }
 0x78e   : > { %v2799_v19 = vsel %vm2791_vm3, %v2771_v58, %v6021_v8  ;;  %v2855_v49 = vcvt.f32.s32 %v7336_v35  ;;  %v2881_v58 = vcvt.f32.s32 %v5887_v52  ;;  %v2908_v38 = vcvt.f32.s32 %v5902_v33 }
 0x78f   : > { %v3492_v7 = vpop.permute.xlu0 %3491  ;;  %v2845_v31 = vadd.s32 %v2844_v42, %v2842_v30  ;;  %v2921_v41 = vcvt.f32.s32 %v5917_v22  ;;  %v2894_v52 = vcvt.f32.s32 %v5891_v27  ;;  %v2907_v22 = vcvt.f32.s32 %v5904_v48 }
 0x790   : > { %v6590_v25 = vsel %vm3691_vm11, %v6481_v29, %v3492_v7  ;;  %3577 = vrot.lane.b32.xlu2 %v2797_v5, %s4033_s20  ;;  %v2857_v29 = vshll.u32 %v2856_v26, 16  ;;  %v2871_v5 = vadd.s32 %v2870_v55, %v2868_v56  ;;  %v2909_v33 = vshll.u32 %v2908_v38, 16 }
 0x791   : > { %v2945_v7 = vsel %vm2937_vm6, %v2845_v31, %v5947_v4  ;;  %v2922_v27 = vshll.u32 %v2921_v41, 16  ;;  %v7337_v31 = vld [vmem:[#allocation172_spill] sm:$0xff]  ;;  %vm3092_vm3 = vcmp.gt.s32.totalorder %v4932_v6, 13  ;;  %vm3094_vm6 = vcmp.gt.s32.totalorder %v7132_v43, 13 }
 0x792   : > { %3579 = vrot.lane.b32.xlu1 %v2798_v44, %s4033_s20  ;;  %v2947_v57 = vsel %vm2939_vm8, %v2871_v5, %v5983_v40  ;;  %v3021_v5 = vcvt.f32.s32 %v5936_v16  ;;  %vm7357_vm8 = vmmov %vm7347_vm1 }
 0x793   : > { %v3506_v10 = vpop.permute.xlu2 %3505 }
 0x794   : > { %v3496_v61 = vpop.permute.xlu1 %3495  ;;  %v6601_v15 = vsel %vm3700_vm2, %v3692_v53, %v3506_v10  ;;  %v2858_v53 = vadd.s32 %v2857_v29, %v2855_v49  ;;  %v2934_v29 = vcvt.f32.s32 %v5922_v12  ;;  %v2995_v12 = vcvt.f32.s32 %v5924_v18 }
 0x795   : > { %v3695_v39 = vsel %vm3691_vm11, %v6542_v24, %v3496_v61  ;;  %3581 = vrot.lane.b32.xlu0 %v2799_v19, %s4033_s20  ;;  %v2883_v24 = vshll.u32 %v2882_v28, 16  ;;  %v2910_v19 = vadd.s32 %v2909_v33, %v2907_v22  ;;  %v2920_v28 = vcvt.f32.s32 %v7337_v31 }
 0x796   : > { %v2946_v60 = vsel %vm2938_vm7, %v2858_v53, %v5966_v51  ;;  %v7338_v53 = vld [vmem:[#allocation173_spill] sm:$0xff]  ;;  %vm7355_vm7 = vmmov %vm7347_vm1 }
 0x797   : > { %v3498_v13 = vpop.permute.xlu0 %3497  ;;  %v2884_v44 = vadd.s32 %v2883_v24, %v2881_v58  ;;  %v2923_v55 = vadd.s32 %v2922_v27, %v2920_v28  ;;  %v2933_v18 = vcvt.f32.s32 %v7338_v53  ;;  %v2950_v24 = vsel %vm2942_vm10, %v2910_v19, %v6006_v2 }
 0x798   : > { %v6614_v11 = vsel %vm3691_vm11, %v6505_v63, %v3498_v13  ;;  %3583 = vrot.lane.b32.xlu2 %v2800_v34, %s4033_s20  ;;  %v2896_v63 = vshll.u32 %v2895_v47, 16  ;;  %v3008_v13 = vcvt.f32.s32 %v5932_v50  ;;  %v2996_v47 = vshll.u32 %v2995_v12, 16 }
 0x799   : > { %v2994_v50 = vcvt.f32.s32 %v5926_v46  ;;  %vm3096_vm10 = vcmp.gt.s32.totalorder %v7140_v20, 13 }
 0x79a   : > { %3585 = vrot.lane.b32.xlu1 %v2945_v7, %s4034_s21  ;;  %v2897_v10 = vadd.s32 %v2896_v63, %v2894_v52  ;;  %v3007_v63 = vcvt.f32.s32 %v5928_v3  ;;  %v7341_v52 = vld [vmem:[#allocation179_spill] sm:$0xff]  ;;  %v7342_v3 = vld [vmem:[#allocation174_spill] sm:$0xff] }
 0x79b   : > { %v3512_v26 = vpop.permute.xlu2 %3511  ;;  %v3047_v33 = vcvt.f32.s32 %v7341_v52 }
 0x79c   : > { %v3502_v23 = vpop.permute.xlu1 %3501  ;;  %v6625_v42 = vsel %vm3700_vm2, %v3695_v39, %v3512_v26  ;;  %v2949_v48 = vsel %vm2941_vm9, %v2897_v10, %v5997_v59  ;;  %v2997_v26 = vadd.s32 %v2996_v47, %v2994_v50  ;;  %v7349_v50 = vld [vmem:[#allocation178_spill] sm:$0xff]  ;;  %vm7359_vm9 = vmmov %vm7347_vm1 }
 0x79d   : > { %v3698_v1 = vsel %vm3691_vm11, %v6566_v14, %v3502_v23  ;;  %3587 = vrot.lane.b32.xlu0 %v2946_v60, %s4034_s21  ;;  %v2948_v14 = vsel %vm2940_vm5, %v2884_v44, %v5974_v21  ;;  %v7339_v23 = vld [vmem:[#allocation175_spill] sm:$0xff]  ;;  %v3048_v12 = vshll.u32 %v3047_v33, 16  ;;  %v7353_v33 = vld [vmem:[#allocation10_spill] sm:$0xff]  ;;  %vm3095_vm5 = vcmp.gt.s32.totalorder %v7138_v0, 13 }
 0x79e   : > { %v3034_v16 = vcvt.f32.s32 %v7339_v23  ;;  %v3097_v22 = vsel %vm3089_vm15, %v2997_v26, %v5947_v4  ;;  %vm3242_vm15 = vcmp.gt.s32.totalorder %v4903_v37, 14 }
 0x79f   : > { %v3504_v30 = vpop.permute.xlu0 %3503 }
 0x7a0   : > { %v6638_v61 = vsel %vm3691_vm11, %v6529_v32, %v3504_v30  ;;  %3589 = vrot.lane.b32.xlu2 %v2947_v57, %s4034_s21  ;;  %v2935_v32 = vshll.u32 %v2934_v29, 16  ;;  %vm2943_vm11 = vcmp.gt.s32.totalorder %v7138_v0, 12  ;;  %v3020_v57 = vcvt.f32.s32 %v7342_v3  ;;  %v7354_v3 = vld [vmem:[#allocation3_spill] sm:$0xff] }
 0x7a1   : > { %v2951_v38 = vsel %vm2943_vm11, %v2923_v55, %v6021_v8  ;;  %v3035_v10 = vshll.u32 %v3034_v16, 16  ;;  %v7346_v55 = vld [vmem:[#allocation181_spill] sm:$0xff]  ;;  %v7350_v16 = vld [vmem:[#allocation14_spill] sm:$0xff]  ;;  %vm3717_vm11 = vcmask 72704  }
 0x7a2   : > { %3591 = vrot.lane.b32.xlu1 %v2948_v14, %s4034_s21  ;;  %v2936_v7 = vadd.s32 %v2935_v32, %v2933_v18  ;;  %v7343_v14 = vld [vmem:[#allocation180_spill] sm:$0xff] }
 0x7a3   : > { %v3518_v39 = vpop.permute.xlu2 %3517  ;;  %v3060_v19 = vcvt.f32.s32 %v7343_v14 }
 0x7a4   : > { %v3508_v35 = vpop.permute.xlu1 %3507  ;;  %v6649_v49 = vsel %vm3700_vm2, %v3698_v1, %v3518_v39  ;;  %v2952_v46 = vsel %vm2944_vm12, %v2936_v7, %v6027_v62  ;;  %vm3241_vm12 = vcmp.gt.s32.totalorder %v4877_v54, 14 }
 0x7a5   : > { %v3702_v34 = vsel %vm3700_vm2, %v6590_v25, %v3508_v35  ;;  %3593 = vrot.lane.b32.xlu0 %v2949_v48, %s4034_s21  ;;  %v3009_v25 = vshll.u32 %v3008_v13, 16  ;;  %v7345_v35 = vld [vmem:[#allocation177_spill] sm:$0xff]  ;;  %v3073_v13 = vcvt.f32.s32 %v7346_v55 }
 0x7a6   : > { %v3046_v48 = vcvt.f32.s32 %v7345_v35 }
 0x7a7   : > { %v3510_v56 = vpop.permute.xlu0 %3509  ;;  %v3010_v1 = vadd.s32 %v3009_v25, %v3007_v63  ;;  %v3059_v25 = vcvt.f32.s32 %v7349_v50 }
 0x7a8   : > { %v6662_v58 = vsel %vm3700_vm2, %v6553_v17, %v3510_v56  ;;  %3595 = vrot.lane.b32.xlu2 %v2950_v24, %s4034_s21  ;;  %v3022_v17 = vshll.u32 %v3021_v5, 16  ;;  %v3049_v56 = vadd.s32 %v3048_v12, %v3046_v48  ;;  %v7348_v24 = vld [vmem:[#allocation7_spill] sm:$0xff]  ;;  %v7358_v12 = vld [vmem:[#allocation2_spill] sm:$0xff] }
 0x7a9   : > { %v3098_v39 = vsel %vm3090_vm14, %v3010_v1, %v5966_v51  ;;  %v3086_v7 = vcvt.f32.s32 %v7348_v24  ;;  %vm7363_vm14 = vmmov %vm7347_vm1 }
 0x7aa   : > { %3597 = vrot.lane.b32.xlu1 %v2951_v38, %s4034_s21  ;;  %v3023_v27 = vadd.s32 %v3022_v17, %v3020_v57  ;;  %v3074_v38 = vshll.u32 %v3073_v13, 16  ;;  %v3160_v57 = vcvt.f32.s32 %v7354_v3  ;;  %v7366_v3 = vld [vmem:[#allocation9_spill] sm:$0xff] }
 0x7ab   : > { %v3524_v60 = vpop.permute.xlu2 %3523 }
 0x7ac   : > { %v3514_v44 = vpop.permute.xlu1 %3513  ;;  %v6673_v41 = vsel %vm7340_vm13, %v3702_v34, %v3524_v60  ;;  %v3099_v47 = vsel %vm3091_vm0, %v3023_v27, %v5983_v40  ;;  %v3147_v60 = vcvt.f32.s32 %v7350_v16  ;;  %vm7362_vm13 = vmmov %vm7347_vm1  ;;  %vm3243_vm0 = vcmp.gt.s32.totalorder %v7123_v45, 14 }
 0x7ad   : > { %v3705_v30 = vsel %vm3700_vm2, %v6614_v11, %v3514_v44  ;;  %3599 = vrot.lane.b32.xlu0 %v2952_v46, %s4034_s21  ;;  %v7344_v11 = vld [vmem:[#allocation176_spill] sm:$0xff]  ;;  %v3087_v46 = vshll.u32 %v3086_v7, 16 }
 0x7ae   : > { %v3033_v28 = vcvt.f32.s32 %v7344_v11 }
 0x7af   : > { %v3516_v29 = vpop.permute.xlu0 %3515 }
 0x7b0   : > { %v6686_v31 = vsel %vm3700_vm2, %v6577_v9, %v3516_v29  ;;  %3601 = vrot.lane.b32.xlu2 %v3097_v22, %s4035_s22  ;;  %v3036_v32 = vadd.s32 %v3035_v10, %v3033_v28  ;;  %v3061_v9 = vshll.u32 %v3060_v19, 16  ;;  %v7356_v19 = vld [vmem:[#allocation12_spill] sm:$0xff] }
 0x7b1   : > { %v3173_v11 = vcvt.f32.s32 %v7356_v19  ;;  %v7368_v19 = vld [vmem:[#allocation13_spill] sm:$0xff] }
 0x7b2   : > { %3603 = vrot.lane.b32.xlu1 %v3098_v39, %s4035_s22  ;;  %v3100_v63 = vsel %vm3092_vm3, %v3036_v32, %v5974_v21  ;;  %v3062_v23 = vadd.s32 %v3061_v9, %v3059_v25  ;;  %v3146_v39 = vcvt.f32.s32 %v7358_v12  ;;  %v3161_v32 = vshll.u32 %v3160_v57, 16  ;;  %v7369_v12 = vld [vmem:[#allocation5_spill] sm:$0xff] }
 0x7b3   : > { %v3530_v34 = vpop.permute.xlu2 %3529  ;;  %v3174_v9 = vshll.u32 %v3173_v11, 16  ;;  %vm3245_vm3 = vcmp.gt.s32.totalorder %v7126_v36, 14 }
 0x7b4   : > { %v3520_v53 = vpop.permute.xlu1 %3519  ;;  %v6697_v18 = vsel %vm7347_vm1, %v3705_v30, %v3530_v34  ;;  %v3085_v30 = vcvt.f32.s32 %v7353_v33  ;;  %v3102_v27 = vsel %vm3094_vm6, %v3062_v23, %v6006_v2  ;;  %v7360_v34 = vld [vmem:[#allocation11_spill] sm:$0xff]  ;;  %vm3244_vm1 = vcmp.gt.s32.totalorder %v4932_v6, 14 }
 0x7b5   : > { %v3708_v5 = vsel %vm3700_vm2, %v6638_v61, %v3520_v53  ;;  %3605 = vrot.lane.b32.xlu0 %v3099_v47, %s4035_s22  ;;  %vm3093_vm2 = vcmp.gt.s32.totalorder %v7126_v36, 13  ;;  %v7352_v61 = vld [vmem:[#allocation182_spill] sm:$0xff]  ;;  %vm3247_vm6 = vcmp.gt.s32.totalorder %v7138_v0, 14 }
 0x7b6   : > { %v3072_v44 = vcvt.f32.s32 %v7352_v61  ;;  %v3101_v1 = vsel %vm3093_vm2, %v3049_v56, %v5997_v59  ;;  %v3088_v14 = vadd.s32 %v3087_v46, %v3085_v30  ;;  %v7361_v56 = vld [vmem:[#allocation8_spill] sm:$0xff]  ;;  %vm3726_vm2 = vcmask 80896  }
 0x7b7   : > { %v3522_v26 = vpop.permute.xlu0 %3521  ;;  %v3172_v24 = vcvt.f32.s32 %v7361_v56 }
 0x7b8   : > { %v3709_v17 = vsel %vm7351_vm4, %v6601_v15, %v3522_v26  ;;  %3607 = vrot.lane.b32.xlu2 %v3100_v63, %s4035_s22  ;;  %v3075_v52 = vadd.s32 %v3074_v38, %v3072_v44  ;;  %v3148_v15 = vshll.u32 %v3147_v60, 16  ;;  %v3104_v53 = vsel %vm3096_vm10, %v3088_v14, %v6027_v62  ;;  %v7364_v44 = vld [vmem:[#allocation15_spill] sm:$0xff] }
 0x7b9   : > { %v3175_v25 = vadd.s32 %v3174_v9, %v3172_v24  ;;  %v3252_v46 = vsel %vm3244_vm1, %v7364_v44, %v5974_v21  ;;  %vm3246_vm4 = vcmp.gt.s32.totalorder %v7132_v43, 14  ;;  %vm3396_vm10 = vcmp.gt.s32.totalorder %v4932_v6, 15 }
 0x7ba   : > { %3609 = vrot.lane.b32.xlu1 %v3101_v1, %s4035_s22  ;;  %v3103_v48 = vsel %vm3095_vm5, %v3075_v52, %v6021_v8  ;;  %v3149_v55 = vadd.s32 %v3148_v15, %v3146_v39  ;;  %v7365_v52 = vld [vmem:[#allocation4_spill] sm:$0xff]  ;;  %v3254_v57 = vsel %vm3246_vm4, %v7366_v3, %v6006_v2  ;;  %vm3394_vm5 = vcmp.gt.s32.totalorder %v4903_v37, 15 }
 0x7bb   : > { %v3536_v10 = vpop.permute.xlu2 %3535  ;;  %v3251_v16 = vsel %vm3243_vm0, %v3175_v25, %v5983_v40  ;;  %v3253_v33 = vsel %vm3245_vm3, %v7365_v52, %v5997_v59  ;;  %v7372_v37 = vld [vmem:[#allocation16_spill] sm:$0xff]  ;;  %vm3744_vm0 = vcmask 97280   ;;  %vm3753_vm1 = vcmask 105472  }
 0x7bc   : > { %v3526_v29 = vpop.permute.xlu1 %3525  ;;  %v6719_v22 = vsel %vm7355_vm7, %v3708_v5, %v3536_v10  ;;  %v3249_v50 = vsel %vm3241_vm12, %v3149_v55, %v5947_v4  ;;  %vm3248_vm7 = vcmp.gt.s32.totalorder %v7140_v20, 14  ;;  %v7370_v55 = vld [vmem:[#allocation20_spill] sm:$0xff]  ;;  %vm3397_vm12 = vcmp.gt.s32.totalorder %v7126_v36, 15  ;;  %v7375_v36 = vld [vmem:[#allocation25_spill] sm:$0xff] }
 0x7bd   : > { %v3711_v28 = vsel %vm7357_vm8, %v6662_v58, %v3526_v29  ;;  %3611 = vrot.lane.b32.xlu0 %v3102_v27, %s4035_s22  ;;  %v3159_v58 = vcvt.f32.s32 %v7360_v34  ;;  %v7367_v29 = vld [vmem:[#allocation19_spill] sm:$0xff]  ;;  %v3256_v11 = vsel %vm3248_vm7, %v7368_v19, %v6027_v62  ;;  %vm3393_vm8 = vcmp.gt.s32.totalorder %v4877_v54, 15 }
 0x7be   : > { %v3255_v27 = vsel %vm3247_vm6, %v7367_v29, %v6021_v8  ;;  %v3401_v39 = vsel %vm3393_vm8, %v7369_v12, %v5947_v4  ;;  %v7371_v4 = vld [vmem:[#allocation6_spill] sm:$0xff]  ;;  %vm3771_vm3 = vcmask 121856   ;;  %vm3762_vm4 = vcmask 113664  }
 0x7bf   : > { %v3528_v35 = vpop.permute.xlu0 %3527  ;;  %v3162_v47 = vadd.s32 %v3161_v32, %v3159_v58 }
 0x7c0   : > { %v3712_v13 = vsel %vm7359_vm9, %v6625_v42, %v3528_v35  ;;  %3613 = vrot.lane.b32.xlu2 %v3103_v48, %s4035_s22  ;;  %vm3395_vm9 = vcmp.gt.s32.totalorder %v7123_v45, 15 }
 0x7c1   : > { %v3250_v63 = vsel %vm3242_vm15, %v3162_v47, %v5966_v51  ;;  %v3403_v34 = vsel %vm3395_vm9, %v7371_v4, %v5983_v40  ;;  %v7373_v40 = vld [vmem:[#allocation17_spill] sm:$0xff]  ;;  %vm3735_vm15 = vcmask 89088  }
 0x7c2   : > { %3615 = vrot.lane.b32.xlu1 %v3104_v53, %s4035_s22  ;;  %v3405_v47 = vsel %vm3397_vm12, %v7373_v40, %v5997_v59 }
 0x7c3   : > { %v3542_v7 = vpop.permute.xlu2 %3541 }
 0x7c4   : > { %v3532_v5 = vpop.permute.xlu1 %3531  ;;  %v6739_v42 = vsel %vm3717_vm11, %v3711_v28, %v3542_v7 }
 0x7c5   : > { %v3714_v38 = vsel %vm7362_vm13, %v6686_v31, %v3532_v5  ;;  %3617 = vrot.lane.b32.xlu0 %v3249_v50, %s4036_s23  ;;  %vm3399_vm13 = vcmp.gt.s32.totalorder %v7138_v0, 15 }
 0x7c6   : > { %v3407_v59 = vsel %vm3399_vm13, %v7375_v36, %v6021_v8 }
 0x7c7   : > { %v3534_v26 = vpop.permute.xlu0 %3533 }
 0x7c8   : > { %v3715_v23 = vsel %vm7363_vm14, %v6649_v49, %v3534_v26  ;;  %3619 = vrot.lane.b32.xlu2 %v3250_v63, %s4036_s23  ;;  %vm3400_vm14 = vcmp.gt.s32.totalorder %v7140_v20, 15 }
 0x7ca   : > { %3621 = vrot.lane.b32.xlu1 %v3251_v16, %s4036_s23 }
 0x7cb   : > { %v3548_v31 = vpop.permute.xlu2 %3547 }
 0x7cc   : > { %v3538_v60 = vpop.permute.xlu1 %3537  ;;  %v6755_v61 = vsel %vm3717_vm11, %v3714_v38, %v3548_v31 }
 0x7cd   : > { %v3718_v49 = vsel %vm3717_vm11, %v3709_v17, %v3538_v60  ;;  %3623 = vrot.lane.b32.xlu0 %v3252_v46, %s4036_s23 }
 0x7cf   : > { %v3540_v1 = vpop.permute.xlu0 %3539 }
 0x7d0   : > { %v3719_v30 = vsel %vm3717_vm11, %v6673_v41, %v3540_v1  ;;  %3625 = vrot.lane.b32.xlu2 %v3253_v33, %s4036_s23 }
 0x7d2   : > { %3627 = vrot.lane.b32.xlu1 %v3254_v57, %s4036_s23 }
 0x7d3   : > { %v3554_v17 = vpop.permute.xlu2 %3553 }
 0x7d4   : > { %v3544_v10 = vpop.permute.xlu1 %3543  ;;  %v3727_v15 = vsel %vm3726_vm2, %v3718_v49, %v3554_v17 }
 0x7d5   : > { %v3721_v41 = vsel %vm3717_vm11, %v3712_v13, %v3544_v10  ;;  %3629 = vrot.lane.b32.xlu0 %v3255_v27, %s4036_s23  ;;  %v3402_v13 = vsel %vm3394_vm5, %v7370_v55, %v5966_v51  ;;  %v3404_v51 = vsel %vm3396_vm10, %v7372_v37, %v5974_v21  ;;  %v7374_v21 = vld [vmem:[#allocation21_spill] sm:$0xff] }
 0x7d7   : > { %v3546_v14 = vpop.permute.xlu0 %3545 }
 0x7d8   : > { %v3722_v28 = vsel %vm3717_vm11, %v6697_v18, %v3546_v14  ;;  %3631 = vrot.lane.b32.xlu2 %v3256_v11, %s4036_s23 }
 0x7da   : > { %3633 = vrot.lane.b32.xlu1 %v3401_v39, %s4023_s3 }
 0x7db   : > { %v3560_v32 = vpop.permute.xlu2 %3559 }
 0x7dc   : > { %v3550_v35 = vpop.permute.xlu1 %3549  ;;  %v3730_v48 = vsel %vm3726_vm2, %v3721_v41, %v3560_v32 }
 0x7dd   : > { %v3724_v18 = vsel %vm3717_vm11, %v3715_v23, %v3550_v35  ;;  %3635 = vrot.lane.b32.xlu0 %v3402_v13, %s4023_s3 }
 0x7df   : > { %v3552_v54 = vpop.permute.xlu0 %3551 }
 0x7e0   : > { %v3725_v58 = vsel %vm3717_vm11, %v6719_v22, %v3552_v54  ;;  %3637 = vrot.lane.b32.xlu2 %v3403_v34, %s4023_s3  ;;  %vm3398_vm11 = vcmp.gt.s32.totalorder %v7132_v43, 15 }
 0x7e1   : > { %v3406_v56 = vsel %vm3398_vm11, %v7374_v21, %v6006_v2  ;;  %v7376_v2 = vld [vmem:[#allocation18_spill] sm:$0xff] }
 0x7e2   : > { %3639 = vrot.lane.b32.xlu1 %v3404_v51, %s4023_s3 }
 0x7e3   : > { %v3566_v9 = vpop.permute.xlu2 %3565 }
 0x7e4   : > { %v3556_v45 = vpop.permute.xlu1 %3555  ;;  %v3733_v53 = vsel %vm3726_vm2, %v3724_v18, %v3566_v9 }
 0x7e5   : > { %v3728_v22 = vsel %vm3726_vm2, %v3719_v30, %v3556_v45  ;;  %3641 = vrot.lane.b32.xlu0 %v3405_v47, %s4023_s3 }
 0x7e7   : > { %v3558_v6 = vpop.permute.xlu0 %3557 }
 0x7e8   : > { %v3729_v24 = vsel %vm3726_vm2, %v6739_v42, %v3558_v6  ;;  %3643 = vrot.lane.b32.xlu2 %v3406_v56, %s4023_s3  ;;  %v3408_v42 = vsel %vm3400_vm14, %v7376_v2, %v6027_v62 }
 0x7ea   : > { %3645 = vrot.lane.b32.xlu1 %v3407_v59, %s4023_s3 }
 0x7eb   : > { %v3572_v7 = vpop.permute.xlu2 %3571 }
 0x7ec   : > { %v3562_v43 = vpop.permute.xlu1 %3561  ;;  %v6821_v5 = vsel %vm3735_vm15, %v3728_v22, %v3572_v7 }
 0x7ed   : > { %v3731_v50 = vsel %vm3726_vm2, %v3722_v28, %v3562_v43  ;;  %3647 = vrot.lane.b32.xlu0 %v3408_v42, %s4023_s3 }
 0x7ef   : > { %v3564_v0 = vpop.permute.xlu0 %3563 }
 0x7f0   : > { %v3732_v8 = vsel %vm3726_vm2, %v6755_v61, %v3564_v0 }
 0x7f3   : > { %v3578_v25 = vpop.permute.xlu2 %3577 }
 0x7f4   : > { %v3568_v38 = vpop.permute.xlu1 %3567  ;;  %v6830_v26 = vsel %vm3735_vm15, %v3731_v50, %v3578_v25 }
 0x7f5   : > { %v3734_v20 = vsel %vm3726_vm2, %v3725_v58, %v3568_v38  ;;  %vm7377_vm2 = vcmask 130048  }
 0x7f6   : > { %vm7378_vm6 = vmmov %vm7377_vm2 }
 0x7f7   : > { %v3570_v63 = vpop.permute.xlu0 %3569  ;;  %vm7379_vm7 = vmmov %vm7377_vm2 }
 0x7f8   : > { %v3736_v23 = vsel %vm3735_vm15, %v3727_v15, %v3570_v63  ;;  %vm7380_vm8 = vmmov %vm7377_vm2 }
 0x7f9   : > { %vm7381_vm5 = vmmov %vm7377_vm2 }
 0x7fa   : > { %vm7382_vm9 = vmmov %vm7377_vm2 }
 0x7fb   : > { %v3584_v16 = vpop.permute.xlu2 %3583  ;;  %vm7383_vm10 = vmmov %vm7377_vm2 }
 0x7fc   : > { %v3574_v62 = vpop.permute.xlu1 %3573  ;;  %v6835_v31 = vsel %vm3735_vm15, %v3734_v20, %v3584_v16  ;;  %vm7384_vm12 = vmmov %vm7377_vm2 }
 0x7fd   : > { %v3738_v60 = vsel %vm3735_vm15, %v3729_v24, %v3574_v62 }
 0x7ff   : > { %v3576_v44 = vpop.permute.xlu0 %3575 }
 0x800   : > { %v3739_v61 = vsel %vm3735_vm15, %v3730_v48, %v3576_v44 }
 0x803   : > { %v3590_v46 = vpop.permute.xlu2 %3589 }
 0x804   : > { %v3580_v49 = vpop.permute.xlu1 %3579  ;;  %v3747_v54 = vsel %vm3744_vm0, %v3738_v60, %v3590_v46 }
 0x805   : > { %v3741_v1 = vsel %vm3735_vm15, %v3732_v8, %v3580_v49 }
 0x807   : > { %v3582_v52 = vpop.permute.xlu0 %3581 }
 0x808   : > { %v6841_v33 = vsel %vm3735_vm15, %v3733_v53, %v3582_v52 }
 0x80b   : > { %v3596_v30 = vpop.permute.xlu2 %3595 }
 0x80c   : > { %v3586_v3 = vpop.permute.xlu1 %3585  ;;  %v3750_v45 = vsel %vm3744_vm0, %v3741_v1, %v3596_v30 }
 0x80d   : > { %v3745_v53 = vsel %vm3744_vm0, %v3736_v23, %v3586_v3 }
 0x80f   : > { %v3588_v57 = vpop.permute.xlu0 %3587 }
 0x810   : > { %v3746_v36 = vsel %vm3744_vm0, %v6821_v5, %v3588_v57 }
 0x813   : > { %v3602_v17 = vpop.permute.xlu2 %3601 }
 0x814   : > { %v3592_v10 = vpop.permute.xlu1 %3591  ;;  %v3754_v47 = vsel %vm3753_vm1, %v3745_v53, %v3602_v17 }
 0x815   : > { %v3748_v50 = vsel %vm3744_vm0, %v3739_v61, %v3592_v10 }
 0x817   : > { %v3594_v15 = vpop.permute.xlu0 %3593 }
 0x818   : > { %v3749_v25 = vsel %vm3744_vm0, %v6830_v26, %v3594_v15 }
 0x81b   : > { %v3608_v29 = vpop.permute.xlu2 %3607 }
 0x81c   : > { %v3598_v27 = vpop.permute.xlu1 %3597  ;;  %v3757_v5 = vsel %vm3753_vm1, %v3748_v50, %v3608_v29 }
 0x81d   : > { %v3751_v62 = vsel %vm3744_vm0, %v6841_v33, %v3598_v27 }
 0x81f   : > { %v3600_v41 = vpop.permute.xlu0 %3599 }
 0x820   : > { %v3752_v61 = vsel %vm3744_vm0, %v6835_v31, %v3600_v41 }
 0x823   : > { %v3614_v14 = vpop.permute.xlu2 %3613 }
 0x824   : > { %v3604_v19 = vpop.permute.xlu1 %3603  ;;  %v3760_v60 = vsel %vm3753_vm1, %v3751_v62, %v3614_v14 }
 0x825   : > { %v3755_v7 = vsel %vm3753_vm1, %v3746_v36, %v3604_v19 }
 0x827   : > { %v3606_v11 = vpop.permute.xlu0 %3605 }
 0x828   : > { %v3756_v4 = vsel %vm3753_vm1, %v3747_v54, %v3606_v11 }
 0x82b   : > { %v3620_v28 = vpop.permute.xlu2 %3619 }
 0x82c   : > { %v3610_v12 = vpop.permute.xlu1 %3609  ;;  %v3764_v43 = vsel %vm3762_vm4, %v3755_v7, %v3620_v28 }
 0x82d   : > { %v3758_v20 = vsel %vm3753_vm1, %v3749_v25, %v3610_v12 }
 0x82f   : > { %v3612_v39 = vpop.permute.xlu0 %3611 }
 0x830   : > { %v3759_v40 = vsel %vm3753_vm1, %v3750_v45, %v3612_v39 }
 0x833   : > { %v3626_v32 = vpop.permute.xlu2 %3625 }
 0x834   : > { %v3616_v35 = vpop.permute.xlu1 %3615  ;;  %v3767_v63 = vsel %vm3762_vm4, %v3758_v20, %v3626_v32 }
 0x835   : > { %v3761_v49 = vsel %vm3753_vm1, %v3752_v61, %v3616_v35 }
 0x837   : > { %v3618_v48 = vpop.permute.xlu0 %3617 }
 0x838   : > { %v3763_v21 = vsel %vm3762_vm4, %v3754_v47, %v3618_v48 }
 0x83b   : > { %v3632_v55 = vpop.permute.xlu2 %3631 }
 0x83c   : > { %v3622_v13 = vpop.permute.xlu1 %3621  ;;  %v3770_v1 = vsel %vm3762_vm4, %v3761_v49, %v3632_v55 }
 0x83d   : > { %v3765_v34 = vsel %vm3762_vm4, %v3756_v4, %v3622_v13 }
 0x83f   : > { %v3624_v18 = vpop.permute.xlu0 %3623 }
 0x840   : > { %v3766_v0 = vsel %vm3762_vm4, %v3757_v5, %v3624_v18 }
 0x843   : > { %v3638_v58 = vpop.permute.xlu2 %3637 }
 0x844   : > { %v3628_v37 = vpop.permute.xlu1 %3627  ;;  %v3774_v51 = vsel %vm3771_vm3, %v3765_v34, %v3638_v58 }
 0x845   : > { %3782 = vst.msk [vmem:[%s6849_s26 + $0x10] sm:$0xff] %vm7377_vm2, %v3774_v51  ;;  %v3768_v22 = vsel %vm3762_vm4, %v3759_v40, %v3628_v37 }
 0x847   : > { %v3630_v9 = vpop.permute.xlu0 %3629 }
 0x848   : > { %v3769_v26 = vsel %vm3762_vm4, %v3760_v60, %v3630_v9 }
 0x84b   : > { %v3644_v6 = vpop.permute.xlu2 %3643 }
 0x84c   : > { %v3634_v56 = vpop.permute.xlu1 %3633  ;;  %v3777_v24 = vsel %vm3771_vm3, %v3768_v22, %v3644_v6 }
 0x84d   : > { %v3772_v59 = vsel %vm3771_vm3, %v3763_v21, %v3634_v56  ;;  %3785 = vst.msk [vmem:[%s6849_s26 + $0x28] sm:$0xff] %vm7378_vm6, %v3777_v24 }
 0x84e   : > { %3780 = vst.msk [vmem:[%s6849_s26] sm:$0xff] %vm7379_vm7, %v3772_v59 }
 0x84f   : > { %v3636_v2 = vpop.permute.xlu0 %3635 }
 0x850   : > { %v3773_v42 = vsel %vm3771_vm3, %v3764_v43, %v3636_v2 }
 0x851   : > { %3781 = vst.msk [vmem:[%s6849_s26 + $0x8] sm:$0xff] %vm7380_vm8, %v3773_v42 }
 0x854   : > { %v3640_v8 = vpop.permute.xlu1 %3639 }
 0x855   : > { %v3775_v38 = vsel %vm3771_vm3, %v3766_v0, %v3640_v8 }
 0x856   : > { %3783 = vst.msk [vmem:[%s6849_s26 + $0x18] sm:$0xff] %vm7381_vm5, %v3775_v38 }
 0x857   : > { %v3642_v23 = vpop.permute.xlu0 %3641 }
 0x858   : > { %v3776_v16 = vsel %vm3771_vm3, %v3767_v63, %v3642_v23 }
 0x859   : > { %3784 = vst.msk [vmem:[%s6849_s26 + $0x20] sm:$0xff] %vm7382_vm9, %v3776_v16 }
 0x85c   : > { %v3646_v44 = vpop.permute.xlu1 %3645 }
 0x85d   : > { %v3778_v46 = vsel %vm3771_vm3, %v3769_v26, %v3646_v44 }
 0x85e   : > { %3786 = vst.msk [vmem:[%s6849_s26 + $0x30] sm:$0xff] %vm7383_vm10, %v3778_v46 }
 0x85f   : > { %v3648_v52 = vpop.permute.xlu0 %3647 }
 0x860   : > { %v3779_v30 = vsel %vm3771_vm3, %v3770_v1, %v3648_v52 }
 0x861   : > { %3787 = vst.msk [vmem:[%s6849_s26 + $0x38] sm:$0xff] %vm7384_vm12, %v3779_v30 }
 0x862 PF: > { %s12_s13 = sadd.s32 1, %s4014_s13   ;;  %s7385_s9 = smov %s4006_s11 }
 0x863   : > { %p9_p7 = scmp.ge.s32.totalorder %s12_s13, 6   ;;  %s7386_s10 = smov %s4010_s12 }
 0x864   : > { %s7387_s11 = smov %s7390_s14  ;;  %s7388_s12 = smov %s7394_s15 }
 0x865   :  { %11 = sbr.rel (!%p9_p7) target bundleno = 3 (0x3), region = 61 }

</bundles_post_ra>
